<compile_context>
chip_gen: v7x
topology: tpu7x:2x2x1
jax: 0.10.0
libtpu: 0.0.40
codegen_flags: <defaults>
</compile_context>

<pallas_src>
import functools

import jax
import jax.numpy as jnp
from jax.experimental import pallas as pl
from jax.experimental.pallas import tpu as pltpu


# ----------------------------------------------------------------------------
# Pallas kernels
# ----------------------------------------------------------------------------
def _conv_pool_kernel(p00_ref, p01_ref, p10_ref, p11_ref, w_ref, b_ref, o_ref):
    """relu(max_{2x2 pool corners}(patches_i @ w_bnfolded) + bias).

    Fuses conv1 (as im2col matmul with BN scale folded into w), BN bias, ReLU
    and the 2x2 max pool into one kernel.  max/ReLU/bias commute, so pooling
    is just an elementwise max of the four corner matmul accumulators.
    """
    w = w_ref[...]
    acc = jnp.dot(p00_ref[...], w, preferred_element_type=jnp.float32)
    acc = jnp.maximum(acc, jnp.dot(p01_ref[...], w, preferred_element_type=jnp.float32))
    acc = jnp.maximum(acc, jnp.dot(p10_ref[...], w, preferred_element_type=jnp.float32))
    acc = jnp.maximum(acc, jnp.dot(p11_ref[...], w, preferred_element_type=jnp.float32))
    o_ref[...] = jnp.maximum(acc + b_ref[...], 0.0).astype(o_ref.dtype)


def _matmul_bias_kernel(x_ref, w_ref, b_ref, o_ref, *, relu):
    """X @ W + bias (+ ReLU); acc & epilogue in f32, operands may be bf16."""
    acc = jnp.dot(x_ref[...], w_ref[...], preferred_element_type=jnp.float32)
    acc = acc + b_ref[...]
    if relu:
        acc = jnp.maximum(acc, 0.0)
    o_ref[...] = acc.astype(o_ref.dtype)


def _mlp_kernel(x_ref, w1_ref, b1_ref, w2_ref, b2_ref, o_ref):
    """Fused fc1 + ReLU + fc2; the hidden activation never leaves the chip."""
    h = jnp.dot(x_ref[...], w1_ref[...], preferred_element_type=jnp.float32)
    h = jnp.maximum(h + b1_ref[...], 0.0)                       # f32 epilogue
    acc = jnp.dot(h, w2_ref[...], preferred_element_type=jnp.float32)
    o_ref[...] = (acc + b2_ref[...]).astype(o_ref.dtype)


# ----------------------------------------------------------------------------
# pallas_call wrappers (row tiling guarded for large batches / small VMEM)
# ----------------------------------------------------------------------------
_M_TILE_CAP = 512  # keep double-buffered blocks far below v7x's 64 MiB VMEM


def _row_tiling(M, cap=_M_TILE_CAP):
    """(tile_m, padded_M): one block for small M, capped tiles otherwise."""
    if M <= cap:
        return M, M
    return cap, ((M + cap - 1) // cap) * cap


def _pad_rows(x, Mp):
    return x if x.shape[0] == Mp else jnp.pad(x, ((0, Mp - x.shape[0]), (0, 0)))


def conv_bn_relu_pool(p00, p01, p10, p11, w, bias, out_dtype=jnp.bfloat16):
    M, K = p00.shape
    N = w.shape[1]
    tm, Mp = _row_tiling(M)
    p00, p01, p10, p11 = (_pad_rows(a, Mp) for a in (p00, p01, p10, p11))
    out = pl.pallas_call(
        _conv_pool_kernel,
        out_shape=jax.ShapeDtypeStruct((Mp, N), out_dtype),
        grid=(Mp // tm,),
        in_specs=[pl.BlockSpec((tm, K), lambda i: (i, 0)) for _ in range(4)] + [
            pl.BlockSpec((K, N), lambda i: (0, 0)),
            pl.BlockSpec((1, N), lambda i: (0, 0)),
        ],
        out_specs=pl.BlockSpec((tm, N), lambda i: (i, 0)),
        compiler_params=pltpu.CompilerParams(dimension_semantics=("parallel",)),
    )(p00, p01, p10, p11, w, bias)
    return out[:M] if Mp != M else out


def matmul_bias(x, w, bias, *, relu, out_dtype):
    M, K = x.shape
    N = w.shape[1]
    tm, Mp = _row_tiling(M)
    x = _pad_rows(x, Mp)
    kern = functools.partial(_matmul_bias_kernel, relu=relu)
    out = pl.pallas_call(
        kern,
        out_shape=jax.ShapeDtypeStruct((Mp, N), out_dtype),
        grid=(Mp // tm,),
        in_specs=[pl.BlockSpec((tm, K), lambda i: (i, 0)),
                  pl.BlockSpec((K, N), lambda i: (0, 0)),
                  pl.BlockSpec((1, N), lambda i: (0, 0))],
        out_specs=pl.BlockSpec((tm, N), lambda i: (i, 0)),
        compiler_params=pltpu.CompilerParams(dimension_semantics=("parallel",)),
    )(x, w, bias)
    return out[:M] if Mp != M else out


def mlp_fc1_relu_fc2(x, w1, b1, w2, b2):
    M, K = x.shape
    H = w1.shape[1]
    N = w2.shape[1]
    tm, Mp = _row_tiling(M)
    x = _pad_rows(x, Mp)
    out = pl.pallas_call(
        _mlp_kernel,
        out_shape=jax.ShapeDtypeStruct((Mp, N), jnp.float32),
        grid=(Mp // tm,),
        in_specs=[pl.BlockSpec((tm, K), lambda i: (i, 0)),
                  pl.BlockSpec((K, H), lambda i: (0, 0)),
                  pl.BlockSpec((1, H), lambda i: (0, 0)),
                  pl.BlockSpec((H, N), lambda i: (0, 0)),
                  pl.BlockSpec((1, N), lambda i: (0, 0))],
        out_specs=pl.BlockSpec((tm, N), lambda i: (i, 0)),
        compiler_params=pltpu.CompilerParams(dimension_semantics=("parallel",)),
    )(x, w1, b1, w2, b2)
    return out[:M] if Mp != M else out


# ----------------------------------------------------------------------------
# Layout glue (im2col patch extraction) + offline parameter preparation
# ----------------------------------------------------------------------------
def _im2col(x_nhwc, k):
    """Valid conv, stride 1.  Columns ordered (kh, kw, cin)."""
    B, H, W, C = x_nhwc.shape
    OH, OW = H - k + 1, W - k + 1
    cols = [x_nhwc[:, kh:kh + OH, kw:kw + OW, :]
            for kh in range(k) for kw in range(k)]
    p = jnp.stack(cols, axis=3)                       # [B, OH, OW, k*k, C]
    return p.reshape(B * OH * OW, k * k * C), (B, OH, OW)


def _conv_pool_corner_patches(x_nhwc, k):
    """im2col patches for a k x k valid conv followed by 2x2/2 max pooling,
    built directly as the four pool-corner patch matrices (no full-resolution
    intermediate).  Columns ordered (kh, kw, cin)."""
    B, H, W, C = x_nhwc.shape
    OH, OW = H - k + 1, W - k + 1
    PH, PW = OH // 2, OW // 2
    mats = []
    for dy in (0, 1):
        for dx in (0, 1):
            cols = [x_nhwc[:, dy + kh: dy + kh + 2 * PH: 2,
                           dx + kw: dx + kw + 2 * PW: 2, :]
                    for kh in range(k) for kw in range(k)]
            p = jnp.stack(cols, axis=3)               # [B, PH, PW, k*k, C]
            mats.append(p.reshape(B * PH * PW, k * k * C))
    return mats, (PH, PW)


def prepare_params(p, eps=1e-5):
    """One-time prep: fold eval-mode BN scale into conv weights (+bias fold),
    permute fc1 rows from torch-CHW-flatten to our NHWC-flatten order, and
    cast the large matmul operands (conv2 / fc1 weights) to bf16."""
    c1 = p["conv1_w"].shape[-1]
    c2 = p["conv2_w"].shape[-1]

    s1 = p["bn1_gamma"] / jnp.sqrt(p["bn1_var"] + eps)
    b1 = (p["conv1_b"] - p["bn1_mean"]) * s1 + p["bn1_beta"]
    w1 = p["conv1_w"].reshape(-1, c1) * s1[None, :]

    s2 = p["bn2_gamma"] / jnp.sqrt(p["bn2_var"] + eps)
    b2 = (p["conv2_b"] - p["bn2_mean"]) * s2 + p["bn2_beta"]
    w2 = (p["conv2_w"].reshape(-1, c2) * s2[None, :]).astype(jnp.bfloat16)

    fc1_in, fc1_out = p["fc1_w"].shape
    hw = fc1_in // c2
    oh = int(round(hw ** 0.5))
    assert oh * oh * c2 == fc1_in
    # torch.flatten on NCHW = (c, h, w) order  ->  our NHWC flatten = (h, w, c)
    fc1_w = (p["fc1_w"].reshape(c2, oh, oh, fc1_out)
             .transpose(1, 2, 0, 3).reshape(fc1_in, fc1_out)).astype(jnp.bfloat16)

    return {
        "w1": w1.astype(jnp.float32),
        "b1": b1.reshape(1, c1).astype(jnp.float32),
        "w2": w2,
        "b2": b2.reshape(1, c2).astype(jnp.float32),
        "fc1_w": fc1_w,
        "fc1_b": p["fc1_b"].reshape(1, fc1_out).astype(jnp.float32),
        "fc2_w": p["fc2_w"].astype(jnp.float32),
        "fc2_b": p["fc2_b"].reshape(1, -1).astype(jnp.float32),
    }


# ----------------------------------------------------------------------------
# Forward pass
# ----------------------------------------------------------------------------
def smaller_net_forward(x_nchw, p):
    x = jnp.transpose(x_nchw, (0, 2, 3, 1))           # NCHW -> NHWC (C=1)
    B = x.shape[0]
    c1 = p["w1"].shape[1]
    c2 = p["w2"].shape[1]

    # cba1: Conv2d(1, 32, k=5) + BN + ReLU + MaxPool2d(2) — one fused kernel.
    (p00, p01, p10, p11), (PH, PW) = _conv_pool_corner_patches(x, 5)
    y = conv_bn_relu_pool(p00, p01, p10, p11, p["w1"], p["b1"])   # [B*12*12, 32] bf16
    y = y.reshape(B, PH, PW, c1)

    # cba2: Conv2d(32, 64, k=5) + BN + ReLU (bf16 operands, f32 acc/epilogue).
    cols, (_, OH, OW) = _im2col(y, 5)                             # [B*8*8, 800] bf16
    y = matmul_bias(cols, p["w2"], p["b2"], relu=True,
                    out_dtype=jnp.bfloat16)                       # [B*8*8, 64] bf16

    # torch.flatten(x, 1): fc1's rows were permuted offline to NHWC order, so
    # this row-major reshape is a free metadata op (no runtime transpose).
    y = y.reshape(B, OH * OW * c2)                                # [B, 4096]

    # fc1 + ReLU + fc2 in a single kernel (hidden stays on-chip).
    return mlp_fc1_relu_fc2(y, p["fc1_w"], p["fc1_b"], p["fc2_w"], p["fc2_b"])


# ----------------------------------------------------------------------------
# Pure-JAX f32 reference (original-module semantics, for correctness check)
# ----------------------------------------------------------------------------
def _reference_forward(x_nchw, p, eps=1e-5):
    hp = jax.lax.Precision.HIGHEST

    def bn(y, g, bta, m, v):
        return ((y - m[None, :, None, None])
                / jnp.sqrt(v + eps)[None, :, None, None]
                * g[None, :, None, None] + bta[None, :, None, None])

    w1 = jnp.transpose(p["conv1_w"], (3, 2, 0, 1))   # OIHW
    y = jax.lax.conv_general_dilated(
        x_nchw, w1, (1, 1), "VALID",
        dimension_numbers=("NCHW", "OIHW", "NCHW"), precision=hp)
    y = y + p["conv1_b"][None, :, None, None]
    y = jnp.maximum(bn(y, p["bn1_gamma"], p["bn1_beta"],
                       p["bn1_mean"], p["bn1_var"]), 0.0)
    y = jax.lax.reduce_window(y, -jnp.inf, jax.lax.max,
                              (1, 1, 2, 2), (1, 1, 2, 2), "VALID")

    w2 = jnp.transpose(p["conv2_w"], (3, 2, 0, 1))
    y = jax.lax.conv_general_dilated(
        y, w2, (1, 1), "VALID",
        dimension_numbers=("NCHW", "OIHW", "NCHW"), precision=hp)
    y = y + p["conv2_b"][None, :, None, None]
    y = jnp.maximum(bn(y, p["bn2_gamma"], p["bn2_beta"],
                       p["bn2_mean"], p["bn2_var"]), 0.0)

    y = y.reshape(y.shape[0], -1)
    y = jnp.maximum(jnp.dot(y, p["fc1_w"], precision=hp) + p["fc1_b"], 0.0)
    return jnp.dot(y, p["fc2_w"], precision=hp) + p["fc2_b"]


# ----------------------------------------------------------------------------
if __name__ == "__main__":
    d = 32
    key = jax.random.PRNGKey(0)
    ks = jax.random.split(key, 18)
    params = {
        "conv1_w": 0.10 * jax.random.normal(ks[0], (5, 5, 1, d), jnp.float32),
        "conv1_b": 0.10 * jax.random.normal(ks[1], (d,), jnp.float32),
        "bn1_gamma": 1.0 + 0.1 * jax.random.normal(ks[2], (d,), jnp.float32),
        "bn1_beta": 0.1 * jax.random.normal(ks[3], (d,), jnp.float32),
        "bn1_mean": 0.1 * jax.random.normal(ks[4], (d,), jnp.float32),
        "bn1_var": jax.random.uniform(ks[5], (d,), jnp.float32, 0.5, 1.5),
        "conv2_w": 0.05 * jax.random.normal(ks[6], (5, 5, d, 2 * d), jnp.float32),
        "conv2_b": 0.10 * jax.random.normal(ks[7], (2 * d,), jnp.float32),
        "bn2_gamma": 1.0 + 0.1 * jax.random.normal(ks[8], (2 * d,), jnp.float32),
        "bn2_beta": 0.1 * jax.random.normal(ks[9], (2 * d,), jnp.float32),
        "bn2_mean": 0.1 * jax.random.normal(ks[10], (2 * d,), jnp.float32),
        "bn2_var": jax.random.uniform(ks[11], (2 * d,), jnp.float32, 0.5, 1.5),
        # Linear weights stored [in, out] (transpose of torch's [out, in]).
        "fc1_w": 0.02 * jax.random.normal(ks[12], (d * 128, 128), jnp.float32),
        "fc1_b": 0.10 * jax.random.normal(ks[13], (128,), jnp.float32),
        "fc2_w": 0.05 * jax.random.normal(ks[14], (128, 10), jnp.float32),
        "fc2_b": 0.10 * jax.random.normal(ks[15], (10,), jnp.float32),
    }
    # Input implied by fc1 (d*128 = 4096 = 64 * 8 * 8): 1x28x28 images (MNIST).
    x = jax.random.normal(ks[16], (2, 1, 28, 28), jnp.float32)

    prepped = prepare_params(params)                 # one-time weight prep
    out = jax.jit(smaller_net_forward)(x, prepped)
    out = jax.block_until_ready(out)
    assert out.shape == (2, 10) and out.dtype == jnp.float32

    ref = jax.block_until_ready(_reference_forward(x, params))
    # bf16 operands on conv2/fc1 (f32 accumulation) -> slightly looser tolerance.
    assert jnp.allclose(out, ref, atol=2e-2, rtol=2e-2), (
        "mismatch vs reference:\n%r\n%r" % (out, ref))

    print("KERNEL_OK")
</pallas_src>

<mosaic_0001>
module attributes {stable_mosaic.version = 11 : i64} {
  func.func @_conv_pool_kernel(%arg0: i32, %arg1: memref<288x25xf32, #tpu.memory_space<vmem>>, %arg2: memref<288x25xf32, #tpu.memory_space<vmem>>, %arg3: memref<288x25xf32, #tpu.memory_space<vmem>>, %arg4: memref<288x25xf32, #tpu.memory_space<vmem>>, %arg5: memref<25x32xf32, #tpu.memory_space<vmem>>, %arg6: memref<1x32xf32, #tpu.memory_space<vmem>>, %arg7: memref<288x32xbf16, #tpu.memory_space<vmem>>) attributes {dimension_semantics = [#tpu.dimension_semantics<parallel>], iteration_bounds = array<i64: 1>, scalar_prefetch = 0 : i64, scratch_operands = 0 : i64, tpu.core_type = #tpu.core_type<tc>, window_params = [{transform_indices = @transform_0, window_bounds = array<i64: 288, 25>}, {transform_indices = @transform_1, window_bounds = array<i64: 288, 25>}, {transform_indices = @transform_2, window_bounds = array<i64: 288, 25>}, {transform_indices = @transform_3, window_bounds = array<i64: 288, 25>}, {pipeline_mode = #tpu.pipeline_mode<synchronous>, transform_indices = @transform_4, window_bounds = array<i64: 25, 32>}, {pipeline_mode = #tpu.pipeline_mode<synchronous>, transform_indices = @transform_5, window_bounds = array<i64: 1, 32>}, {transform_indices = @transform_6, window_bounds = array<i64: 288, 32>}]} {
    %c0 = arith.constant 0 : index
    %c0_0 = arith.constant 0 : index
    %0 = vector.load %arg5[%c0, %c0_0] : memref<25x32xf32, #tpu.memory_space<vmem>>, vector<25x32xf32>
    %c0_1 = arith.constant 0 : index
    %c0_2 = arith.constant 0 : index
    %1 = vector.load %arg1[%c0_1, %c0_2] : memref<288x25xf32, #tpu.memory_space<vmem>>, vector<288x25xf32>
    %cst = arith.constant dense<0.000000e+00> : vector<288x32xf32>
    %2 = tpu.matmul %1, %0, %cst {dimension_numbers = #tpu.dot_dimension_numbers<[1], [0], [0], [1], [0, 0, 1, 1], [], []>} : vector<288x25xf32>, vector<25x32xf32>, vector<288x32xf32> -> vector<288x32xf32>
    %c0_3 = arith.constant 0 : index
    %c0_4 = arith.constant 0 : index
    %3 = vector.load %arg2[%c0_3, %c0_4] : memref<288x25xf32, #tpu.memory_space<vmem>>, vector<288x25xf32>
    %cst_5 = arith.constant dense<0.000000e+00> : vector<288x32xf32>
    %4 = tpu.matmul %3, %0, %cst_5 {dimension_numbers = #tpu.dot_dimension_numbers<[1], [0], [0], [1], [0, 0, 1, 1], [], []>} : vector<288x25xf32>, vector<25x32xf32>, vector<288x32xf32> -> vector<288x32xf32>
    %5 = arith.maximumf %2, %4 : vector<288x32xf32>
    %c0_6 = arith.constant 0 : index
    %c0_7 = arith.constant 0 : index
    %6 = vector.load %arg3[%c0_6, %c0_7] : memref<288x25xf32, #tpu.memory_space<vmem>>, vector<288x25xf32>
    %cst_8 = arith.constant dense<0.000000e+00> : vector<288x32xf32>
    %7 = tpu.matmul %6, %0, %cst_8 {dimension_numbers = #tpu.dot_dimension_numbers<[1], [0], [0], [1], [0, 0, 1, 1], [], []>} : vector<288x25xf32>, vector<25x32xf32>, vector<288x32xf32> -> vector<288x32xf32>
    %8 = arith.maximumf %5, %7 : vector<288x32xf32>
    %c0_9 = arith.constant 0 : index
    %c0_10 = arith.constant 0 : index
    %9 = vector.load %arg4[%c0_9, %c0_10] : memref<288x25xf32, #tpu.memory_space<vmem>>, vector<288x25xf32>
    %cst_11 = arith.constant dense<0.000000e+00> : vector<288x32xf32>
    %10 = tpu.matmul %9, %0, %cst_11 {dimension_numbers = #tpu.dot_dimension_numbers<[1], [0], [0], [1], [0, 0, 1, 1], [], []>} : vector<288x25xf32>, vector<25x32xf32>, vector<288x32xf32> -> vector<288x32xf32>
    %11 = arith.maximumf %8, %10 : vector<288x32xf32>
    %c0_12 = arith.constant 0 : index
    %c0_13 = arith.constant 0 : index
    %12 = vector.load %arg6[%c0_12, %c0_13] : memref<1x32xf32, #tpu.memory_space<vmem>>, vector<1x32xf32>
    %13 = vector.broadcast %12 : vector<1x32xf32> to vector<288x32xf32>
    %14 = arith.addf %11, %13 : vector<288x32xf32>
    %cst_14 = arith.constant 0.000000e+00 : f32
    %15 = vector.broadcast %cst_14 : f32 to vector<288x32xf32>
    %16 = arith.maximumf %14, %15 : vector<288x32xf32>
    %17 = arith.truncf %16 : vector<288x32xf32> to vector<288x32xbf16>
    %c0_15 = arith.constant 0 : index
    %c0_16 = arith.constant 0 : index
    %18 = vector.load %arg7[%c0_15, %c0_16] : memref<288x32xbf16, #tpu.memory_space<vmem>>, vector<288x32xbf16>
    tpu.vector_store %arg7[%c0_15, %c0_16], %17 {strides = array<i32>} : memref<288x32xbf16, #tpu.memory_space<vmem>>, vector<288x32xbf16>,
    return
  }
  func.func @transform_0(%arg0: i32) -> (i32, i32) {
    %c0_i32 = arith.constant 0 : i32
    %c0_i32_0 = arith.constant 0 : i32
    return %arg0, %c0_i32 : i32, i32
  }
  func.func @transform_1(%arg0: i32) -> (i32, i32) {
    %c0_i32 = arith.constant 0 : i32
    %c0_i32_0 = arith.constant 0 : i32
    return %arg0, %c0_i32 : i32, i32
  }
  func.func @transform_2(%arg0: i32) -> (i32, i32) {
    %c0_i32 = arith.constant 0 : i32
    %c0_i32_0 = arith.constant 0 : i32
    return %arg0, %c0_i32 : i32, i32
  }
  func.func @transform_3(%arg0: i32) -> (i32, i32) {
    %c0_i32 = arith.constant 0 : i32
    %c0_i32_0 = arith.constant 0 : i32
    return %arg0, %c0_i32 : i32, i32
  }
  func.func @transform_4(%arg0: i32) -> (i32, i32) {
    %c0_i32 = arith.constant 0 : i32
    %c0_i32_0 = arith.constant 0 : i32
    %c0_i32_1 = arith.constant 0 : i32
    return %c0_i32, %c0_i32_0 : i32, i32
  }
  func.func @transform_5(%arg0: i32) -> (i32, i32) {
    %c0_i32 = arith.constant 0 : i32
    %c0_i32_0 = arith.constant 0 : i32
    %c0_i32_1 = arith.constant 0 : i32
    return %c0_i32, %c0_i32_0 : i32, i32
  }
  func.func @transform_6(%arg0: i32) -> (i32, i32) {
    %c0_i32 = arith.constant 0 : i32
    %c0_i32_0 = arith.constant 0 : i32
    return %arg0, %c0_i32 : i32, i32
  }
}

module attributes {stable_mosaic.version = 11 : i64} {
  func.func @_matmul_bias_kernel(%arg0: i32, %arg1: memref<128x800xbf16, #tpu.memory_space<vmem>>, %arg2: memref<800x64xbf16, #tpu.memory_space<vmem>>, %arg3: memref<1x64xf32, #tpu.memory_space<vmem>>, %arg4: memref<128x64xbf16, #tpu.memory_space<vmem>>) attributes {dimension_semantics = [#tpu.dimension_semantics<parallel>], iteration_bounds = array<i64: 1>, scalar_prefetch = 0 : i64, scratch_operands = 0 : i64, tpu.core_type = #tpu.core_type<tc>, window_params = [{transform_indices = @transform_0, window_bounds = array<i64: 128, 800>}, {pipeline_mode = #tpu.pipeline_mode<synchronous>, transform_indices = @transform_1, window_bounds = array<i64: 800, 64>}, {pipeline_mode = #tpu.pipeline_mode<synchronous>, transform_indices = @transform_2, window_bounds = array<i64: 1, 64>}, {transform_indices = @transform_3, window_bounds = array<i64: 128, 64>}]} {
    %c0 = arith.constant 0 : index
    %c0_0 = arith.constant 0 : index
    %0 = vector.load %arg1[%c0, %c0_0] : memref<128x800xbf16, #tpu.memory_space<vmem>>, vector<128x800xbf16>
    %c0_1 = arith.constant 0 : index
    %c0_2 = arith.constant 0 : index
    %1 = vector.load %arg2[%c0_1, %c0_2] : memref<800x64xbf16, #tpu.memory_space<vmem>>, vector<800x64xbf16>
    %cst = arith.constant dense<0.000000e+00> : vector<128x64xf32>
    %2 = tpu.matmul %0, %1, %cst {dimension_numbers = #tpu.dot_dimension_numbers<[1], [0], [0], [1], [0, 0, 1, 1], [], []>} : vector<128x800xbf16>, vector<800x64xbf16>, vector<128x64xf32> -> vector<128x64xf32>
    %c0_3 = arith.constant 0 : index
    %c0_4 = arith.constant 0 : index
    %3 = vector.load %arg3[%c0_3, %c0_4] : memref<1x64xf32, #tpu.memory_space<vmem>>, vector<1x64xf32>
    %4 = vector.broadcast %3 : vector<1x64xf32> to vector<128x64xf32>
    %5 = arith.addf %2, %4 : vector<128x64xf32>
    %cst_5 = arith.constant 0.000000e+00 : f32
    %6 = vector.broadcast %cst_5 : f32 to vector<128x64xf32>
    %7 = arith.maximumf %5, %6 : vector<128x64xf32>
    %8 = arith.truncf %7 : vector<128x64xf32> to vector<128x64xbf16>
    %c0_6 = arith.constant 0 : index
    %c0_7 = arith.constant 0 : index
    %9 = vector.load %arg4[%c0_6, %c0_7] : memref<128x64xbf16, #tpu.memory_space<vmem>>, vector<128x64xbf16>
    tpu.vector_store %arg4[%c0_6, %c0_7], %8 {strides = array<i32>} : memref<128x64xbf16, #tpu.memory_space<vmem>>, vector<128x64xbf16>,
    return
  }
  func.func @transform_0(%arg0: i32) -> (i32, i32) {
    %c0_i32 = arith.constant 0 : i32
    %c0_i32_0 = arith.constant 0 : i32
    return %arg0, %c0_i32 : i32, i32
  }
  func.func @transform_1(%arg0: i32) -> (i32, i32) {
    %c0_i32 = arith.constant 0 : i32
    %c0_i32_0 = arith.constant 0 : i32
    %c0_i32_1 = arith.constant 0 : i32
    return %c0_i32, %c0_i32_0 : i32, i32
  }
  func.func @transform_2(%arg0: i32) -> (i32, i32) {
    %c0_i32 = arith.constant 0 : i32
    %c0_i32_0 = arith.constant 0 : i32
    %c0_i32_1 = arith.constant 0 : i32
    return %c0_i32, %c0_i32_0 : i32, i32
  }
  func.func @transform_3(%arg0: i32) -> (i32, i32) {
    %c0_i32 = arith.constant 0 : i32
    %c0_i32_0 = arith.constant 0 : i32
    return %arg0, %c0_i32 : i32, i32
  }
}

module attributes {stable_mosaic.version = 11 : i64} {
  func.func @_mlp_kernel(%arg0: i32, %arg1: memref<2x4096xbf16, #tpu.memory_space<vmem>>, %arg2: memref<4096x128xbf16, #tpu.memory_space<vmem>>, %arg3: memref<1x128xf32, #tpu.memory_space<vmem>>, %arg4: memref<128x10xf32, #tpu.memory_space<vmem>>, %arg5: memref<1x10xf32, #tpu.memory_space<vmem>>, %arg6: memref<2x10xf32, #tpu.memory_space<vmem>>) attributes {dimension_semantics = [#tpu.dimension_semantics<parallel>], iteration_bounds = array<i64: 1>, scalar_prefetch = 0 : i64, scratch_operands = 0 : i64, tpu.core_type = #tpu.core_type<tc>, window_params = [{transform_indices = @transform_0, window_bounds = array<i64: 2, 4096>}, {pipeline_mode = #tpu.pipeline_mode<synchronous>, transform_indices = @transform_1, window_bounds = array<i64: 4096, 128>}, {pipeline_mode = #tpu.pipeline_mode<synchronous>, transform_indices = @transform_2, window_bounds = array<i64: 1, 128>}, {pipeline_mode = #tpu.pipeline_mode<synchronous>, transform_indices = @transform_3, window_bounds = array<i64: 128, 10>}, {pipeline_mode = #tpu.pipeline_mode<synchronous>, transform_indices = @transform_4, window_bounds = array<i64: 1, 10>}, {transform_indices = @transform_5, window_bounds = array<i64: 2, 10>}]} {
    %c0 = arith.constant 0 : index
    %c0_0 = arith.constant 0 : index
    %0 = vector.load %arg1[%c0, %c0_0] : memref<2x4096xbf16, #tpu.memory_space<vmem>>, vector<2x4096xbf16>
    %c0_1 = arith.constant 0 : index
    %c0_2 = arith.constant 0 : index
    %1 = vector.load %arg2[%c0_1, %c0_2] : memref<4096x128xbf16, #tpu.memory_space<vmem>>, vector<4096x128xbf16>
    %cst = arith.constant dense<0.000000e+00> : vector<2x128xf32>
    %2 = tpu.matmul %0, %1, %cst {dimension_numbers = #tpu.dot_dimension_numbers<[1], [0], [0], [1], [0, 0, 1, 1], [], []>} : vector<2x4096xbf16>, vector<4096x128xbf16>, vector<2x128xf32> -> vector<2x128xf32>
    %c0_3 = arith.constant 0 : index
    %c0_4 = arith.constant 0 : index
    %3 = vector.load %arg3[%c0_3, %c0_4] : memref<1x128xf32, #tpu.memory_space<vmem>>, vector<1x128xf32>
    %4 = vector.broadcast %3 : vector<1x128xf32> to vector<2x128xf32>
    %5 = arith.addf %2, %4 : vector<2x128xf32>
    %cst_5 = arith.constant 0.000000e+00 : f32
    %6 = vector.broadcast %cst_5 : f32 to vector<2x128xf32>
    %7 = arith.maximumf %5, %6 : vector<2x128xf32>
    %c0_6 = arith.constant 0 : index
    %c0_7 = arith.constant 0 : index
    %8 = vector.load %arg4[%c0_6, %c0_7] : memref<128x10xf32, #tpu.memory_space<vmem>>, vector<128x10xf32>
    %cst_8 = arith.constant dense<0.000000e+00> : vector<2x10xf32>
    %9 = tpu.matmul %7, %8, %cst_8 {dimension_numbers = #tpu.dot_dimension_numbers<[1], [0], [0], [1], [0, 0, 1, 1], [], []>} : vector<2x128xf32>, vector<128x10xf32>, vector<2x10xf32> -> vector<2x10xf32>
    %c0_9 = arith.constant 0 : index
    %c0_10 = arith.constant 0 : index
    %10 = vector.load %arg5[%c0_9, %c0_10] : memref<1x10xf32, #tpu.memory_space<vmem>>, vector<1x10xf32>
    %11 = vector.broadcast %10 : vector<1x10xf32> to vector<2x10xf32>
    %12 = arith.addf %9, %11 : vector<2x10xf32>
    %c0_11 = arith.constant 0 : index
    %c0_12 = arith.constant 0 : index
    %13 = vector.load %arg6[%c0_11, %c0_12] : memref<2x10xf32, #tpu.memory_space<vmem>>, vector<2x10xf32>
    tpu.vector_store %arg6[%c0_11, %c0_12], %12 {strides = array<i32>} : memref<2x10xf32, #tpu.memory_space<vmem>>, vector<2x10xf32>,
    return
  }
  func.func @transform_0(%arg0: i32) -> (i32, i32) {
    %c0_i32 = arith.constant 0 : i32
    %c0_i32_0 = arith.constant 0 : i32
    return %arg0, %c0_i32 : i32, i32
  }
  func.func @transform_1(%arg0: i32) -> (i32, i32) {
    %c0_i32 = arith.constant 0 : i32
    %c0_i32_0 = arith.constant 0 : i32
    %c0_i32_1 = arith.constant 0 : i32
    return %c0_i32, %c0_i32_0 : i32, i32
  }
  func.func @transform_2(%arg0: i32) -> (i32, i32) {
    %c0_i32 = arith.constant 0 : i32
    %c0_i32_0 = arith.constant 0 : i32
    %c0_i32_1 = arith.constant 0 : i32
    return %c0_i32, %c0_i32_0 : i32, i32
  }
  func.func @transform_3(%arg0: i32) -> (i32, i32) {
    %c0_i32 = arith.constant 0 : i32
    %c0_i32_0 = arith.constant 0 : i32
    %c0_i32_1 = arith.constant 0 : i32
    return %c0_i32, %c0_i32_0 : i32, i32
  }
  func.func @transform_4(%arg0: i32) -> (i32, i32) {
    %c0_i32 = arith.constant 0 : i32
    %c0_i32_0 = arith.constant 0 : i32
    %c0_i32_1 = arith.constant 0 : i32
    return %c0_i32, %c0_i32_0 : i32, i32
  }
  func.func @transform_5(%arg0: i32) -> (i32, i32) {
    %c0_i32 = arith.constant 0 : i32
    %c0_i32_0 = arith.constant 0 : i32
    return %arg0, %c0_i32 : i32, i32
  }
}

</mosaic_0001>

<bundles_post_ra>
// kernel: smaller_net_forward.3
= control target key start
LH: loop header
LB: loop body
LE: loop exit
PB: predicated region body
PF: predicated region fallthrough
CT: control target
= control target key end

     0   :  { %vm172_vm0 = vcmask 1040384   ;;  %vm63_vm1 = vcmask 203776   ;;  %vm2630_vm2 = vmmov 1   ;;  %vm1919_vm4 = vcmask 257024   ;;  %s3783_s4 = inlined_call_operand.vmem [shape: f32[25,32], index: 4, kind: input, shape index: {}]   ;;  %s3784_s0 = inlined_call_operand.vmem [shape: f32[288,25], index: 0, kind: input, shape index: {}]   ;;  %s3785_s1 = inlined_call_operand.vmem [shape: f32[288,25], index: 1, kind: input, shape index: {}]   ;;  %s3786_s2 = inlined_call_operand.vmem [shape: f32[288,25], index: 2, kind: input, shape index: {}]   ;;  %s3787_s3 = inlined_call_operand.vmem [shape: f32[288,25], index: 3, kind: input, shape index: {}]   ;;  %s3788_s5 = inlined_call_operand.vmem [shape: f32[1,32], index: 5, kind: input, shape index: {}]   ;;  %s3789_s6 = inlined_call_operand.vmem [shape: bf16[288,32], index: 6, kind: output, shape index: {}]  }
   0x1   :  { %v23_v0 = vld [vmem:[%s3783_s4] sm:$0xff]  ;;  %v24_v1 = vld [vmem:[%s3783_s4 + $0x8] sm:$0xff]  ;;  %v25_v2 = vld [vmem:[%s3783_s4 + $0x10] sm:$0xff] }
   0x2   :  { %v2589_v3 = vpack.c.bf16 %v24_v1, %v23_v0  ;;  %v26_v4 = vld [vmem:[%s3783_s4 + $0x18] sm:$0x1]  ;;  %v27_v5 = vld [vmem:[%s3784_s0] sm:$0xff]  ;;  %vm2681_vm3 = vmpackc.low %vm172_vm0, %vm2630_vm2 }
   0x3   :  { %v2593_v6 = vpack.c.bf16 %v26_v4, %v25_v2  ;;  %2349 = vmatprep.mubr.msk.f32.mxu0 %vm63_vm1, %v27_v5  ;;  %v421_v8 = vld [vmem:[%s3785_s1] sm:$0xff]  ;;  %v28_v9 = vld [vmem:[%s3784_s0 + $0x8] sm:$0xff]  ;;  %v29_v11 = vld [vmem:[%s3784_s0 + $0x10] sm:$0xff] }
   0x4   :  { %2590 = vmatprep.subr.bf16.mxu0 %v2589_v3  ;;  %2600 = vmatprep.subr.bf16.mxu1 %v2589_v3  ;;  %v422_v10 = vld [vmem:[%s3785_s1 + $0x8] sm:$0xff]  ;;  %v423_v12 = vld [vmem:[%s3785_s1 + $0x10] sm:$0xff]  ;;  %v30_v13 = vld [vmem:[%s3784_s0 + $0x18] sm:$0xff] }
   0x5   :  { %2592 = vmatpush3.bf16.msra.mxu0 %v2589_v3  ;;  %2602 = vmatpush3.bf16.msra.mxu1 %v2589_v3  ;;  %v424_v14 = vld [vmem:[%s3785_s1 + $0x18] sm:$0xff]  ;;  %v31_v15 = vld [vmem:[%s3784_s0 + $0x20] sm:$0xff]  ;;  %v32_v17 = vld [vmem:[%s3784_s0 + $0x28] sm:$0xff] }
   0x6   :  { %2595 = vmatprep.subr.msk.bf16.mxu0 %vm2681_vm3, %v2593_v6  ;;  %2605 = vmatprep.subr.msk.bf16.mxu1 %vm2681_vm3, %v2593_v6  ;;  %v425_v16 = vld [vmem:[%s3785_s1 + $0x20] sm:$0xff]  ;;  %v426_v18 = vld [vmem:[%s3785_s1 + $0x28] sm:$0xff]  ;;  %v33_v19 = vld [vmem:[%s3784_s0 + $0x30] sm:$0xff] }
   0x7   :  { %2411 = vmatprep.mubr.msk.f32.mxu1 %vm63_vm1, %v421_v8  ;;  %v427_v20 = vld [vmem:[%s3785_s1 + $0x30] sm:$0xff]  ;;  %v34_v21 = vld [vmem:[%s3784_s0 + $0x38] sm:$0xff]  ;;  %v35_v23 = vld [vmem:[%s3784_s0 + $0x40] sm:$0xff] }
   0x8   :  { %v428_v22 = vld [vmem:[%s3785_s1 + $0x38] sm:$0xff]  ;;  %v429_v24 = vld [vmem:[%s3785_s1 + $0x40] sm:$0xff]  ;;  %v36_v25 = vld [vmem:[%s3784_s0 + $0x48] sm:$0xff] }
   0x9   :  { %2598 = vmatpush3.bf16.msk.msra.mxu0 %vm2681_vm3, %v2593_v6  ;;  %2608 = vmatpush3.bf16.msk.msra.mxu1 %vm2681_vm3, %v2593_v6  ;;  %v430_v26 = vld [vmem:[%s3785_s1 + $0x48] sm:$0xff]  ;;  %v37_v27 = vld [vmem:[%s3784_s0 + $0x50] sm:$0xff]  ;;  %v38_v29 = vld [vmem:[%s3784_s0 + $0x58] sm:$0xff] }
   0xa   :  { %2610 = vmatprep.subr.bf16.mxu0 %v2589_v3  ;;  %2620 = vmatprep.subr.bf16.mxu1 %v2589_v3  ;;  %v431_v28 = vld [vmem:[%s3785_s1 + $0x50] sm:$0xff]  ;;  %v432_v30 = vld [vmem:[%s3785_s1 + $0x58] sm:$0xff]  ;;  %v39_v31 = vld [vmem:[%s3784_s0 + $0x60] sm:$0xff] }
   0xb   :  { %v433_v32 = vld [vmem:[%s3785_s1 + $0x60] sm:$0xff]  ;;  %v40_v33 = vld [vmem:[%s3784_s0 + $0x68] sm:$0xff]  ;;  %v41_v35 = vld [vmem:[%s3784_s0 + $0x70] sm:$0xff] }
   0xc   :  { %2350 = vmatmul.mubr.msk.f32.vlgmr.msra.gmra.mrb[0].mxu0 %vm63_vm1, %v28_v9  ;;  %2412 = vmatmul.mubr.msk.f32.vlgmr.msra.gmra.mrb[0].mxu1 %vm63_vm1, %v422_v10  ;;  %v434_v34 = vld [vmem:[%s3785_s1 + $0x68] sm:$0xff]  ;;  %v435_v36 = vld [vmem:[%s3785_s1 + $0x70] sm:$0xff]  ;;  %v42_v37 = vld [vmem:[%s3784_s0 + $0x78] sm:$0xff] }
   0xd   :  { %2612 = vmatpush3.bf16.msra.mxu0 %v2589_v3  ;;  %2352 = vmatprep.mubr.msk.f32.mxu0 %vm63_vm1, %v29_v11  ;;  %v436_v38 = vld [vmem:[%s3785_s1 + $0x78] sm:$0xff]  ;;  %v43_v39 = vld [vmem:[%s3784_s0 + $0x80] sm:$0xff]  ;;  %v44_v41 = vld [vmem:[%s3784_s0 + $0x88] sm:$0xff] }
   0xe   :  { %2414 = vmatprep.mubr.msk.f32.mxu1 %vm63_vm1, %v423_v12  ;;  %2622 = vmatpush3.bf16.msra.mxu1 %v2589_v3  ;;  %v437_v40 = vld [vmem:[%s3785_s1 + $0x80] sm:$0xff]  ;;  %v438_v42 = vld [vmem:[%s3785_s1 + $0x88] sm:$0xff]  ;;  %v45_v43 = vld [vmem:[%s3784_s0 + $0x90] sm:$0xff] }
   0xf   :  { %2615 = vmatprep.subr.msk.bf16.mxu0 %vm2681_vm3, %v2593_v6  ;;  %2625 = vmatprep.subr.msk.bf16.mxu1 %vm2681_vm3, %v2593_v6  ;;  %v439_v44 = vld [vmem:[%s3785_s1 + $0x90] sm:$0xff]  ;;  %v46_v45 = vld [vmem:[%s3784_s0 + $0x98] sm:$0xff]  ;;  %v47_v47 = vld [vmem:[%s3784_s0 + $0xa0] sm:$0xff] }
  0x10   :  { %2353 = vmatmul.mubr.msk.f32.gmra.mrb[2].mxu0 %vm63_vm1, %v30_v13  ;;  %2415 = vmatmul.mubr.msk.f32.gmra.mrb[2].mxu1 %vm63_vm1, %v424_v14  ;;  %v440_v46 = vld [vmem:[%s3785_s1 + $0x98] sm:$0xff]  ;;  %v441_v48 = vld [vmem:[%s3785_s1 + $0xa0] sm:$0xff]  ;;  %v48_v49 = vld [vmem:[%s3784_s0 + $0xa8] sm:$0xff] }
  0x11   :  { %2355 = vmatprep.mubr.msk.f32.mxu0 %vm63_vm1, %v31_v15  ;;  %2417 = vmatprep.mubr.msk.f32.mxu1 %vm63_vm1, %v425_v16  ;;  %v442_v50 = vld [vmem:[%s3785_s1 + $0xa8] sm:$0xff]  ;;  %v49_v51 = vld [vmem:[%s3784_s0 + $0xb0] sm:$0xff]  ;;  %v50_v53 = vld [vmem:[%s3784_s0 + $0xb8] sm:$0xff] }
  0x12   :  { %2618 = vmatpush3.bf16.msk.msra.mxu0 %vm2681_vm3, %v2593_v6  ;;  %2628 = vmatpush3.bf16.msk.msra.mxu1 %vm2681_vm3, %v2593_v6  ;;  %v443_v52 = vld [vmem:[%s3785_s1 + $0xb0] sm:$0xff]  ;;  %v444_v54 = vld [vmem:[%s3785_s1 + $0xb8] sm:$0xff]  ;;  %v51_v55 = vld [vmem:[%s3784_s0 + $0xc0] sm:$0xff] }
  0x13   :  { %v445_v56 = vld [vmem:[%s3785_s1 + $0xc0] sm:$0xff]  ;;  %v52_v57 = vld [vmem:[%s3784_s0 + $0xc8] sm:$0xff]  ;;  %v53_v59 = vld [vmem:[%s3784_s0 + $0xd0] sm:$0xff] }
  0x14   :  { %2356 = vmatmul.mubr.msk.f32.gmra.mrb[4].mxu0 %vm63_vm1, %v32_v17  ;;  %2418 = vmatmul.mubr.msk.f32.gmra.mrb[4].mxu1 %vm63_vm1, %v426_v18  ;;  %v446_v58 = vld [vmem:[%s3785_s1 + $0xc8] sm:$0xff]  ;;  %v447_v60 = vld [vmem:[%s3785_s1 + $0xd0] sm:$0xff]  ;;  %v54_v61 = vld [vmem:[%s3784_s0 + $0xd8] sm:$0xff] }
  0x15   :  { %2358 = vmatprep.mubr.msk.f32.mxu0 %vm63_vm1, %v33_v19  ;;  %2420 = vmatprep.mubr.msk.f32.mxu1 %vm63_vm1, %v427_v20  ;;  %v448_v62 = vld [vmem:[%s3785_s1 + $0xd8] sm:$0xff]  ;;  %v55_v63 = vld [vmem:[%s3784_s0 + $0xe0] sm:$0xff]  ;;  %v56_v1 = vld [vmem:[%s3784_s0 + $0xe8] sm:$0xff] }
  0x16   :  { %v449_v0 = vld [vmem:[%s3785_s1 + $0xe0] sm:$0xff]  ;;  %v450_v2 = vld [vmem:[%s3785_s1 + $0xe8] sm:$0xff]  ;;  %v57_v3 = vld [vmem:[%s3784_s0 + $0xf0] sm:$0xff] }
  0x17   :  { %v451_v4 = vld [vmem:[%s3785_s1 + $0xf0] sm:$0xff]  ;;  %v58_v5 = vld [vmem:[%s3784_s0 + $0xf8] sm:$0xff]  ;;  %v59_v7 = vld [vmem:[%s3784_s0 + $0x100] sm:$0xff] }
  0x18   :  { %2359 = vmatmul.mubr.msk.f32.gmra.mrb[6].mxu0 %vm63_vm1, %v34_v21  ;;  %2421 = vmatmul.mubr.msk.f32.gmra.mrb[6].mxu1 %vm63_vm1, %v428_v22  ;;  %v452_v6 = vld [vmem:[%s3785_s1 + $0xf8] sm:$0xff]  ;;  %v453_v8 = vld [vmem:[%s3785_s1 + $0x100] sm:$0xff]  ;;  %v60_v9 = vld [vmem:[%s3784_s0 + $0x108] sm:$0xff] }
  0x19   :  { %2361 = vmatprep.mubr.msk.f32.mxu0 %vm63_vm1, %v35_v23  ;;  %2423 = vmatprep.mubr.msk.f32.mxu1 %vm63_vm1, %v429_v24  ;;  %v454_v10 = vld [vmem:[%s3785_s1 + $0x108] sm:$0xff]  ;;  %v61_v11 = vld [vmem:[%s3784_s0 + $0x110] sm:$0xff]  ;;  %v62_v13 = vld [vmem:[%s3784_s0 + $0x118] sm:$0xff] }
  0x1a   :  { %v455_v12 = vld [vmem:[%s3785_s1 + $0x110] sm:$0xff]  ;;  %v456_v14 = vld [vmem:[%s3785_s1 + $0x118] sm:$0xff]  ;;  %v846_v15 = vld [vmem:[%s3786_s2] sm:$0xff] }
  0x1b   :  { %v1271_v16 = vld [vmem:[%s3787_s3] sm:$0xff]  ;;  %v847_v17 = vld [vmem:[%s3786_s2 + $0x8] sm:$0xff]  ;;  %v848_v19 = vld [vmem:[%s3786_s2 + $0x10] sm:$0xff] }
  0x1c   :  { %2362 = vmatmul.mubr.msk.f32.gmra.mrb[8].mxu0 %vm63_vm1, %v36_v25  ;;  %2424 = vmatmul.mubr.msk.f32.gmra.mrb[8].mxu1 %vm63_vm1, %v430_v26  ;;  %v1272_v18 = vld [vmem:[%s3787_s3 + $0x8] sm:$0xff]  ;;  %v1273_v20 = vld [vmem:[%s3787_s3 + $0x10] sm:$0xff]  ;;  %v849_v21 = vld [vmem:[%s3786_s2 + $0x18] sm:$0xff] }
  0x1d   :  { %2364 = vmatprep.mubr.msk.f32.mxu0 %vm63_vm1, %v37_v27  ;;  %2426 = vmatprep.mubr.msk.f32.mxu1 %vm63_vm1, %v431_v28  ;;  %v1274_v22 = vld [vmem:[%s3787_s3 + $0x18] sm:$0xff]  ;;  %v850_v23 = vld [vmem:[%s3786_s2 + $0x20] sm:$0xff]  ;;  %v851_v25 = vld [vmem:[%s3786_s2 + $0x28] sm:$0xff] }
  0x1e   :  { %v1275_v24 = vld [vmem:[%s3787_s3 + $0x20] sm:$0xff]  ;;  %v1276_v26 = vld [vmem:[%s3787_s3 + $0x28] sm:$0xff]  ;;  %v852_v27 = vld [vmem:[%s3786_s2 + $0x30] sm:$0xff] }
  0x1f   :  { %v1277_v28 = vld [vmem:[%s3787_s3 + $0x30] sm:$0xff] }
  0x20   :  { %2365 = vmatmul.mubr.msk.f32.gmra.mrb[10].mxu0 %vm63_vm1, %v38_v29  ;;  %2427 = vmatmul.mubr.msk.f32.gmra.mrb[10].mxu1 %vm63_vm1, %v432_v30  ;;  %v853_v29 = vld [vmem:[%s3786_s2 + $0x38] sm:$0xff] }
  0x21   :  { %2367 = vmatprep.mubr.msk.f32.mxu0 %vm63_vm1, %v39_v31  ;;  %2429 = vmatprep.mubr.msk.f32.mxu1 %vm63_vm1, %v433_v32  ;;  %v1278_v30 = vld [vmem:[%s3787_s3 + $0x38] sm:$0xff]  ;;  %v854_v31 = vld [vmem:[%s3786_s2 + $0x40] sm:$0xff] }
  0x22   :  { %v1279_v32 = vld [vmem:[%s3787_s3 + $0x40] sm:$0xff] }
  0x24   :  { %2368 = vmatmul.mubr.msk.f32.gmra.mrb[12].mxu0 %vm63_vm1, %v40_v33  ;;  %2430 = vmatmul.mubr.msk.f32.gmra.mrb[12].mxu1 %vm63_vm1, %v434_v34  ;;  %v855_v33 = vld [vmem:[%s3786_s2 + $0x48] sm:$0xff] }
  0x25   :  { %2370 = vmatprep.mubr.msk.f32.mxu0 %vm63_vm1, %v41_v35  ;;  %2432 = vmatprep.mubr.msk.f32.mxu1 %vm63_vm1, %v435_v36  ;;  %v1280_v34 = vld [vmem:[%s3787_s3 + $0x48] sm:$0xff]  ;;  %v856_v35 = vld [vmem:[%s3786_s2 + $0x50] sm:$0xff] }
  0x26   :  { %v1281_v36 = vld [vmem:[%s3787_s3 + $0x50] sm:$0xff] }
  0x28   :  { %2371 = vmatmul.mubr.msk.f32.gmra.mrb[14].mxu0 %vm63_vm1, %v42_v37  ;;  %2433 = vmatmul.mubr.msk.f32.gmra.mrb[14].mxu1 %vm63_vm1, %v436_v38  ;;  %v857_v37 = vld [vmem:[%s3786_s2 + $0x58] sm:$0xff] }
  0x29   :  { %2373 = vmatprep.mubr.msk.f32.mxu0 %vm63_vm1, %v43_v39  ;;  %2435 = vmatprep.mubr.msk.f32.mxu1 %vm63_vm1, %v437_v40  ;;  %v1282_v38 = vld [vmem:[%s3787_s3 + $0x58] sm:$0xff]  ;;  %v858_v39 = vld [vmem:[%s3786_s2 + $0x60] sm:$0xff] }
  0x2a   :  { %v1283_v40 = vld [vmem:[%s3787_s3 + $0x60] sm:$0xff] }
  0x2c   :  { %2374 = vmatmul.mubr.msk.f32.gmra.mrb[16].mxu0 %vm63_vm1, %v44_v41  ;;  %2436 = vmatmul.mubr.msk.f32.gmra.mrb[16].mxu1 %vm63_vm1, %v438_v42  ;;  %v859_v41 = vld [vmem:[%s3786_s2 + $0x68] sm:$0xff] }
  0x2d   :  { %2376 = vmatprep.mubr.msk.f32.mxu0 %vm63_vm1, %v45_v43  ;;  %2438 = vmatprep.mubr.msk.f32.mxu1 %vm63_vm1, %v439_v44  ;;  %v1284_v42 = vld [vmem:[%s3787_s3 + $0x68] sm:$0xff]  ;;  %v860_v43 = vld [vmem:[%s3786_s2 + $0x70] sm:$0xff] }
  0x2e   :  { %v1285_v44 = vld [vmem:[%s3787_s3 + $0x70] sm:$0xff] }
  0x30   :  { %2377 = vmatmul.mubr.msk.f32.gmra.mrb[18].mxu0 %vm63_vm1, %v46_v45  ;;  %2439 = vmatmul.mubr.msk.f32.gmra.mrb[18].mxu1 %vm63_vm1, %v440_v46  ;;  %v861_v45 = vld [vmem:[%s3786_s2 + $0x78] sm:$0xff] }
  0x31   :  { %2379 = vmatprep.mubr.msk.f32.mxu0 %vm63_vm1, %v47_v47  ;;  %2441 = vmatprep.mubr.msk.f32.mxu1 %vm63_vm1, %v441_v48  ;;  %v1286_v46 = vld [vmem:[%s3787_s3 + $0x78] sm:$0xff]  ;;  %v862_v47 = vld [vmem:[%s3786_s2 + $0x80] sm:$0xff] }
  0x32   :  { %v1287_v48 = vld [vmem:[%s3787_s3 + $0x80] sm:$0xff] }
  0x34   :  { %2380 = vmatmul.mubr.msk.f32.gmra.mrb[20].mxu0 %vm63_vm1, %v48_v49  ;;  %2442 = vmatmul.mubr.msk.f32.gmra.mrb[20].mxu1 %vm63_vm1, %v442_v50  ;;  %v863_v49 = vld [vmem:[%s3786_s2 + $0x88] sm:$0xff] }
  0x35   :  { %2382 = vmatprep.mubr.msk.f32.mxu0 %vm63_vm1, %v49_v51  ;;  %2444 = vmatprep.mubr.msk.f32.mxu1 %vm63_vm1, %v443_v52  ;;  %v1288_v50 = vld [vmem:[%s3787_s3 + $0x88] sm:$0xff]  ;;  %v864_v51 = vld [vmem:[%s3786_s2 + $0x90] sm:$0xff] }
  0x36   :  { %v1289_v52 = vld [vmem:[%s3787_s3 + $0x90] sm:$0xff] }
  0x38   :  { %2383 = vmatmul.mubr.msk.f32.gmra.mrb[22].mxu0 %vm63_vm1, %v50_v53  ;;  %2445 = vmatmul.mubr.msk.f32.gmra.mrb[22].mxu1 %vm63_vm1, %v444_v54  ;;  %v865_v53 = vld [vmem:[%s3786_s2 + $0x98] sm:$0xff] }
  0x39   :  { %2385 = vmatprep.mubr.msk.f32.mxu0 %vm63_vm1, %v51_v55  ;;  %2447 = vmatprep.mubr.msk.f32.mxu1 %vm63_vm1, %v445_v56  ;;  %v1290_v54 = vld [vmem:[%s3787_s3 + $0x98] sm:$0xff]  ;;  %v866_v55 = vld [vmem:[%s3786_s2 + $0xa0] sm:$0xff] }
  0x3a   :  { %v1291_v56 = vld [vmem:[%s3787_s3 + $0xa0] sm:$0xff] }
  0x3c   :  { %2386 = vmatmul.mubr.msk.f32.gmra.mrb[24].mxu0 %vm63_vm1, %v52_v57  ;;  %2448 = vmatmul.mubr.msk.f32.gmra.mrb[24].mxu1 %vm63_vm1, %v446_v58  ;;  %v867_v57 = vld [vmem:[%s3786_s2 + $0xa8] sm:$0xff] }
  0x3d   :  { %2388 = vmatprep.mubr.msk.f32.mxu0 %vm63_vm1, %v53_v59  ;;  %2450 = vmatprep.mubr.msk.f32.mxu1 %vm63_vm1, %v447_v60  ;;  %v1292_v58 = vld [vmem:[%s3787_s3 + $0xa8] sm:$0xff]  ;;  %v868_v59 = vld [vmem:[%s3786_s2 + $0xb0] sm:$0xff] }
  0x3e   :  { %v1293_v60 = vld [vmem:[%s3787_s3 + $0xb0] sm:$0xff] }
  0x40   :  { %2389 = vmatmul.mubr.msk.f32.gmra.mrb[26].mxu0 %vm63_vm1, %v54_v61  ;;  %2451 = vmatmul.mubr.msk.f32.gmra.mrb[26].mxu1 %vm63_vm1, %v448_v62  ;;  %v869_v61 = vld [vmem:[%s3786_s2 + $0xb8] sm:$0xff] }
  0x41   :  { %2391 = vmatprep.mubr.msk.f32.mxu0 %vm63_vm1, %v55_v63  ;;  %2453 = vmatprep.mubr.msk.f32.mxu1 %vm63_vm1, %v449_v0  ;;  %v1294_v62 = vld [vmem:[%s3787_s3 + $0xb8] sm:$0xff]  ;;  %v870_v63 = vld [vmem:[%s3786_s2 + $0xc0] sm:$0xff] }
  0x42   :  { %v1295_v0 = vld [vmem:[%s3787_s3 + $0xc0] sm:$0xff] }
  0x44   :  { %2392 = vmatmul.mubr.msk.f32.gmra.mrb[28].mxu0 %vm63_vm1, %v56_v1  ;;  %2454 = vmatmul.mubr.msk.f32.gmra.mrb[28].mxu1 %vm63_vm1, %v450_v2  ;;  %v871_v1 = vld [vmem:[%s3786_s2 + $0xc8] sm:$0xff] }
  0x45   :  { %2394 = vmatprep.mubr.msk.f32.mxu0 %vm63_vm1, %v57_v3  ;;  %2456 = vmatprep.mubr.msk.f32.mxu1 %vm63_vm1, %v451_v4  ;;  %v1296_v2 = vld [vmem:[%s3787_s3 + $0xc8] sm:$0xff]  ;;  %v872_v3 = vld [vmem:[%s3786_s2 + $0xd0] sm:$0xff] }
  0x46   :  { %v1297_v4 = vld [vmem:[%s3787_s3 + $0xd0] sm:$0xff] }
  0x48   :  { %2395 = vmatmul.mubr.msk.f32.gmra.mrb[30].mxu0 %vm63_vm1, %v58_v5  ;;  %2457 = vmatmul.mubr.msk.f32.gmra.mrb[30].mxu1 %vm63_vm1, %v452_v6  ;;  %v873_v5 = vld [vmem:[%s3786_s2 + $0xd8] sm:$0xff] }
  0x49   :  { %2397 = vmatprep.mubr.msk.f32.mxu0 %vm63_vm1, %v59_v7  ;;  %2459 = vmatprep.mubr.msk.f32.mxu1 %vm63_vm1, %v453_v8  ;;  %v1298_v6 = vld [vmem:[%s3787_s3 + $0xd8] sm:$0xff]  ;;  %v874_v7 = vld [vmem:[%s3786_s2 + $0xe0] sm:$0xff] }
  0x4a   :  { %v1299_v8 = vld [vmem:[%s3787_s3 + $0xe0] sm:$0xff] }
  0x4c   :  { %2398 = vmatmul.mubr.msk.f32.gmra.mrb[32].mxu0 %vm63_vm1, %v60_v9  ;;  %2460 = vmatmul.mubr.msk.f32.gmra.mrb[32].mxu1 %vm63_vm1, %v454_v10  ;;  %v875_v9 = vld [vmem:[%s3786_s2 + $0xe8] sm:$0xff] }
  0x4d   :  { %2400 = vmatprep.mubr.msk.f32.mxu0 %vm63_vm1, %v61_v11  ;;  %2462 = vmatprep.mubr.msk.f32.mxu1 %vm63_vm1, %v455_v12  ;;  %v1300_v10 = vld [vmem:[%s3787_s3 + $0xe8] sm:$0xff]  ;;  %v876_v11 = vld [vmem:[%s3786_s2 + $0xf0] sm:$0xff] }
  0x4e   :  { %v1301_v12 = vld [vmem:[%s3787_s3 + $0xf0] sm:$0xff] }
  0x50   :  { %2401 = vmatmul.mubr.msk.f32.gmra.mrb[34].mxu0 %vm63_vm1, %v62_v13  ;;  %2463 = vmatmul.mubr.msk.f32.gmra.mrb[34].mxu1 %vm63_vm1, %v456_v14  ;;  %v877_v13 = vld [vmem:[%s3786_s2 + $0xf8] sm:$0xff] }
  0x51   :  { %2473 = vmatprep.mubr.msk.f32.mxu0 %vm63_vm1, %v846_v15  ;;  %2535 = vmatprep.mubr.msk.f32.mxu1 %vm63_vm1, %v1271_v16  ;;  %v1302_v14 = vld [vmem:[%s3787_s3 + $0xf8] sm:$0xff]  ;;  %v878_v15 = vld [vmem:[%s3786_s2 + $0x100] sm:$0xff] }
  0x52   :  { %v1303_v16 = vld [vmem:[%s3787_s3 + $0x100] sm:$0xff] }
  0x54   :  { %2474 = vmatmul.mubr.msk.f32.vlgmr.msra.gmra.mrb[36].mxu0 %vm63_vm1, %v847_v17  ;;  %2536 = vmatmul.mubr.msk.f32.vlgmr.msra.gmra.mrb[36].mxu1 %vm63_vm1, %v1272_v18  ;;  %v879_v17 = vld [vmem:[%s3786_s2 + $0x108] sm:$0xff] }
  0x55   :  { %2476 = vmatprep.mubr.msk.f32.mxu0 %vm63_vm1, %v848_v19  ;;  %2538 = vmatprep.mubr.msk.f32.mxu1 %vm63_vm1, %v1273_v20  ;;  %v1304_v18 = vld [vmem:[%s3787_s3 + $0x108] sm:$0xff]  ;;  %v880_v19 = vld [vmem:[%s3786_s2 + $0x110] sm:$0xff] }
  0x56   :  { %v1305_v20 = vld [vmem:[%s3787_s3 + $0x110] sm:$0xff] }
  0x58   :  { %2477 = vmatmul.mubr.msk.f32.gmra.mrb[38].mxu0 %vm63_vm1, %v849_v21  ;;  %2539 = vmatmul.mubr.msk.f32.gmra.mrb[38].mxu1 %vm63_vm1, %v1274_v22  ;;  %v881_v21 = vld [vmem:[%s3786_s2 + $0x118] sm:$0xff] }
  0x59   :  { %2479 = vmatprep.mubr.msk.f32.mxu0 %vm63_vm1, %v850_v23  ;;  %2541 = vmatprep.mubr.msk.f32.mxu1 %vm63_vm1, %v1275_v24  ;;  %v1306_v22 = vld [vmem:[%s3787_s3 + $0x118] sm:$0xff] }
  0x5c   :  { %2480 = vmatmul.mubr.msk.f32.gmra.mrb[40].mxu0 %vm63_vm1, %v851_v25  ;;  %2542 = vmatmul.mubr.msk.f32.gmra.mrb[40].mxu1 %vm63_vm1, %v1276_v26 }
  0x5d   :  { %2482 = vmatprep.mubr.msk.f32.mxu0 %vm63_vm1, %v852_v27  ;;  %2544 = vmatprep.mubr.msk.f32.mxu1 %vm63_vm1, %v1277_v28 }
  0x60   :  { %2483 = vmatmul.mubr.msk.f32.gmra.mrb[42].mxu0 %vm63_vm1, %v853_v29  ;;  %2545 = vmatmul.mubr.msk.f32.gmra.mrb[42].mxu1 %vm63_vm1, %v1278_v30 }
  0x61   :  { %2485 = vmatprep.mubr.msk.f32.mxu0 %vm63_vm1, %v854_v31  ;;  %2547 = vmatprep.mubr.msk.f32.mxu1 %vm63_vm1, %v1279_v32 }
  0x64   :  { %2486 = vmatmul.mubr.msk.f32.gmra.mrb[44].mxu0 %vm63_vm1, %v855_v33  ;;  %2548 = vmatmul.mubr.msk.f32.gmra.mrb[44].mxu1 %vm63_vm1, %v1280_v34 }
  0x65   :  { %2488 = vmatprep.mubr.msk.f32.mxu0 %vm63_vm1, %v856_v35  ;;  %2550 = vmatprep.mubr.msk.f32.mxu1 %vm63_vm1, %v1281_v36 }
  0x68   :  { %2489 = vmatmul.mubr.msk.f32.gmra.mrb[46].mxu0 %vm63_vm1, %v857_v37  ;;  %2551 = vmatmul.mubr.msk.f32.gmra.mrb[46].mxu1 %vm63_vm1, %v1282_v38 }
  0x69   :  { %2491 = vmatprep.mubr.msk.f32.mxu0 %vm63_vm1, %v858_v39  ;;  %2553 = vmatprep.mubr.msk.f32.mxu1 %vm63_vm1, %v1283_v40 }
  0x6c   :  { %2492 = vmatmul.mubr.msk.f32.gmra.mrb[48].mxu0 %vm63_vm1, %v859_v41  ;;  %2554 = vmatmul.mubr.msk.f32.gmra.mrb[48].mxu1 %vm63_vm1, %v1284_v42 }
  0x6d   :  { %2494 = vmatprep.mubr.msk.f32.mxu0 %vm63_vm1, %v860_v43  ;;  %2556 = vmatprep.mubr.msk.f32.mxu1 %vm63_vm1, %v1285_v44 }
  0x70   :  { %2495 = vmatmul.mubr.msk.f32.gmra.mrb[50].mxu0 %vm63_vm1, %v861_v45  ;;  %2557 = vmatmul.mubr.msk.f32.gmra.mrb[50].mxu1 %vm63_vm1, %v1286_v46 }
  0x71   :  { %2497 = vmatprep.mubr.msk.f32.mxu0 %vm63_vm1, %v862_v47  ;;  %2559 = vmatprep.mubr.msk.f32.mxu1 %vm63_vm1, %v1287_v48 }
  0x74   :  { %2498 = vmatmul.mubr.msk.f32.gmra.mrb[52].mxu0 %vm63_vm1, %v863_v49  ;;  %2560 = vmatmul.mubr.msk.f32.gmra.mrb[52].mxu1 %vm63_vm1, %v1288_v50 }
  0x75   :  { %2500 = vmatprep.mubr.msk.f32.mxu0 %vm63_vm1, %v864_v51  ;;  %2562 = vmatprep.mubr.msk.f32.mxu1 %vm63_vm1, %v1289_v52 }
  0x78   :  { %2501 = vmatmul.mubr.msk.f32.gmra.mrb[54].mxu0 %vm63_vm1, %v865_v53  ;;  %2563 = vmatmul.mubr.msk.f32.gmra.mrb[54].mxu1 %vm63_vm1, %v1290_v54 }
  0x79   :  { %2503 = vmatprep.mubr.msk.f32.mxu0 %vm63_vm1, %v866_v55  ;;  %2565 = vmatprep.mubr.msk.f32.mxu1 %vm63_vm1, %v1291_v56 }
  0x7c   :  { %2504 = vmatmul.mubr.msk.f32.gmra.mrb[56].mxu0 %vm63_vm1, %v867_v57  ;;  %2566 = vmatmul.mubr.msk.f32.gmra.mrb[56].mxu1 %vm63_vm1, %v1292_v58 }
  0x7d   :  { %2506 = vmatprep.mubr.msk.f32.mxu0 %vm63_vm1, %v868_v59  ;;  %2568 = vmatprep.mubr.msk.f32.mxu1 %vm63_vm1, %v1293_v60 }
  0x80   :  { %2507 = vmatmul.mubr.msk.f32.gmra.mrb[58].mxu0 %vm63_vm1, %v869_v61  ;;  %2569 = vmatmul.mubr.msk.f32.gmra.mrb[58].mxu1 %vm63_vm1, %v1294_v62 }
  0x81   :  { %2509 = vmatprep.mubr.msk.f32.mxu0 %vm63_vm1, %v870_v63  ;;  %2571 = vmatprep.mubr.msk.f32.mxu1 %vm63_vm1, %v1295_v0 }
  0x84   :  { %2510 = vmatmul.mubr.msk.f32.gmra.mrb[60].mxu0 %vm63_vm1, %v871_v1  ;;  %2572 = vmatmul.mubr.msk.f32.gmra.mrb[60].mxu1 %vm63_vm1, %v1296_v2 }
  0x85   :  { %2512 = vmatprep.mubr.msk.f32.mxu0 %vm63_vm1, %v872_v3  ;;  %2574 = vmatprep.mubr.msk.f32.mxu1 %vm63_vm1, %v1297_v4 }
  0x88   :  { %2513 = vmatmul.mubr.msk.f32.gmra.mrb[62].mxu0 %vm63_vm1, %v873_v5  ;;  %2575 = vmatmul.mubr.msk.f32.gmra.mrb[62].mxu1 %vm63_vm1, %v1298_v6 }
  0x89   :  { %2515 = vmatprep.mubr.msk.f32.mxu0 %vm63_vm1, %v874_v7  ;;  %2577 = vmatprep.mubr.msk.f32.mxu1 %vm63_vm1, %v1299_v8 }
  0x8c   :  { %2516 = vmatmul.mubr.msk.f32.gmra.mrb[64].mxu0 %vm63_vm1, %v875_v9  ;;  %2578 = vmatmul.mubr.msk.f32.gmra.mrb[64].mxu1 %vm63_vm1, %v1300_v10 }
  0x8d   :  { %2518 = vmatprep.mubr.msk.f32.mxu0 %vm63_vm1, %v876_v11  ;;  %2580 = vmatprep.mubr.msk.f32.mxu1 %vm63_vm1, %v1301_v12 }
  0x90   :  { %2519 = vmatmul.mubr.msk.f32.gmra.mrb[66].mxu0 %vm63_vm1, %v877_v13  ;;  %2581 = vmatmul.mubr.msk.f32.gmra.mrb[66].mxu1 %vm63_vm1, %v1302_v14 }
  0x91   :  { %2521 = vmatprep.mubr.msk.f32.mxu0 %vm63_vm1, %v878_v15  ;;  %2583 = vmatprep.mubr.msk.f32.mxu1 %vm63_vm1, %v1303_v16 }
  0x94   :  { %2522 = vmatmul.mubr.msk.f32.gmra.mrb[68].mxu0 %vm63_vm1, %v879_v17  ;;  %2584 = vmatmul.mubr.msk.f32.gmra.mrb[68].mxu1 %vm63_vm1, %v1304_v18  ;;  %v3499_v18 = vld [vmem:[%s3788_s5] ss:$0 sm:$0xff] }
  0x95   :  { %2524 = vmatprep.mubr.msk.f32.mxu0 %vm63_vm1, %v880_v19  ;;  %2586 = vmatprep.mubr.msk.f32.mxu1 %vm63_vm1, %v1305_v20 }
  0x98   :  { %2525 = vmatmul.mubr.msk.f32.gmra.mrb[70].mxu0 %vm63_vm1, %v881_v21  ;;  %2587 = vmatmul.mubr.msk.f32.gmra.mrb[70].mxu1 %vm63_vm1, %v1306_v22 }
  0xdf   :  { %v3274_v23 = vpop.f32.mrb[0].mxu0  ;;  %v3276_v24 = vpop.f32.mrb[0].mxu1 }
  0xe0   :  { %v3280_v26 = vpop.f32.mrb[1].mxu0  ;;  %v3282_v27 = vpop.f32.mrb[1].mxu1 }
  0xe3   :  { %v3286_v29 = vpop.f32.mrb[2].mxu0  ;;  %v3288_v30 = vpop.f32.mrb[2].mxu1 }
  0xe4   :  { %v3292_v32 = vpop.f32.mrb[3].mxu0  ;;  %v3294_v33 = vpop.f32.mrb[3].mxu1 }
  0xe7   :  { %v3298_v35 = vpop.f32.mrb[4].mxu0  ;;  %v3300_v36 = vpop.f32.mrb[4].mxu1 }
  0xe8   :  { %v3304_v38 = vpop.f32.mrb[5].mxu0  ;;  %v3306_v39 = vpop.f32.mrb[5].mxu1 }
  0xeb   :  { %v3310_v41 = vpop.f32.mrb[6].mxu0  ;;  %v3312_v42 = vpop.f32.mrb[6].mxu1 }
  0xec   :  { %v3316_v44 = vpop.f32.mrb[7].mxu0  ;;  %v3318_v45 = vpop.f32.mrb[7].mxu1 }
  0xef   :  { %v3322_v47 = vpop.f32.mrb[8].mxu0  ;;  %v3324_v48 = vpop.f32.mrb[8].mxu1 }
  0xf0   :  { %v3328_v50 = vpop.f32.mrb[9].mxu0  ;;  %v3330_v51 = vpop.f32.mrb[9].mxu1 }
  0xf3   :  { %v3334_v53 = vpop.f32.mrb[10].mxu0  ;;  %v3336_v54 = vpop.f32.mrb[10].mxu1 }
  0xf4   :  { %v3340_v56 = vpop.f32.mrb[11].mxu0  ;;  %v3342_v57 = vpop.f32.mrb[11].mxu1 }
  0xf7   :  { %v3346_v59 = vpop.f32.mrb[12].mxu0  ;;  %v3348_v60 = vpop.f32.mrb[12].mxu1 }
  0xf8   :  { %v3352_v62 = vpop.f32.mrb[13].mxu0  ;;  %v3354_v63 = vpop.f32.mrb[13].mxu1 }
  0xfb   :  { %v3358_v1 = vpop.f32.mrb[14].mxu0  ;;  %v3360_v2 = vpop.f32.mrb[14].mxu1 }
  0xfc   :  { %v3364_v4 = vpop.f32.mrb[15].mxu0  ;;  %v3366_v5 = vpop.f32.mrb[15].mxu1 }
  0xff   :  { %v3370_v7 = vpop.f32.mrb[16].mxu0  ;;  %v3372_v8 = vpop.f32.mrb[16].mxu1 }
 0x100   :  { %v3376_v10 = vpop.f32.mrb[17].mxu0  ;;  %v3378_v11 = vpop.f32.mrb[17].mxu1 }
 0x103   :  { %v3382_v13 = vpop.f32.mrb[18].mxu0  ;;  %v3384_v14 = vpop.f32.mrb[18].mxu1 }
 0x104   :  { %v3388_v16 = vpop.f32.mrb[19].mxu0  ;;  %v3390_v17 = vpop.f32.mrb[19].mxu1 }
 0x107   :  { %v3394_v19 = vpop.f32.mrb[20].mxu0  ;;  %v3396_v20 = vpop.f32.mrb[20].mxu1 }
 0x108   :  { %v3400_v22 = vpop.f32.mrb[21].mxu0  ;;  %v3402_v12 = vpop.f32.mrb[21].mxu1 }
 0x10b   :  { %v3406_v9 = vpop.f32.mrb[22].mxu0  ;;  %v3408_v6 = vpop.f32.mrb[22].mxu1 }
 0x10c   :  { %v3412_v3 = vpop.f32.mrb[23].mxu0  ;;  %v3414_v0 = vpop.f32.mrb[23].mxu1 }
 0x10f   :  { %v3418_v61 = vpop.f32.mrb[24].mxu0  ;;  %v3420_v58 = vpop.f32.mrb[24].mxu1 }
 0x110   :  { %3816 = vst [vmem:[#allocation2_spill] sm:$0xff] %v3418_v61  ;;  %3817 = vst [vmem:[#allocation3_spill] sm:$0xff] %v3420_v58  ;;  %v3424_v55 = vpop.f32.mrb[25].mxu0  ;;  %v3426_v52 = vpop.f32.mrb[25].mxu1 }
 0x111   :  { %3818 = vst [vmem:[#allocation4_spill] sm:$0xff] %v3424_v55  ;;  %3819 = vst [vmem:[#allocation5_spill] sm:$0xff] %v3426_v52  ;;  %v3841_v52 = vmax.f32 %v3280_v26, %v3282_v27  ;;  %v3843_v27 = vmax.f32 %v3292_v32, %v3294_v33  ;;  %v3845_v33 = vmax.f32 %v3304_v38, %v3306_v39 }
 0x112   :  { %v3846_v39 = vmax.f32 %v3310_v41, %v3312_v42 }
 0x113   :  { %v3430_v49 = vpop.f32.mrb[26].mxu0  ;;  %v3432_v46 = vpop.f32.mrb[26].mxu1 }
 0x114   :  { %3820 = vst [vmem:[#allocation6_spill] sm:$0xff] %v3430_v49  ;;  %3821 = vst [vmem:[#allocation7_spill] sm:$0xff] %v3432_v46  ;;  %v3436_v43 = vpop.f32.mrb[27].mxu0  ;;  %v3438_v40 = vpop.f32.mrb[27].mxu1  ;;  %v3840_v49 = vmax.f32 %v3274_v23, %v3276_v24  ;;  %v3842_v23 = vmax.f32 %v3286_v29, %v3288_v30  ;;  %v3844_v29 = vmax.f32 %v3298_v35, %v3300_v36 }
 0x115   :  { %3822 = vst [vmem:[#allocation8_spill] sm:$0xff] %v3436_v43  ;;  %3823 = vst [vmem:[#allocation9_spill] sm:$0xff] %v3438_v40 }
 0x117   :  { %v3442_v37 = vpop.f32.mrb[28].mxu0  ;;  %v3444_v34 = vpop.f32.mrb[28].mxu1 }
 0x118   :  { %3824 = vst [vmem:[#allocation10_spill] sm:$0xff] %v3442_v37  ;;  %3825 = vst [vmem:[#allocation11_spill] sm:$0xff] %v3444_v34  ;;  %v3448_v31 = vpop.f32.mrb[29].mxu0  ;;  %v3450_v28 = vpop.f32.mrb[29].mxu1 }
 0x119   :  { %3826 = vst [vmem:[#allocation12_spill] sm:$0xff] %v3448_v31  ;;  %3827 = vst [vmem:[#allocation13_spill] sm:$0xff] %v3450_v28 }
 0x11b   :  { %v3454_v25 = vpop.f32.mrb[30].mxu0  ;;  %v3456_v46 = vpop.f32.mrb[30].mxu1 }
 0x11c   :  { %3828 = vst [vmem:[#allocation14_spill] sm:$0xff] %v3454_v25  ;;  %3829 = vst [vmem:[#allocation15_spill] sm:$0xff] %v3456_v46  ;;  %v3460_v40 = vpop.f32.mrb[31].mxu0  ;;  %v3462_v43 = vpop.f32.mrb[31].mxu1 }
 0x11d   :  { %3830 = vst [vmem:[#allocation16_spill] sm:$0xff] %v3460_v40  ;;  %3831 = vst [vmem:[#allocation17_spill] sm:$0xff] %v3462_v43 }
 0x11f   :  { %v3466_v34 = vpop.f32.mrb[32].mxu0  ;;  %v3468_v37 = vpop.f32.mrb[32].mxu1 }
 0x120   :  { %3832 = vst [vmem:[#allocation18_spill] sm:$0xff] %v3466_v34  ;;  %3833 = vst [vmem:[#allocation19_spill] sm:$0xff] %v3468_v37  ;;  %v3472_v28 = vpop.f32.mrb[33].mxu0  ;;  %v3474_v31 = vpop.f32.mrb[33].mxu1 }
 0x121   :  { %3834 = vst [vmem:[#allocation20_spill] sm:$0xff] %v3472_v28  ;;  %3835 = vst [vmem:[#allocation21_spill] sm:$0xff] %v3474_v31 }
 0x123   :  { %v3478_v46 = vpop.f32.mrb[34].mxu0  ;;  %v3480_v25 = vpop.f32.mrb[34].mxu1 }
 0x124   :  { %3836 = vst [vmem:[#allocation22_spill] sm:$0xff] %v3478_v46  ;;  %3837 = vst [vmem:[#allocation23_spill] sm:$0xff] %v3480_v25  ;;  %v3484_v43 = vpop.f32.mrb[35].mxu0  ;;  %v3486_v40 = vpop.f32.mrb[35].mxu1 }
 0x125   :  { %3838 = vst [vmem:[#allocation24_spill] sm:$0xff] %v3484_v43  ;;  %3839 = vst [vmem:[#allocation25_spill] sm:$0xff] %v3486_v40 }
 0x127   :  { %v2475_v37 = vpop.f32.mrb[36].mxu0  ;;  %v2537_v34 = vpop.f32.mrb[36].mxu1 }
 0x128   :  { %v1236_v15 = vmax.f32 %v3840_v49, %v2475_v37  ;;  %v1056_v31 = vpop.f32.mrb[37].mxu0  ;;  %v1481_v28 = vpop.f32.mrb[37].mxu1 }
 0x129   :  { %v1235_v55 = vmax.f32 %v3841_v52, %v1056_v31 }
 0x12a   :  { %v1661_v25 = vmax.f32 %v1236_v15, %v2537_v34 }
 0x12b   :  { %v1660_v46 = vmax.f32 %v1235_v55, %v1481_v28  ;;  %v2478_v21 = vpop.f32.mrb[38].mxu0  ;;  %v2540_v40 = vpop.f32.mrb[38].mxu1 }
 0x12c   :  { %v1704_v43 = vadd.f32 %v3499_v18, %v1661_v25  ;;  %v1238_v24 = vmax.f32 %v3842_v23, %v2478_v21  ;;  %v1066_v37 = vpop.f32.mrb[39].mxu0  ;;  %v1491_v49 = vpop.f32.mrb[39].mxu1 }
 0x12d   :  { %v1703_v26 = vadd.f32 %v3499_v18, %v1660_v46  ;;  %v1237_v31 = vmax.f32 %v3843_v27, %v1066_v37 }
 0x12e   :  { %v1740_v52 = vmax.f32 %v1704_v43, 0.0  ;;  %v1663_v58 = vmax.f32 %v1238_v24, %v2540_v40 }
 0x12f   :  { %v1739_v28 = vmax.f32 %v1703_v26, 0.0  ;;  %v1662_v34 = vmax.f32 %v1237_v31, %v1491_v49  ;;  %v2481_v55 = vpop.f32.mrb[40].mxu0  ;;  %v2543_v15 = vpop.f32.mrb[40].mxu1 }
 0x130   :  { %v2146_v25 = vpack.c.bf16 %v1740_v52, %v1740_v52  ;;  %v1706_v61 = vadd.f32 %v3499_v18, %v1663_v58  ;;  %v1240_v30 = vmax.f32 %v3844_v29, %v2481_v55  ;;  %v1076_v21 = vpop.f32.mrb[41].mxu0  ;;  %v1501_v46 = vpop.f32.mrb[41].mxu1 }
 0x131   :  { %v2145_v23 = vpack.c.bf16 %v1739_v28, %v1739_v28  ;;  %v1705_v32 = vadd.f32 %v3499_v18, %v1662_v34  ;;  %v1239_v40 = vmax.f32 %v3845_v33, %v1076_v21  ;;  %v3847_v28 = vmax.f32 %v3316_v44, %v3318_v45 }
 0x132   :  { %1921 = vst.msk [vmem:[%s3789_s6 + $0x4] sm:$0xf] %vm1919_vm4, %v2146_v25  ;;  %v1742_v43 = vmax.f32 %v1706_v61, 0.0  ;;  %v1665_v58 = vmax.f32 %v1240_v30, %v2543_v15  ;;  %v3848_v45 = vmax.f32 %v3322_v47, %v3324_v48 }
 0x133   :  { %1920 = vst.msk [vmem:[%s3789_s6] sm:$0xf] %vm1919_vm4, %v2145_v23  ;;  %v1741_v35 = vmax.f32 %v1705_v32, 0.0  ;;  %v1664_v36 = vmax.f32 %v1239_v40, %v1501_v46  ;;  %v2484_v24 = vpop.f32.mrb[42].mxu0  ;;  %v2546_v37 = vpop.f32.mrb[42].mxu1  ;;  %v3849_v40 = vmax.f32 %v3328_v50, %v3330_v51  ;;  %v3850_v51 = vmax.f32 %v3334_v53, %v3336_v54 }
 0x134   :  { %v2148_v49 = vpack.c.bf16 %v1742_v43, %v1742_v43  ;;  %v1708_v38 = vadd.f32 %v3499_v18, %v1665_v58  ;;  %v1242_v26 = vmax.f32 %v3846_v39, %v2484_v24  ;;  %v1086_v27 = vpop.f32.mrb[43].mxu0  ;;  %v1511_v31 = vpop.f32.mrb[43].mxu1 }
 0x135   :  { %v2147_v61 = vpack.c.bf16 %v1741_v35, %v1741_v35  ;;  %v1707_v52 = vadd.f32 %v3499_v18, %v1664_v36  ;;  %v1241_v34 = vmax.f32 %v3847_v28, %v1086_v27 }
 0x136   :  { %1923 = vst.msk [vmem:[%s3789_s6 + $0xc] sm:$0xf] %vm1919_vm4, %v2148_v49  ;;  %v1744_v55 = vmax.f32 %v1708_v38, 0.0  ;;  %v1667_v15 = vmax.f32 %v1242_v26, %v2546_v37 }
 0x137   :  { %1922 = vst.msk [vmem:[%s3789_s6 + $0x8] sm:$0xf] %vm1919_vm4, %v2147_v61  ;;  %v1743_v41 = vmax.f32 %v1707_v52, 0.0  ;;  %v1666_v42 = vmax.f32 %v1241_v34, %v1511_v31  ;;  %v2487_v25 = vpop.f32.mrb[44].mxu0  ;;  %v2549_v29 = vpop.f32.mrb[44].mxu1  ;;  %v3851_v31 = vmax.f32 %v3340_v56, %v3342_v57  ;;  %v3852_v57 = vmax.f32 %v3346_v59, %v3348_v60 }
 0x138   :  { %v2150_v30 = vpack.c.bf16 %v1744_v55, %v1744_v55  ;;  %v1710_v44 = vadd.f32 %v3499_v18, %v1667_v15  ;;  %v1244_v21 = vmax.f32 %v3848_v45, %v2487_v25  ;;  %v1096_v46 = vpop.f32.mrb[45].mxu0  ;;  %v1521_v23 = vpop.f32.mrb[45].mxu1 }
 0x139   :  { %v2149_v32 = vpack.c.bf16 %v1743_v41, %v1743_v41  ;;  %v1709_v33 = vadd.f32 %v3499_v18, %v1666_v42  ;;  %v1243_v43 = vmax.f32 %v3849_v40, %v1096_v46 }
 0x13a   :  { %1925 = vst.msk [vmem:[%s3789_s6 + $0x14] sm:$0xf] %vm1919_vm4, %v2150_v30  ;;  %v1746_v58 = vmax.f32 %v1710_v44, 0.0  ;;  %v1669_v35 = vmax.f32 %v1244_v21, %v2549_v29  ;;  %v3853_v44 = vmax.f32 %v3352_v62, %v3354_v63  ;;  %v3854_v63 = vmax.f32 %v3358_v1, %v3360_v2 }
 0x13b   :  { %1924 = vst.msk [vmem:[%s3789_s6 + $0x10] sm:$0xf] %vm1919_vm4, %v2149_v32  ;;  %v1745_v47 = vmax.f32 %v1709_v33, 0.0  ;;  %v1668_v48 = vmax.f32 %v1243_v43, %v1521_v23  ;;  %v2490_v36 = vpop.f32.mrb[46].mxu0  ;;  %v2552_v24 = vpop.f32.mrb[46].mxu1 }
 0x13c   :  { %v2152_v37 = vpack.c.bf16 %v1746_v58, %v1746_v58  ;;  %v1712_v50 = vadd.f32 %v3499_v18, %v1669_v35  ;;  %v1246_v49 = vmax.f32 %v3850_v51, %v2490_v36  ;;  %v1106_v38 = vpop.f32.mrb[47].mxu0  ;;  %v1531_v39 = vpop.f32.mrb[47].mxu1 }
 0x13d   :  { %v2151_v26 = vpack.c.bf16 %v1745_v47, %v1745_v47  ;;  %v1711_v27 = vadd.f32 %v3499_v18, %v1668_v48  ;;  %v1245_v61 = vmax.f32 %v3851_v31, %v1106_v38  ;;  %v3855_v48 = vmax.f32 %v3364_v4, %v3366_v5 }
 0x13e   :  { %1927 = vst.msk [vmem:[%s3789_s6 + $0x1c] sm:$0xf] %vm1919_vm4, %v2152_v37  ;;  %v1748_v52 = vmax.f32 %v1712_v50, 0.0  ;;  %v1671_v28 = vmax.f32 %v1246_v49, %v2552_v24  ;;  %v3856_v5 = vmax.f32 %v3370_v7, %v3372_v8 }
 0x13f   :  { %1926 = vst.msk [vmem:[%s3789_s6 + $0x18] sm:$0xf] %vm1919_vm4, %v2151_v26  ;;  %v1747_v53 = vmax.f32 %v1711_v27, 0.0  ;;  %v1670_v54 = vmax.f32 %v1245_v61, %v1531_v39  ;;  %v2493_v34 = vpop.f32.mrb[48].mxu0  ;;  %v2555_v55 = vpop.f32.mrb[48].mxu1  ;;  %v3857_v61 = vmax.f32 %v3376_v10, %v3378_v11  ;;  %v3858_v11 = vmax.f32 %v3382_v13, %v3384_v14 }
 0x140   :  { %v2154_v15 = vpack.c.bf16 %v1748_v52, %v1748_v52  ;;  %v1714_v56 = vadd.f32 %v3499_v18, %v1671_v28  ;;  %v1248_v41 = vmax.f32 %v3852_v57, %v2493_v34  ;;  %v1116_v42 = vpop.f32.mrb[49].mxu0  ;;  %v1541_v25 = vpop.f32.mrb[49].mxu1 }
 0x141   :  { %v2153_v29 = vpack.c.bf16 %v1747_v53, %v1747_v53  ;;  %v1713_v30 = vadd.f32 %v3499_v18, %v1670_v54  ;;  %v1247_v45 = vmax.f32 %v3853_v44, %v1116_v42 }
 0x142   :  { %1929 = vst.msk [vmem:[%s3789_s6 + $0x24] sm:$0xf] %vm1919_vm4, %v2154_v15  ;;  %v1750_v21 = vmax.f32 %v1714_v56, 0.0  ;;  %v1673_v46 = vmax.f32 %v1248_v41, %v2555_v55 }
 0x143   :  { %1928 = vst.msk [vmem:[%s3789_s6 + $0x20] sm:$0xf] %vm1919_vm4, %v2153_v29  ;;  %v1749_v59 = vmax.f32 %v1713_v30, 0.0  ;;  %v1672_v60 = vmax.f32 %v1247_v45, %v1541_v25  ;;  %v2496_v23 = vpop.f32.mrb[50].mxu0  ;;  %v2558_v32 = vpop.f32.mrb[50].mxu1  ;;  %v3859_v25 = vmax.f32 %v3388_v16, %v3390_v17  ;;  %v3860_v17 = vmax.f32 %v3394_v19, %v3396_v20 }
 0x144   :  { %v2156_v33 = vpack.c.bf16 %v1750_v21, %v1750_v21  ;;  %v1716_v62 = vadd.f32 %v3499_v18, %v1673_v46  ;;  %v1250_v40 = vmax.f32 %v3854_v63, %v2496_v23  ;;  %v1126_v43 = vpop.f32.mrb[51].mxu0  ;;  %v1551_v58 = vpop.f32.mrb[51].mxu1 }
 0x145   :  { %v2155_v35 = vpack.c.bf16 %v1749_v59, %v1749_v59  ;;  %v1715_v47 = vadd.f32 %v3499_v18, %v1672_v60  ;;  %v1249_v36 = vmax.f32 %v3855_v48, %v1126_v43 }
 0x146   :  { %1931 = vst.msk [vmem:[%s3789_s6 + $0x2c] sm:$0xf] %vm1919_vm4, %v2156_v33  ;;  %v1752_v24 = vmax.f32 %v1716_v62, 0.0  ;;  %v1675_v37 = vmax.f32 %v1250_v40, %v2558_v32  ;;  %v3861_v62 = vmax.f32 %v3400_v22, %v3402_v12  ;;  %v3862_v22 = vmax.f32 %v3406_v9, %v3408_v6 }
 0x147   :  { %1930 = vst.msk [vmem:[%s3789_s6 + $0x28] sm:$0xf] %vm1919_vm4, %v2155_v35  ;;  %v1751_v1 = vmax.f32 %v1715_v47, 0.0  ;;  %v1674_v2 = vmax.f32 %v1249_v36, %v1551_v58  ;;  %v2499_v50 = vpop.f32.mrb[52].mxu0  ;;  %v2561_v51 = vpop.f32.mrb[52].mxu1 }
 0x148   :  { %v2158_v49 = vpack.c.bf16 %v1752_v24, %v1752_v24  ;;  %v1718_v4 = vadd.f32 %v3499_v18, %v1675_v37  ;;  %v1252_v38 = vmax.f32 %v3856_v5, %v2499_v50  ;;  %v1136_v39 = vpop.f32.mrb[53].mxu0  ;;  %v1561_v26 = vpop.f32.mrb[53].mxu1 }
 0x149   :  { %v2157_v27 = vpack.c.bf16 %v1751_v1, %v1751_v1  ;;  %v1717_v31 = vadd.f32 %v3499_v18, %v1674_v2  ;;  %v1251_v52 = vmax.f32 %v3857_v61, %v1136_v39  ;;  %v3863_v2 = vmax.f32 %v3412_v3, %v3414_v0  ;;  %v3864_v3 = vld [vmem:[#allocation2_spill] sm:$0xff]  ;;  %v3865_v39 = vld [vmem:[#allocation3_spill] sm:$0xff] }
 0x14a   :  { %1933 = vst.msk [vmem:[%s3789_s6 + $0x34] sm:$0xf] %vm1919_vm4, %v2158_v49  ;;  %v1754_v28 = vmax.f32 %v1718_v4, 0.0  ;;  %v1677_v53 = vmax.f32 %v1252_v38, %v2561_v51 }
 0x14b   :  { %1932 = vst.msk [vmem:[%s3789_s6 + $0x30] sm:$0xf] %vm1919_vm4, %v2157_v27  ;;  %v1753_v7 = vmax.f32 %v1717_v31, 0.0  ;;  %v1676_v8 = vmax.f32 %v1251_v52, %v1561_v26  ;;  %v2502_v54 = vpop.f32.mrb[54].mxu0  ;;  %v2564_v34 = vpop.f32.mrb[54].mxu1  ;;  %v3866_v26 = vmax.f32 %v3864_v3, %v3865_v39 }
 0x14c   :  { %v2160_v55 = vpack.c.bf16 %v1754_v28, %v1754_v28  ;;  %v1720_v10 = vadd.f32 %v3499_v18, %v1677_v53  ;;  %v1254_v15 = vmax.f32 %v3858_v11, %v2502_v54  ;;  %v1146_v56 = vpop.f32.mrb[55].mxu0  ;;  %v1571_v57 = vpop.f32.mrb[55].mxu1  ;;  %v3867_v53 = vld [vmem:[#allocation4_spill] sm:$0xff] }
 0x14d   :  { %v2159_v41 = vpack.c.bf16 %v1753_v7, %v1753_v7  ;;  %v1719_v42 = vadd.f32 %v3499_v18, %v1676_v8  ;;  %v1253_v29 = vmax.f32 %v3859_v25, %v1146_v56  ;;  %v3868_v7 = vld [vmem:[#allocation5_spill] sm:$0xff]  ;;  %v3871_v25 = vld [vmem:[#allocation7_spill] sm:$0xff] }
 0x14e   :  { %1935 = vst.msk [vmem:[%s3789_s6 + $0x3c] sm:$0xf] %vm1919_vm4, %v2160_v55  ;;  %v1756_v30 = vmax.f32 %v1720_v10, 0.0  ;;  %v1679_v44 = vmax.f32 %v1254_v15, %v2564_v34  ;;  %v3869_v8 = vmax.f32 %v3867_v53, %v3868_v7 }
 0x14f   :  { %1934 = vst.msk [vmem:[%s3789_s6 + $0x38] sm:$0xf] %vm1919_vm4, %v2159_v41  ;;  %v1755_v13 = vmax.f32 %v1719_v42, 0.0  ;;  %v1678_v14 = vmax.f32 %v1253_v29, %v1571_v57  ;;  %v2505_v45 = vpop.f32.mrb[56].mxu0  ;;  %v2567_v21 = vpop.f32.mrb[56].mxu1  ;;  %v3870_v42 = vld [vmem:[#allocation6_spill] sm:$0xff] }
 0x150   :  { %v2162_v46 = vpack.c.bf16 %v1756_v30, %v1756_v30  ;;  %v1722_v16 = vadd.f32 %v3499_v18, %v1679_v44  ;;  %v1256_v59 = vmax.f32 %v3860_v17, %v2505_v45  ;;  %v1156_v60 = vpop.f32.mrb[57].mxu0  ;;  %v1581_v23 = vpop.f32.mrb[57].mxu1  ;;  %v3872_v29 = vmax.f32 %v3870_v42, %v3871_v25 }
 0x151   :  { %v2161_v32 = vpack.c.bf16 %v1755_v13, %v1755_v13  ;;  %v1721_v33 = vadd.f32 %v3499_v18, %v1678_v14  ;;  %v1255_v63 = vmax.f32 %v3861_v62, %v1156_v60 }
 0x152   :  { %1937 = vst.msk [vmem:[%s3789_s6 + $0x44] sm:$0xf] %vm1919_vm4, %v2162_v46  ;;  %v1758_v40 = vmax.f32 %v1722_v16, 0.0  ;;  %v1681_v43 = vmax.f32 %v1256_v59, %v2567_v21  ;;  %v3873_v21 = vld [vmem:[#allocation8_spill] sm:$0xff]  ;;  %v3874_v46 = vld [vmem:[#allocation9_spill] sm:$0xff] }
 0x153   :  { %1936 = vst.msk [vmem:[%s3789_s6 + $0x40] sm:$0xf] %vm1919_vm4, %v2161_v32  ;;  %v1757_v19 = vmax.f32 %v1721_v33, 0.0  ;;  %v1680_v20 = vmax.f32 %v1255_v63, %v1581_v23  ;;  %v2508_v58 = vpop.f32.mrb[58].mxu0  ;;  %v2570_v35 = vpop.f32.mrb[58].mxu1  ;;  %v3875_v16 = vmax.f32 %v3873_v21, %v3874_v46 }
 0x154   :  { %v2164_v47 = vpack.c.bf16 %v1758_v40, %v1758_v40  ;;  %v1724_v12 = vadd.f32 %v3499_v18, %v1681_v43  ;;  %v1258_v48 = vmax.f32 %v3862_v22, %v2508_v58  ;;  %v1166_v36 = vpop.f32.mrb[59].mxu0  ;;  %v1591_v24 = vpop.f32.mrb[59].mxu1  ;;  %v3876_v43 = vld [vmem:[#allocation10_spill] sm:$0xff] }
 0x155   :  { %v2163_v37 = vpack.c.bf16 %v1757_v19, %v1757_v19  ;;  %v1723_v1 = vadd.f32 %v3499_v18, %v1680_v20  ;;  %v1257_v50 = vmax.f32 %v3863_v2, %v1166_v36  ;;  %v3877_v19 = vld [vmem:[#allocation11_spill] sm:$0xff]  ;;  %v3880_v36 = vld [vmem:[#allocation13_spill] sm:$0xff] }
 0x156   :  { %1939 = vst.msk [vmem:[%s3789_s6 + $0x4c] sm:$0xf] %vm1919_vm4, %v2164_v47  ;;  %v1760_v51 = vmax.f32 %v1724_v12, 0.0  ;;  %v1683_v49 = vmax.f32 %v1258_v48, %v2570_v35  ;;  %v3878_v20 = vmax.f32 %v3876_v43, %v3877_v19  ;;  %v3879_v48 = vld [vmem:[#allocation12_spill] sm:$0xff] }
 0x157   :  { %1938 = vst.msk [vmem:[%s3789_s6 + $0x48] sm:$0xf] %vm1919_vm4, %v2163_v37  ;;  %v1759_v6 = vmax.f32 %v1723_v1, 0.0  ;;  %v1682_v9 = vmax.f32 %v1257_v50, %v1591_v24  ;;  %v2511_v4 = vpop.f32.mrb[60].mxu0  ;;  %v2573_v5 = vpop.f32.mrb[60].mxu1  ;;  %v3881_v24 = vmax.f32 %v3879_v48, %v3880_v36 }
 0x158   :  { %v2166_v38 = vpack.c.bf16 %v1760_v51, %v1760_v51  ;;  %v1726_v0 = vadd.f32 %v3499_v18, %v1683_v49  ;;  %v1260_v27 = vmax.f32 %v3866_v26, %v2511_v4  ;;  %v1176_v31 = vpop.f32.mrb[61].mxu0  ;;  %v1601_v61 = vpop.f32.mrb[61].mxu1 }
 0x159   :  { %v2165_v52 = vpack.c.bf16 %v1759_v6, %v1759_v6  ;;  %v1725_v28 = vadd.f32 %v3499_v18, %v1682_v9  ;;  %v1259_v54 = vmax.f32 %v3869_v8, %v1176_v31 }
 0x15a   :  { %1941 = vst.msk [vmem:[%s3789_s6 + $0x54] sm:$0xf] %vm1919_vm4, %v2166_v38  ;;  %v1762_v34 = vmax.f32 %v1726_v0, 0.0  ;;  %v1685_v55 = vmax.f32 %v1260_v27, %v2573_v5  ;;  %v3882_v5 = vld [vmem:[#allocation14_spill] sm:$0xff]  ;;  %v3883_v38 = vld [vmem:[#allocation15_spill] sm:$0xff] }
 0x15b   :  { %1940 = vst.msk [vmem:[%s3789_s6 + $0x50] sm:$0xf] %vm1919_vm4, %v2165_v52  ;;  %v1761_v10 = vmax.f32 %v1725_v28, 0.0  ;;  %v1684_v11 = vmax.f32 %v1259_v54, %v1601_v61  ;;  %v2514_v15 = vpop.f32.mrb[62].mxu0  ;;  %v2576_v56 = vpop.f32.mrb[62].mxu1  ;;  %v3884_v0 = vmax.f32 %v3882_v5, %v3883_v38  ;;  %v3885_v61 = vld [vmem:[#allocation16_spill] sm:$0xff] }
 0x15c   :  { %v2168_v57 = vpack.c.bf16 %v1762_v34, %v1762_v34  ;;  %v1728_v41 = vadd.f32 %v3499_v18, %v1685_v55  ;;  %v1262_v30 = vmax.f32 %v3872_v29, %v2514_v15  ;;  %v1186_v44 = vpop.f32.mrb[63].mxu0  ;;  %v1611_v13 = vpop.f32.mrb[63].mxu1  ;;  %v3886_v52 = vld [vmem:[#allocation17_spill] sm:$0xff] }
 0x15d   :  { %v2167_v14 = vpack.c.bf16 %v1761_v10, %v1761_v10  ;;  %v1727_v45 = vadd.f32 %v3499_v18, %v1684_v11  ;;  %v1261_v17 = vmax.f32 %v3875_v16, %v1186_v44  ;;  %v3887_v28 = vmax.f32 %v3885_v61, %v3886_v52 }
 0x15e   :  { %1943 = vst.msk [vmem:[%s3789_s6 + $0x5c] sm:$0xf] %vm1919_vm4, %v2168_v57  ;;  %v1764_v59 = vmax.f32 %v1728_v41, 0.0  ;;  %v1687_v60 = vmax.f32 %v1262_v30, %v2576_v56  ;;  %v3888_v56 = vld [vmem:[#allocation18_spill] sm:$0xff]  ;;  %v3889_v57 = vld [vmem:[#allocation19_spill] sm:$0xff] }
 0x15f   :  { %1942 = vst.msk [vmem:[%s3789_s6 + $0x58] sm:$0xf] %vm1919_vm4, %v2167_v14  ;;  %v1763_v23 = vmax.f32 %v1727_v45, 0.0  ;;  %v1686_v32 = vmax.f32 %v1261_v17, %v1611_v13  ;;  %v2517_v33 = vpop.f32.mrb[64].mxu0  ;;  %v2579_v62 = vpop.f32.mrb[64].mxu1  ;;  %v3890_v41 = vmax.f32 %v3888_v56, %v3889_v57  ;;  %v3891_v13 = vld [vmem:[#allocation20_spill] sm:$0xff] }
 0x160   :  { %v2170_v63 = vpack.c.bf16 %v1764_v59, %v1764_v59  ;;  %v1730_v40 = vadd.f32 %v3499_v18, %v1687_v60  ;;  %v1264_v58 = vmax.f32 %v3878_v20, %v2517_v33  ;;  %v1196_v35 = vpop.f32.mrb[65].mxu0  ;;  %v1621_v47 = vpop.f32.mrb[65].mxu1  ;;  %v3892_v14 = vld [vmem:[#allocation21_spill] sm:$0xff] }
 0x161   :  { %v2169_v12 = vpack.c.bf16 %v1763_v23, %v1763_v23  ;;  %v1729_v22 = vadd.f32 %v3499_v18, %v1686_v32  ;;  %v1263_v37 = vmax.f32 %v3881_v24, %v1196_v35  ;;  %v3893_v45 = vmax.f32 %v3891_v13, %v3892_v14 }
 0x162   :  { %1945 = vst.msk [vmem:[%s3789_s6 + $0x64] sm:$0xf] %vm1919_vm4, %v2170_v63  ;;  %v1766_v1 = vmax.f32 %v1730_v40, 0.0  ;;  %v1689_v2 = vmax.f32 %v1264_v58, %v2579_v62  ;;  %v3894_v62 = vld [vmem:[#allocation22_spill] sm:$0xff]  ;;  %v3895_v63 = vld [vmem:[#allocation23_spill] sm:$0xff] }
 0x163   :  { %1944 = vst.msk [vmem:[%s3789_s6 + $0x60] sm:$0xf] %vm1919_vm4, %v2169_v12  ;;  %v1765_v50 = vmax.f32 %v1729_v22, 0.0  ;;  %v1688_v51 = vmax.f32 %v1263_v37, %v1621_v47  ;;  %v2520_v49 = vpop.f32.mrb[66].mxu0  ;;  %v2582_v6 = vpop.f32.mrb[66].mxu1  ;;  %v3896_v40 = vmax.f32 %v3894_v62, %v3895_v63  ;;  %v3897_v47 = vld [vmem:[#allocation24_spill] sm:$0xff] }
 0x164   :  { %v2172_v9 = vpack.c.bf16 %v1766_v1, %v1766_v1  ;;  %v1732_v4 = vadd.f32 %v3499_v18, %v1689_v2  ;;  %v1266_v3 = vmax.f32 %v3884_v0, %v2520_v49  ;;  %v1206_v39 = vpop.f32.mrb[67].mxu0  ;;  %v1631_v26 = vpop.f32.mrb[67].mxu1  ;;  %v3898_v12 = vld [vmem:[#allocation25_spill] sm:$0xff] }
 0x165   :  { %v2171_v27 = vpack.c.bf16 %v1765_v50, %v1765_v50  ;;  %v1731_v31 = vadd.f32 %v3499_v18, %v1688_v51  ;;  %v1265_v53 = vmax.f32 %v3887_v28, %v1206_v39  ;;  %v3899_v22 = vmax.f32 %v3897_v47, %v3898_v12 }
 0x166   :  { %1947 = vst.msk [vmem:[%s3789_s6 + $0x6c] sm:$0xf] %vm1919_vm4, %v2172_v9  ;;  %v1768_v7 = vmax.f32 %v1732_v4, 0.0  ;;  %v1691_v8 = vmax.f32 %v1266_v3, %v2582_v6 }
 0x167   :  { %1946 = vst.msk [vmem:[%s3789_s6 + $0x68] sm:$0xf] %vm1919_vm4, %v2171_v27  ;;  %v1767_v54 = vmax.f32 %v1731_v31, 0.0  ;;  %v1690_v34 = vmax.f32 %v1265_v53, %v1631_v26  ;;  %v2523_v55 = vpop.f32.mrb[68].mxu0  ;;  %v2585_v10 = vpop.f32.mrb[68].mxu1 }
 0x168   :  { %v2174_v11 = vpack.c.bf16 %v1768_v7, %v1768_v7  ;;  %v1734_v15 = vadd.f32 %v3499_v18, %v1691_v8  ;;  %v1268_v42 = vmax.f32 %v3890_v41, %v2523_v55  ;;  %v1216_v25 = vpop.f32.mrb[69].mxu0  ;;  %v1641_v29 = vpop.f32.mrb[69].mxu1 }
 0x169   :  { %v2173_v30 = vpack.c.bf16 %v1767_v54, %v1767_v54  ;;  %v1733_v44 = vadd.f32 %v3499_v18, %v1690_v34  ;;  %v1267_v21 = vmax.f32 %v3893_v45, %v1216_v25 }
 0x16a   :  { %1949 = vst.msk [vmem:[%s3789_s6 + $0x74] sm:$0xf] %vm1919_vm4, %v2174_v11  ;;  %v1770_v46 = vmax.f32 %v1734_v15, 0.0  ;;  %v1693_v16 = vmax.f32 %v1268_v42, %v2585_v10 }
 0x16b   :  { %1948 = vst.msk [vmem:[%s3789_s6 + $0x70] sm:$0xf] %vm1919_vm4, %v2173_v30  ;;  %v1769_v17 = vmax.f32 %v1733_v44, 0.0  ;;  %v1692_v59 = vmax.f32 %v1267_v21, %v1641_v29  ;;  %v2526_v60 = vpop.f32.mrb[70].mxu0  ;;  %v2588_v23 = vpop.f32.mrb[70].mxu1 }
 0x16c   :  { %v2176_v32 = vpack.c.bf16 %v1770_v46, %v1770_v46  ;;  %v1736_v33 = vadd.f32 %v3499_v18, %v1693_v16  ;;  %v1270_v43 = vmax.f32 %v3896_v40, %v2526_v60  ;;  %v1226_v19 = vpop.f32.mrb[71].mxu0  ;;  %v1651_v20 = vpop.f32.mrb[71].mxu1 }
 0x16d   :  { %v2175_v58 = vpack.c.bf16 %v1769_v17, %v1769_v17  ;;  %v1735_v35 = vadd.f32 %v3499_v18, %v1692_v59  ;;  %v1269_v48 = vmax.f32 %v3899_v22, %v1226_v19 }
 0x16e   :  { %1951 = vst.msk [vmem:[%s3789_s6 + $0x7c] sm:$0xf] %vm1919_vm4, %v2176_v32  ;;  %v1772_v36 = vmax.f32 %v1736_v33, 0.0  ;;  %v1695_v24 = vmax.f32 %v1270_v43, %v2588_v23 }
 0x16f   :  { %1950 = vst.msk [vmem:[%s3789_s6 + $0x78] sm:$0xf] %vm1919_vm4, %v2175_v58  ;;  %v1771_v37 = vmax.f32 %v1735_v35, 0.0  ;;  %v1694_v1 = vmax.f32 %v1269_v48, %v1651_v20 }
 0x170   :  { %v2178_v2 = vpack.c.bf16 %v1772_v36, %v1772_v36  ;;  %v1738_v50 = vadd.f32 %v3499_v18, %v1695_v24 }
 0x171   :  { %v2177_v51 = vpack.c.bf16 %v1771_v37, %v1771_v37  ;;  %v1737_v49 = vadd.f32 %v3499_v18, %v1694_v1 }
 0x172   :  { %1953 = vst.msk [vmem:[%s3789_s6 + $0x84] sm:$0xf] %vm1919_vm4, %v2178_v2  ;;  %v1774_v6 = vmax.f32 %v1738_v50, 0.0 }
 0x173   :  { %1952 = vst.msk [vmem:[%s3789_s6 + $0x80] sm:$0xf] %vm1919_vm4, %v2177_v51  ;;  %v1773_v9 = vmax.f32 %v1737_v49, 0.0 }
 0x174   :  { %v2180_v4 = vpack.c.bf16 %v1774_v6, %v1774_v6 }
 0x175   :  { %v2179_v5 = vpack.c.bf16 %v1773_v9, %v1773_v9 }
 0x176   :  { %1955 = vst.msk [vmem:[%s3789_s6 + $0x8c] sm:$0xf] %vm1919_vm4, %v2180_v4 }
 0x177   :  { %1954 = vst.msk [vmem:[%s3789_s6 + $0x88] sm:$0xf] %vm1919_vm4, %v2179_v5 }

// kernel: smaller_net_forward.4
= control target key start
LH: loop header
LB: loop body
LE: loop exit
PB: predicated region body
PF: predicated region fallthrough
CT: control target
= control target key end

     0   :  { %vm766_vm0 = vcmask 261120   ;;  %vm1259_vm1 = vcmask 519168   ;;  %s2274_s1 = inlined_call_operand.vmem [shape: bf16[800,64], index: 1, kind: input, shape index: {}]   ;;  %s2275_s0 = inlined_call_operand.vmem [shape: bf16[128,800], index: 0, kind: input, shape index: {}]   ;;  %s2276_s2 = inlined_call_operand.vmem [shape: f32[1,64], index: 2, kind: input, shape index: {}]   ;;  %s2277_s3 = inlined_call_operand.vmem [shape: bf16[128,64], index: 3, kind: output, shape index: {}]  }
   0x1   :  { %v1665_v0 = vld [vmem:[%s2274_s1 + $0x40] sm:$0xff]   ;;  %v1669_v4 = vld [vmem:[%s2274_s1 + $0x48] sm:$0xff]   ;;  %v1673_v8 = vld [vmem:[%s2274_s1 + $0x50] sm:$0xff]  }
   0x2   :  { %v1666_v1 = vld [vmem:[%s2274_s1 + $0xc0] sm:$0xff]   ;;  %1427 = vmatprep.subr.bf16.mxu0 %v1665_v0  ;;  %v1670_v5 = vld [vmem:[%s2274_s1 + $0xc8] sm:$0xff]   ;;  %v1674_v9 = vld [vmem:[%s2274_s1 + $0xd0] sm:$0xff]  }
   0x3   :  { %v1667_v2 = vld [vmem:[%s2274_s1] sm:$0xff]   ;;  %1491 = vmatprep.subr.bf16.mxu1 %v1666_v1  ;;  %v1671_v6 = vld [vmem:[%s2274_s1 + $0x8] sm:$0xff]   ;;  %v1675_v10 = vld [vmem:[%s2274_s1 + $0x10] sm:$0xff]  }
   0x4   :  { %v1668_v3 = vld [vmem:[%s2274_s1 + $0x80] sm:$0xff]   ;;  %1428 = vmatpush3.bf16.msra.mxu0 %v1667_v2  ;;  %v1672_v7 = vld [vmem:[%s2274_s1 + $0x88] sm:$0xff]   ;;  %v1676_v11 = vld [vmem:[%s2274_s1 + $0x90] sm:$0xff]  }
   0x5   :  { %1492 = vmatpush3.bf16.msra.mxu1 %v1668_v3  ;;  %1429 = vmatprep.subr.bf16.mxu0 %v1669_v4  ;;  %v1677_v12 = vld [vmem:[%s2274_s1 + $0x58] sm:$0xff]   ;;  %v1681_v16 = vld [vmem:[%s2274_s1 + $0x60] sm:$0xff]   ;;  %v1685_v20 = vld [vmem:[%s2274_s1 + $0x68] sm:$0xff]  }
   0x6   :  { %1493 = vmatprep.subr.bf16.mxu1 %v1670_v5  ;;  %v1678_v13 = vld [vmem:[%s2274_s1 + $0xd8] sm:$0xff]   ;;  %v1682_v17 = vld [vmem:[%s2274_s1 + $0xe0] sm:$0xff]   ;;  %v1686_v21 = vld [vmem:[%s2274_s1 + $0xe8] sm:$0xff]  }
   0x7   :  { %v1679_v14 = vld [vmem:[%s2274_s1 + $0x18] sm:$0xff]   ;;  %v1683_v18 = vld [vmem:[%s2274_s1 + $0x20] sm:$0xff]   ;;  %v1687_v22 = vld [vmem:[%s2274_s1 + $0x28] sm:$0xff]  }
   0x8   :  { %1430 = vmatpush3.bf16.msra.mxu0 %v1671_v6  ;;  %v1680_v15 = vld [vmem:[%s2274_s1 + $0x98] sm:$0xff]   ;;  %v1684_v19 = vld [vmem:[%s2274_s1 + $0xa0] sm:$0xff]   ;;  %v1688_v23 = vld [vmem:[%s2274_s1 + $0xa8] sm:$0xff]  }
   0x9   :  { %1494 = vmatpush3.bf16.msra.mxu1 %v1672_v7  ;;  %1431 = vmatprep.subr.bf16.mxu0 %v1673_v8  ;;  %v1689_v24 = vld [vmem:[%s2274_s1 + $0x70] sm:$0xff]   ;;  %v1693_v28 = vld [vmem:[%s2274_s1 + $0x78] sm:$0xff]   ;;  %v1699_v33 = vld [vmem:[%s2275_s0 + $0x4] ss:$28 sps:$4 sm:$0xff]  }
   0xa   :  { %1495 = vmatprep.subr.bf16.mxu1 %v1674_v9  ;;  %v1690_v25 = vld [vmem:[%s2274_s1 + $0xf0] sm:$0xff]   ;;  %v1694_v29 = vld [vmem:[%s2274_s1 + $0xf8] sm:$0xff]   ;;  %v1700_v34 = vld [vmem:[%s2275_s0 + $0x8] ss:$28 sps:$4 sm:$0xff]   ;;  %823 = vmatprep.mubr.bf16.mxu0 %v1699_v33 }
   0xb   :  { %v1691_v26 = vld [vmem:[%s2274_s1 + $0x30] sm:$0xff]   ;;  %v1695_v30 = vld [vmem:[%s2274_s1 + $0x38] sm:$0xff]   ;;  %v1702_v35 = vld [vmem:[%s2275_s0 + $0xc] ss:$28 sps:$4 sm:$0xff]  }
   0xc   :  { %1432 = vmatpush3.bf16.msra.mxu0 %v1675_v10  ;;  %v1692_v27 = vld [vmem:[%s2274_s1 + $0xb0] sm:$0xff]   ;;  %v1696_v31 = vld [vmem:[%s2274_s1 + $0xb8] sm:$0xff]   ;;  %v1703_v36 = vld [vmem:[%s2274_s1 + $0x140] sm:$0xff]   ;;  %920 = vmatprep.mubr.bf16.mxu1 %v1702_v35 }
   0xd   :  { %1496 = vmatpush3.bf16.msra.mxu1 %v1676_v11  ;;  %1433 = vmatprep.subr.bf16.mxu0 %v1677_v12  ;;  %v1697_v32 = vld [vmem:[%s2275_s0] ss:$28 sps:$4 sm:$0xff]   ;;  %v1709_v40 = vld [vmem:[%s2275_s0 + $0x38] ss:$28 sps:$4 sm:$0xff]   ;;  %v1711_v42 = vld [vmem:[%s2274_s1 + $0x148] sm:$0xff]  }
   0xe   :  { %1497 = vmatprep.subr.bf16.mxu1 %v1678_v13  ;;  %v1704_v37 = vld [vmem:[%s2274_s1 + $0x100] sm:$0xff]   ;;  %v1705_v38 = vld [vmem:[%s2275_s0 + $0x3c] ss:$28 sps:$4 sm:$0xff]   ;;  %v1712_v43 = vld [vmem:[%s2274_s1 + $0x108] sm:$0xff]  }
   0xf   :  { %v1707_v39 = vld [vmem:[%s2275_s0 + $0x44] ss:$28 sps:$4 sm:$0xff]   ;;  %v1713_v44 = vld [vmem:[%s2275_s0 + $0x74] ss:$28 sps:$4 sm:$0xff]   ;;  %v1715_v45 = vld [vmem:[%s2275_s0 + $0x7c] ss:$28 sps:$4 sm:$0xff]  }
  0x10   :  { %1434 = vmatpush3.bf16.msra.mxu0 %v1679_v14  ;;  %v1710_v41 = vld [vmem:[%s2275_s0 + $0x40] ss:$28 sps:$4 sm:$0xff]   ;;  %v1719_v46 = vld [vmem:[%s2274_s1 + $0x150] sm:$0xff]   ;;  %v1721_v50 = vld [vmem:[%s2275_s0 + $0xac] ss:$28 sps:$4 sm:$0xff]  }
  0x11   :  { %1498 = vmatpush3.bf16.msra.mxu1 %v1680_v15  ;;  %1435 = vmatprep.subr.bf16.mxu0 %v1681_v16  ;;  %v1720_v47 = vld [vmem:[%s2274_s1 + $0x110] sm:$0xff]   ;;  %v1727_v52 = vld [vmem:[%s2274_s1 + $0x158] sm:$0xff]   ;;  %v1735_v54 = vld [vmem:[%s2274_s1 + $0x160] sm:$0xff]  }
  0x12   :  { %1499 = vmatprep.subr.bf16.mxu1 %v1682_v17  ;;  %v1717_v48 = vld [vmem:[%s2275_s0 + $0x70] ss:$28 sps:$4 sm:$0xff]   ;;  %v1718_v49 = vld [vmem:[%s2275_s0 + $0x78] ss:$28 sps:$4 sm:$0xff]   ;;  %v1736_v55 = vld [vmem:[%s2274_s1 + $0x120] sm:$0xff]  }
  0x13   :  { %v1723_v51 = vld [vmem:[%s2275_s0 + $0xb4] ss:$28 sps:$4 sm:$0xff]   ;;  %v1728_v53 = vld [vmem:[%s2274_s1 + $0x118] sm:$0xff]   ;;  %v1725_v56 = vld [vmem:[%s2275_s0 + $0xa8] ss:$28 sps:$4 sm:$0xff]  }
  0x14   :  { %1436 = vmatpush3.bf16.msra.mxu0 %v1683_v18  ;;  %v1726_v57 = vld [vmem:[%s2275_s0 + $0xb0] ss:$28 sps:$4 sm:$0xff]   ;;  %v1729_v58 = vld [vmem:[%s2275_s0 + $0xe4] ss:$28 sps:$4 sm:$0xff]   ;;  %v1737_v2 = vld [vmem:[%s2275_s0 + $0x11c] ss:$28 sps:$4 sm:$0xff]  }
  0x15   :  { %1500 = vmatpush3.bf16.msra.mxu1 %v1684_v19  ;;  %1437 = vmatprep.subr.bf16.mxu0 %v1685_v20  ;;  %v1731_v59 = vld [vmem:[%s2275_s0 + $0xec] ss:$28 sps:$4 sm:$0xff]   ;;  %v1733_v62 = vld [vmem:[%s2275_s0 + $0xe0] ss:$28 sps:$4 sm:$0xff]   ;;  %v1751_v0 = vld [vmem:[%s2274_s1 + $0x170] sm:$0xff]  }
  0x16   :  { %1501 = vmatprep.subr.bf16.mxu1 %v1686_v21  ;;  %v1743_v60 = vld [vmem:[%s2274_s1 + $0x168] sm:$0xff]   ;;  %v1752_v1 = vld [vmem:[%s2274_s1 + $0x130] sm:$0xff]   ;;  %v1739_v3 = vld [vmem:[%s2275_s0 + $0x124] ss:$28 sps:$4 sm:$0xff]  }
  0x17   :  { %v1744_v61 = vld [vmem:[%s2274_s1 + $0x128] sm:$0xff]   ;;  %v1759_v4 = vld [vmem:[%s2274_s1 + $0x178] sm:$0xff]   ;;  %v1767_v8 = vld [vmem:[%s2274_s1 + $0x180] sm:$0xff]  }
  0x18   :  { %1438 = vmatpush3.bf16.msra.mxu0 %v1687_v22  ;;  %v1734_v63 = vld [vmem:[%s2275_s0 + $0xe8] ss:$28 sps:$4 sm:$0xff]   ;;  %v1760_v5 = vld [vmem:[%s2274_s1 + $0x138] sm:$0xff]   ;;  %v1745_v9 = vld [vmem:[%s2275_s0 + $0x154] ss:$28 sps:$4 sm:$0xff]  }
  0x19   :  { %1502 = vmatpush3.bf16.msra.mxu1 %v1688_v23  ;;  %1439 = vmatprep.subr.bf16.mxu0 %v1689_v24  ;;  %v1741_v6 = vld [vmem:[%s2275_s0 + $0x118] ss:$28 sps:$4 sm:$0xff]   ;;  %v1742_v7 = vld [vmem:[%s2275_s0 + $0x120] ss:$28 sps:$4 sm:$0xff]   ;;  %v1749_v11 = vld [vmem:[%s2275_s0 + $0x150] ss:$28 sps:$4 sm:$0xff]  }
  0x1a   :  { %1503 = vmatprep.subr.bf16.mxu1 %v1690_v25  ;;  %v1747_v10 = vld [vmem:[%s2275_s0 + $0x15c] ss:$28 sps:$4 sm:$0xff]   ;;  %v1753_v13 = vld [vmem:[%s2275_s0 + $0x18c] ss:$28 sps:$4 sm:$0xff]   ;;  %v1755_v14 = vld [vmem:[%s2275_s0 + $0x194] ss:$28 sps:$4 sm:$0xff]  }
  0x1b   :  { %v1750_v12 = vld [vmem:[%s2275_s0 + $0x158] ss:$28 sps:$4 sm:$0xff]   ;;  %v1757_v15 = vld [vmem:[%s2275_s0 + $0x188] ss:$28 sps:$4 sm:$0xff]   ;;  %v1758_v16 = vld [vmem:[%s2275_s0 + $0x190] ss:$28 sps:$4 sm:$0xff]  }
  0x1c   :  { %1440 = vmatpush3.bf16.msra.mxu0 %v1691_v26  ;;  %v1763_v17 = vld [vmem:[%s2275_s0 + $0x14] ss:$28 sps:$4 sm:$0xff]   ;;  %v1766_v18 = vld [vmem:[%s2275_s0 + $0x164] ss:$28 sps:$4 sm:$0xff]   ;;  %v1768_v21 = vld [vmem:[%s2275_s0 + $0x4c] ss:$28 sps:$4 sm:$0xff]  }
  0x1d   :  { %1504 = vmatpush3.bf16.msra.mxu1 %v1692_v27  ;;  %1441 = vmatprep.subr.bf16.mxu0 %v1693_v28  ;;  %v1761_v19 = vld [vmem:[%s2275_s0 + $0x10] ss:$28 sps:$4 sm:$0xff]   ;;  %v1764_v20 = vld [vmem:[%s2275_s0 + $0x160] ss:$28 sps:$4 sm:$0xff]   ;;  %v1772_v24 = vld [vmem:[%s2275_s0 + $0x48] ss:$28 sps:$4 sm:$0xff]  }
  0x1e   :  { %1505 = vmatprep.subr.bf16.mxu1 %v1694_v29  ;;  %v1770_v22 = vld [vmem:[%s2275_s0 + $0x19c] ss:$28 sps:$4 sm:$0xff]   ;;  %v1774_v23 = vld [vmem:[%s2274_s1 + $0x188] sm:$0xff]   ;;  %v1775_v26 = vld [vmem:[%s2275_s0 + $0x84] ss:$28 sps:$4 sm:$0xff]  }
  0x1f   :  { %v1773_v25 = vld [vmem:[%s2275_s0 + $0x198] ss:$28 sps:$4 sm:$0xff]   ;;  %v1778_v28 = vld [vmem:[%s2275_s0 + $0x80] ss:$28 sps:$4 sm:$0xff]   ;;  %v1779_v29 = vld [vmem:[%s2275_s0 + $0x50] ss:$28 sps:$4 sm:$0xff]  }
  0x20   :  { %1442 = vmatpush3.bf16.msra.mxu0 %v1695_v30  ;;  %v1777_v27 = vld [vmem:[%s2275_s0 + $0x18] ss:$28 sps:$4 sm:$0xff]   ;;  %v1784_v33 = vld [vmem:[%s2275_s0 + $0xc0] ss:$28 sps:$4 sm:$0xff]  }
  0x21   :  { %1506 = vmatpush3.bf16.msra.mxu1 %v1696_v31  ;;  %1555 = vmatprep.subr.bf16.mxu0 %v1703_v36  ;;  %v1780_v30 = vld [vmem:[%s2275_s0 + $0xbc] ss:$28 sps:$4 sm:$0xff]   ;;  %v1782_v31 = vld [vmem:[%s2275_s0 + $0x88] ss:$28 sps:$4 sm:$0xff]  }
  0x22   :  { %1649 = vmatprep.subr.bf16.mxu1 %v1703_v36  ;;  %v1787_v35 = vld [vmem:[%s2275_s0 + $0xf8] ss:$28 sps:$4 sm:$0xff]   ;;  %v1788_v36 = vld [vmem:[%s2275_s0 + $0xf0] ss:$28 sps:$4 sm:$0xff]  }
  0x23   :  { %824 = vmatmul.mubr.bf16.vlgmr.msra.gmra.mrb[0].mxu0 %v1697_v32  ;;  %v1783_v32 = vld [vmem:[%s2275_s0 + $0xb8] ss:$28 sps:$4 sm:$0xff]  }
  0x24   :  { %921 = vmatmul.mubr.bf16.vlgmr.msra.gmra.mrb[0].mxu1 %v1700_v34  ;;  %1556 = vmatpush3.bf16.msra.mxu0 %v1704_v37  ;;  %v1785_v34 = vld [vmem:[%s2275_s0 + $0xf4] ss:$28 sps:$4 sm:$0xff]  }
  0x25   :  { %1657 = vmatpush3.bf16.msra.mxu1 %v1704_v37  ;;  %831 = vmatprep.mubr.bf16.mxu0 %v1705_v38  ;;  %v1789_v37 = vld [vmem:[%s2275_s0 + $0x130] ss:$28 sps:$4 sm:$0xff]  }
  0x26   :  { %928 = vmatprep.mubr.bf16.mxu1 %v1707_v39  ;;  %1557 = vmatprep.subr.bf16.mxu0 %v1711_v42  ;;  %v1790_v38 = vld [vmem:[%s2275_s0 + $0x12c] ss:$28 sps:$4 sm:$0xff]  }
  0x27   :  { %1650 = vmatprep.subr.bf16.mxu1 %v1711_v42  ;;  %v1792_v39 = vld [vmem:[%s2275_s0 + $0x168] ss:$28 sps:$4 sm:$0xff]  }
  0x28   :  { %1558 = vmatpush3.bf16.msra.mxu0 %v1712_v43 }
  0x29   :  { %1658 = vmatpush3.bf16.msra.mxu1 %v1712_v43  ;;  %1559 = vmatprep.subr.bf16.mxu0 %v1719_v46  ;;  %v2144_v43 = vld [vmem:[%s2276_s2] ss:$0 sm:$0xff] }
  0x2a   :  { %1651 = vmatprep.subr.bf16.mxu1 %v1719_v46 }
  0x2b   :  { %832 = vmatmul.mubr.bf16.gmra.mrb[4].mxu0 %v1709_v40  ;;  %v1793_v40 = vld [vmem:[%s2275_s0 + $0x128] ss:$28 sps:$4 sm:$0xff]  }
  0x2c   :  { %929 = vmatmul.mubr.bf16.gmra.mrb[4].mxu1 %v1710_v41  ;;  %839 = vmatprep.mubr.bf16.mxu0 %v1713_v44  ;;  %v1794_v41 = vld [vmem:[%s2275_s0 + $0x1a0] ss:$28 sps:$4 sm:$0xff]  }
  0x2d   :  { %936 = vmatprep.mubr.bf16.mxu1 %v1715_v45  ;;  %1560 = vmatpush3.bf16.msra.mxu0 %v1720_v47 }
  0x2e   :  { %1659 = vmatpush3.bf16.msra.mxu1 %v1720_v47  ;;  %1561 = vmatprep.subr.bf16.mxu0 %v1727_v52 }
  0x2f   :  { %1652 = vmatprep.subr.bf16.mxu1 %v1727_v52 }
  0x31   :  { %1562 = vmatpush3.bf16.msra.mxu0 %v1728_v53 }
  0x32   :  { %1660 = vmatpush3.bf16.msra.mxu1 %v1728_v53  ;;  %1563 = vmatprep.subr.bf16.mxu0 %v1735_v54 }
  0x33   :  { %840 = vmatmul.mubr.bf16.gmra.mrb[8].mxu0 %v1717_v48  ;;  %1653 = vmatprep.subr.bf16.mxu1 %v1735_v54 }
  0x34   :  { %937 = vmatmul.mubr.bf16.gmra.mrb[8].mxu1 %v1718_v49  ;;  %847 = vmatprep.mubr.bf16.mxu0 %v1721_v50 }
  0x35   :  { %944 = vmatprep.mubr.bf16.mxu1 %v1723_v51  ;;  %1564 = vmatpush3.bf16.msra.mxu0 %v1736_v55 }
  0x36   :  { %1661 = vmatpush3.bf16.msra.mxu1 %v1736_v55  ;;  %1565 = vmatprep.subr.bf16.mxu0 %v1743_v60 }
  0x37   :  { %1654 = vmatprep.subr.bf16.mxu1 %v1743_v60 }
  0x39   :  { %1566 = vmatpush3.bf16.msra.mxu0 %v1744_v61 }
  0x3a   :  { %1662 = vmatpush3.bf16.msra.mxu1 %v1744_v61  ;;  %1567 = vmatprep.subr.bf16.mxu0 %v1751_v0 }
  0x3b   :  { %848 = vmatmul.mubr.bf16.gmra.mrb[12].mxu0 %v1725_v56  ;;  %1655 = vmatprep.subr.bf16.mxu1 %v1751_v0 }
  0x3c   :  { %945 = vmatmul.mubr.bf16.gmra.mrb[12].mxu1 %v1726_v57  ;;  %855 = vmatprep.mubr.bf16.mxu0 %v1729_v58 }
  0x3d   :  { %952 = vmatprep.mubr.bf16.mxu1 %v1731_v59  ;;  %1568 = vmatpush3.bf16.msra.mxu0 %v1752_v1 }
  0x3e   :  { %1663 = vmatpush3.bf16.msra.mxu1 %v1752_v1  ;;  %1569 = vmatprep.subr.bf16.mxu0 %v1759_v4 }
  0x3f   :  { %1656 = vmatprep.subr.bf16.mxu1 %v1759_v4 }
  0x41   :  { %1570 = vmatpush3.bf16.msra.mxu0 %v1760_v5 }
  0x42   :  { %1664 = vmatpush3.bf16.msra.mxu1 %v1760_v5 }
  0x43   :  { %856 = vmatmul.mubr.bf16.gmra.mrb[16].mxu0 %v1733_v62  ;;  %1629 = vmatprep.subr.bf16.mxu1 %v1767_v8 }
  0x44   :  { %953 = vmatmul.mubr.bf16.gmra.mrb[16].mxu1 %v1734_v63  ;;  %863 = vmatprep.mubr.bf16.mxu0 %v1737_v2 }
  0x45   :  { %960 = vmatprep.mubr.bf16.mxu1 %v1739_v3 }
  0x4b   :  { %864 = vmatmul.mubr.bf16.gmra.mrb[20].mxu0 %v1741_v6 }
  0x4c   :  { %961 = vmatmul.mubr.bf16.gmra.mrb[20].mxu1 %v1742_v7  ;;  %871 = vmatprep.mubr.bf16.mxu0 %v1745_v9 }
  0x4d   :  { %968 = vmatprep.mubr.bf16.mxu1 %v1747_v10 }
  0x53   :  { %872 = vmatmul.mubr.bf16.gmra.mrb[24].mxu0 %v1749_v11 }
  0x54   :  { %969 = vmatmul.mubr.bf16.gmra.mrb[24].mxu1 %v1750_v12  ;;  %879 = vmatprep.mubr.bf16.mxu0 %v1753_v13 }
  0x55   :  { %976 = vmatprep.mubr.bf16.mxu1 %v1755_v14 }
  0x5b   :  { %880 = vmatmul.mubr.bf16.gmra.mrb[28].mxu0 %v1757_v15 }
  0x5c   :  { %977 = vmatmul.mubr.bf16.gmra.mrb[28].mxu1 %v1758_v16  ;;  %1017 = vmatprep.mubr.bf16.mxu0 %v1763_v17 }
  0x5d   :  { %1065 = vmatprep.mubr.bf16.mxu1 %v1766_v18 }
  0x63   :  { %1018 = vmatmul.mubr.bf16.vlgmr.msra.gmra.mrb[32].mxu0 %v1761_v19 }
  0x64   :  { %1066 = vmatmul.mubr.bf16.vlgmr.msra.gmra.mrb[32].mxu1 %v1764_v20  ;;  %1025 = vmatprep.mubr.bf16.mxu0 %v1768_v21 }
  0x65   :  { %1630 = vmatpush3.bf16.msra.mxu1 %v1767_v8  ;;  %1073 = vmatprep.mubr.bf16.mxu1 %v1770_v22 }
  0x66   :  { %1631 = vmatprep.subr.bf16.mxu1 %v1774_v23 }
  0x69   :  { %1632 = vmatpush3.bf16.msra.mxu1 %v1774_v23 }
  0x6b   :  { %1026 = vmatmul.mubr.bf16.gmra.mrb[36].mxu0 %v1772_v24 }
  0x6c   :  { %1074 = vmatmul.mubr.bf16.gmra.mrb[36].mxu1 %v1773_v25  ;;  %1033 = vmatprep.mubr.bf16.mxu0 %v1775_v26 }
  0x6d   :  { %1633 = vmatprep.mubr.msk.bf16.mxu1 %vm766_vm0, %v1777_v27 }
  0x73   :  { %1034 = vmatmul.mubr.bf16.gmra.mrb[40].mxu0 %v1778_v28 }
  0x74   :  { %1634 = vmatmul.mubr.msk.bf16.vlgmr.msra.gmra.mrb[40].mxu1 %vm766_vm0, %v1779_v29  ;;  %1041 = vmatprep.mubr.bf16.mxu0 %v1780_v30 }
  0x75   :  { %1637 = vmatprep.mubr.msk.bf16.mxu1 %vm766_vm0, %v1782_v31 }
  0x7b   :  { %1042 = vmatmul.mubr.bf16.gmra.mrb[44].mxu0 %v1783_v32 }
  0x7c   :  { %1638 = vmatmul.mubr.msk.bf16.gmra.mrb[44].mxu1 %vm766_vm0, %v1784_v33  ;;  %1049 = vmatprep.mubr.bf16.mxu0 %v1785_v34 }
  0x7d   :  { %1641 = vmatprep.mubr.msk.bf16.mxu1 %vm766_vm0, %v1787_v35 }
  0x83   :  { %1050 = vmatmul.mubr.bf16.gmra.mrb[48].mxu0 %v1788_v36 }
  0x84   :  { %1642 = vmatmul.mubr.msk.bf16.gmra.mrb[48].mxu1 %vm766_vm0, %v1789_v37  ;;  %1057 = vmatprep.mubr.bf16.mxu0 %v1790_v38 }
  0x85   :  { %1645 = vmatprep.mubr.msk.bf16.mxu1 %vm766_vm0, %v1792_v39 }
  0x8b   :  { %1058 = vmatmul.mubr.bf16.gmra.mrb[52].mxu0 %v1793_v40 }
  0x8c   :  { %1646 = vmatmul.mubr.msk.bf16.gmra.mrb[52].mxu1 %vm766_vm0, %v1794_v41 }
  0xf6   :  { %v1443_v42 = vpop.f32.mrb[0].mxu0 }
  0xf7   :  { %v1444_v44 = vpop.f32.mrb[1].mxu0  ;;  %v1507_v45 = vpop.f32.mrb[0].mxu1 }
  0xf8   :  { %v1445_v46 = vadd.f32 %v1444_v44, %v1443_v42  ;;  %v1446_v47 = vpop.f32.mrb[2].mxu0  ;;  %v1508_v48 = vpop.f32.mrb[1].mxu1 }
  0xf9   :  { %v1447_v49 = vpop.f32.mrb[3].mxu0  ;;  %v1509_v50 = vadd.f32 %v1508_v48, %v1507_v45  ;;  %v1510_v51 = vpop.f32.mrb[2].mxu1 }
  0xfa   :  { %v826_v52 = vadd.f32 %v1445_v46, %v2144_v43  ;;  %v1448_v53 = vadd.f32 %v1447_v49, %v1446_v47  ;;  %v1511_v54 = vpop.f32.mrb[3].mxu1 }
  0xfb   :  { %v1512_v55 = vadd.f32 %v1511_v54, %v1510_v51 }
  0xfc   :  { %v829_v56 = vadd.f32 %v1448_v53, %v2144_v43  ;;  %v2148_v57 = vadd.f32 %v1509_v50, %v826_v52 }
  0xfe   :  { %v2150_v58 = vadd.f32 %v1512_v55, %v829_v56  ;;  %v1449_v59 = vpop.f32.mrb[4].mxu0 }
  0xff   :  { %v1450_v60 = vpop.f32.mrb[5].mxu0  ;;  %v1513_v61 = vpop.f32.mrb[4].mxu1 }
 0x100   :  { %v1451_v62 = vadd.f32 %v1450_v60, %v1449_v59  ;;  %v1452_v63 = vpop.f32.mrb[6].mxu0  ;;  %v1514_v0 = vpop.f32.mrb[5].mxu1 }
 0x101   :  { %v1453_v1 = vpop.f32.mrb[7].mxu0  ;;  %v1515_v2 = vadd.f32 %v1514_v0, %v1513_v61  ;;  %v1516_v3 = vpop.f32.mrb[6].mxu1 }
 0x102   :  { %v834_v4 = vadd.f32 %v1451_v62, %v2144_v43  ;;  %v1454_v5 = vadd.f32 %v1453_v1, %v1452_v63  ;;  %v1517_v6 = vpop.f32.mrb[7].mxu1 }
 0x103   :  { %v1518_v7 = vadd.f32 %v1517_v6, %v1516_v3 }
 0x104   :  { %v837_v8 = vadd.f32 %v1454_v5, %v2144_v43  ;;  %v2154_v9 = vadd.f32 %v1515_v2, %v834_v4 }
 0x106   :  { %v2156_v10 = vadd.f32 %v1518_v7, %v837_v8  ;;  %v1455_v11 = vpop.f32.mrb[8].mxu0 }
 0x107   :  { %v1456_v12 = vpop.f32.mrb[9].mxu0  ;;  %v1519_v13 = vpop.f32.mrb[8].mxu1 }
 0x108   :  { %v1457_v14 = vadd.f32 %v1456_v12, %v1455_v11  ;;  %v1458_v15 = vpop.f32.mrb[10].mxu0  ;;  %v1520_v16 = vpop.f32.mrb[9].mxu1 }
 0x109   :  { %v1459_v17 = vpop.f32.mrb[11].mxu0  ;;  %v1521_v18 = vadd.f32 %v1520_v16, %v1519_v13  ;;  %v1522_v19 = vpop.f32.mrb[10].mxu1 }
 0x10a   :  { %v842_v20 = vadd.f32 %v1457_v14, %v2144_v43  ;;  %v1460_v21 = vadd.f32 %v1459_v17, %v1458_v15  ;;  %v1523_v22 = vpop.f32.mrb[11].mxu1 }
 0x10b   :  { %v1524_v23 = vadd.f32 %v1523_v22, %v1522_v19 }
 0x10c   :  { %v845_v24 = vadd.f32 %v1460_v21, %v2144_v43  ;;  %v2160_v25 = vadd.f32 %v1521_v18, %v842_v20 }
 0x10e   :  { %v2162_v26 = vadd.f32 %v1524_v23, %v845_v24  ;;  %v1461_v27 = vpop.f32.mrb[12].mxu0 }
 0x10f   :  { %v1462_v28 = vpop.f32.mrb[13].mxu0  ;;  %v1525_v29 = vpop.f32.mrb[12].mxu1 }
 0x110   :  { %v1463_v30 = vadd.f32 %v1462_v28, %v1461_v27  ;;  %v1464_v31 = vpop.f32.mrb[14].mxu0  ;;  %v1526_v32 = vpop.f32.mrb[13].mxu1 }
 0x111   :  { %v1465_v33 = vpop.f32.mrb[15].mxu0  ;;  %v1527_v34 = vadd.f32 %v1526_v32, %v1525_v29  ;;  %v1528_v35 = vpop.f32.mrb[14].mxu1 }
 0x112   :  { %v850_v36 = vadd.f32 %v1463_v30, %v2144_v43  ;;  %v1466_v37 = vadd.f32 %v1465_v33, %v1464_v31  ;;  %v1529_v38 = vpop.f32.mrb[15].mxu1 }
 0x113   :  { %v1530_v39 = vadd.f32 %v1529_v38, %v1528_v35 }
 0x114   :  { %v853_v40 = vadd.f32 %v1466_v37, %v2144_v43  ;;  %v2166_v41 = vadd.f32 %v1527_v34, %v850_v36 }
 0x116   :  { %v2168_v42 = vadd.f32 %v1530_v39, %v853_v40  ;;  %v1467_v44 = vpop.f32.mrb[16].mxu0 }
 0x117   :  { %v1468_v45 = vpop.f32.mrb[17].mxu0  ;;  %v1531_v46 = vpop.f32.mrb[16].mxu1 }
 0x118   :  { %v1469_v47 = vadd.f32 %v1468_v45, %v1467_v44  ;;  %v1470_v48 = vpop.f32.mrb[18].mxu0  ;;  %v1532_v49 = vpop.f32.mrb[17].mxu1 }
 0x119   :  { %v1471_v50 = vpop.f32.mrb[19].mxu0  ;;  %v1533_v51 = vadd.f32 %v1532_v49, %v1531_v46  ;;  %v1534_v52 = vpop.f32.mrb[18].mxu1 }
 0x11a   :  { %v858_v53 = vadd.f32 %v1469_v47, %v2144_v43  ;;  %v1472_v54 = vadd.f32 %v1471_v50, %v1470_v48  ;;  %v1535_v55 = vpop.f32.mrb[19].mxu1 }
 0x11b   :  { %v1536_v56 = vadd.f32 %v1535_v55, %v1534_v52 }
 0x11c   :  { %v861_v59 = vadd.f32 %v1472_v54, %v2144_v43  ;;  %v2172_v60 = vadd.f32 %v1533_v51, %v858_v53 }
 0x11e   :  { %v2174_v61 = vadd.f32 %v1536_v56, %v861_v59  ;;  %v1473_v62 = vpop.f32.mrb[20].mxu0 }
 0x11f   :  { %v1474_v63 = vpop.f32.mrb[21].mxu0  ;;  %v1537_v0 = vpop.f32.mrb[20].mxu1 }
 0x120   :  { %v1475_v1 = vadd.f32 %v1474_v63, %v1473_v62  ;;  %v1476_v2 = vpop.f32.mrb[22].mxu0  ;;  %v1538_v3 = vpop.f32.mrb[21].mxu1 }
 0x121   :  { %v1477_v4 = vpop.f32.mrb[23].mxu0  ;;  %v1539_v5 = vadd.f32 %v1538_v3, %v1537_v0  ;;  %v1540_v6 = vpop.f32.mrb[22].mxu1 }
 0x122   :  { %v866_v7 = vadd.f32 %v1475_v1, %v2144_v43  ;;  %v1478_v8 = vadd.f32 %v1477_v4, %v1476_v2  ;;  %v1541_v11 = vpop.f32.mrb[23].mxu1 }
 0x123   :  { %v1542_v12 = vadd.f32 %v1541_v11, %v1540_v6 }
 0x124   :  { %v869_v13 = vadd.f32 %v1478_v8, %v2144_v43  ;;  %v2178_v14 = vadd.f32 %v1539_v5, %v866_v7 }
 0x126   :  { %v2180_v15 = vadd.f32 %v1542_v12, %v869_v13  ;;  %v1479_v16 = vpop.f32.mrb[24].mxu0 }
 0x127   :  { %v1480_v17 = vpop.f32.mrb[25].mxu0  ;;  %v1543_v18 = vpop.f32.mrb[24].mxu1 }
 0x128   :  { %v1481_v19 = vadd.f32 %v1480_v17, %v1479_v16  ;;  %v1482_v20 = vpop.f32.mrb[26].mxu0  ;;  %v1544_v21 = vpop.f32.mrb[25].mxu1 }
 0x129   :  { %v1483_v22 = vpop.f32.mrb[27].mxu0  ;;  %v1545_v23 = vadd.f32 %v1544_v21, %v1543_v18  ;;  %v1546_v24 = vpop.f32.mrb[26].mxu1 }
 0x12a   :  { %v874_v27 = vadd.f32 %v1481_v19, %v2144_v43  ;;  %v1484_v28 = vadd.f32 %v1483_v22, %v1482_v20  ;;  %v1547_v29 = vpop.f32.mrb[27].mxu1 }
 0x12b   :  { %v1548_v30 = vadd.f32 %v1547_v29, %v1546_v24 }
 0x12c   :  { %v877_v31 = vadd.f32 %v1484_v28, %v2144_v43  ;;  %v971_v32 = vadd.f32 %v1545_v23, %v874_v27 }
 0x12e   :  { %v974_v33 = vadd.f32 %v1548_v30, %v877_v31  ;;  %v1485_v34 = vpop.f32.mrb[28].mxu0 }
 0x12f   :  { %v1486_v35 = vpop.f32.mrb[29].mxu0  ;;  %v1549_v36 = vpop.f32.mrb[28].mxu1 }
 0x130   :  { %v1487_v37 = vadd.f32 %v1486_v35, %v1485_v34  ;;  %v1488_v38 = vpop.f32.mrb[30].mxu0  ;;  %v1550_v39 = vpop.f32.mrb[29].mxu1 }
 0x131   :  { %v1489_v40 = vpop.f32.mrb[31].mxu0  ;;  %v1551_v44 = vadd.f32 %v1550_v39, %v1549_v36  ;;  %v1552_v45 = vpop.f32.mrb[30].mxu1 }
 0x132   :  { %v882_v46 = vadd.f32 %v1487_v37, %v2144_v43  ;;  %v1490_v47 = vadd.f32 %v1489_v40, %v1488_v38  ;;  %v1553_v48 = vpop.f32.mrb[31].mxu1 }
 0x133   :  { %v1554_v49 = vadd.f32 %v1553_v48, %v1552_v45 }
 0x134   :  { %v885_v50 = vadd.f32 %v1490_v47, %v2144_v43  ;;  %v979_v51 = vadd.f32 %v1551_v44, %v882_v46 }
 0x136   :  { %v982_v52 = vadd.f32 %v1554_v49, %v885_v50  ;;  %v1571_v53 = vpop.f32.mrb[32].mxu0 }
 0x137   :  { %v1607_v54 = vpop.f32.mrb[32].mxu1  ;;  %v1572_v55 = vpop.f32.mrb[33].mxu0 }
 0x138   :  { %v1573_v56 = vadd.f32 %v1572_v55, %v1571_v53  ;;  %v1608_v59 = vpop.f32.mrb[33].mxu1  ;;  %v1574_v62 = vpop.f32.mrb[34].mxu0 }
 0x139   :  { %v1609_v63 = vadd.f32 %v1608_v59, %v1607_v54  ;;  %v1610_v0 = vpop.f32.mrb[34].mxu1  ;;  %v1575_v1 = vpop.f32.mrb[35].mxu0 }
 0x13a   :  { %v1576_v2 = vadd.f32 %v1575_v1, %v1574_v62  ;;  %v1611_v3 = vpop.f32.mrb[35].mxu1  ;;  %v1020_v4 = vadd.f32 %v1573_v56, %v2148_v57 }
 0x13b   :  { %v1612_v5 = vadd.f32 %v1611_v3, %v1610_v0  ;;  %v2187_v6 = vadd.f32 %v1609_v63, %v971_v32 }
 0x13c   :  { %v1023_v43 = vadd.f32 %v1576_v2, %v2150_v58 }
 0x13d   :  { %v2190_v7 = vadd.f32 %v1612_v5, %v974_v33 }
 0x13e   :  { %v1577_v8 = vpop.f32.mrb[36].mxu0 }
 0x13f   :  { %v1613_v11 = vpop.f32.mrb[36].mxu1  ;;  %v1578_v12 = vpop.f32.mrb[37].mxu0 }
 0x140   :  { %v1579_v13 = vadd.f32 %v1578_v12, %v1577_v8  ;;  %v1614_v16 = vpop.f32.mrb[37].mxu1  ;;  %v1580_v17 = vpop.f32.mrb[38].mxu0 }
 0x141   :  { %v1615_v18 = vadd.f32 %v1614_v16, %v1613_v11  ;;  %v1616_v19 = vpop.f32.mrb[38].mxu1  ;;  %v1581_v20 = vpop.f32.mrb[39].mxu0 }
 0x142   :  { %v1582_v21 = vadd.f32 %v1581_v20, %v1580_v17  ;;  %v1617_v22 = vpop.f32.mrb[39].mxu1  ;;  %v1028_v57 = vadd.f32 %v1579_v13, %v2154_v9 }
 0x143   :  { %v1618_v23 = vadd.f32 %v1617_v22, %v1616_v19  ;;  %v2193_v24 = vadd.f32 %v1615_v18, %v979_v51 }
 0x144   :  { %v1031_v58 = vadd.f32 %v1582_v21, %v2156_v10 }
 0x145   :  { %v2196_v27 = vadd.f32 %v1618_v23, %v982_v52 }
 0x146   :  { %v1583_v28 = vpop.f32.mrb[40].mxu0 }
 0x147   :  { %v1635_v29 = vpop.f32.mrb[40].mxu1  ;;  %v1584_v30 = vpop.f32.mrb[41].mxu0 }
 0x148   :  { %v1125_v31 = vadd.f32 %v1635_v29, %v1028_v57  ;;  %v1585_v32 = vadd.f32 %v1584_v30, %v1583_v28  ;;  %v1116_v33 = vpop.f32.mrb[41].mxu1  ;;  %v1586_v34 = vpop.f32.mrb[42].mxu0 }
 0x149   :  { %v1117_v35 = vadd.f32 %v1116_v33, %v1020_v4  ;;  %v1636_v36 = vpop.f32.mrb[42].mxu1  ;;  %v1587_v37 = vpop.f32.mrb[43].mxu0 }
 0x14a   :  { %v1181_v38 = vmax.f32 %v1125_v31, 0.0  ;;  %v1128_v39 = vadd.f32 %v1636_v36, %v1031_v58  ;;  %v1588_v9 = vadd.f32 %v1587_v37, %v1586_v34  ;;  %v1119_v40 = vpop.f32.mrb[43].mxu1  ;;  %v1036_v44 = vadd.f32 %v1585_v32, %v2160_v25 }
 0x14b   :  { %v1179_v10 = vmax.f32 %v1117_v35, 0.0  ;;  %v1120_v45 = vadd.f32 %v1119_v40, %v1023_v43 }
 0x14c   :  { %v1413_v46 = vpack.c.bf16 %v1181_v38, %v1181_v38  ;;  %v1182_v47 = vmax.f32 %v1128_v39, 0.0  ;;  %v1039_v48 = vadd.f32 %v1588_v9, %v2162_v26 }
 0x14d   :  { %v1411_v49 = vpack.c.bf16 %v1179_v10, %v1179_v10  ;;  %v1180_v50 = vmax.f32 %v1120_v45, 0.0 }
 0x14e   :  { %1262 = vst.msk [vmem:[%s2277_s3 + $0x8] sm:$0xf] %vm1259_vm1, %v1413_v46  ;;  %v1414_v51 = vpack.c.bf16 %v1182_v47, %v1182_v47  ;;  %v1589_v52 = vpop.f32.mrb[44].mxu0 }
 0x14f   :  { %1260 = vst.msk [vmem:[%s2277_s3] sm:$0xf] %vm1259_vm1, %v1411_v49  ;;  %v1412_v25 = vpack.c.bf16 %v1180_v50, %v1180_v50  ;;  %v1639_v53 = vpop.f32.mrb[44].mxu1  ;;  %v1590_v54 = vpop.f32.mrb[45].mxu0 }
 0x150   :  { %1263 = vst.msk [vmem:[%s2277_s3 + $0xc] sm:$0xf] %vm1259_vm1, %v1414_v51  ;;  %v1591_v26 = vadd.f32 %v1590_v54, %v1589_v52  ;;  %v1132_v55 = vpop.f32.mrb[45].mxu1  ;;  %v1592_v56 = vpop.f32.mrb[46].mxu0 }
 0x151   :  { %1261 = vst.msk [vmem:[%s2277_s3 + $0x4] sm:$0xf] %vm1259_vm1, %v1412_v25  ;;  %v1133_v59 = vadd.f32 %v1132_v55, %v1036_v44  ;;  %v1640_v62 = vpop.f32.mrb[46].mxu1  ;;  %v1593_v63 = vpop.f32.mrb[47].mxu0 }
 0x152   :  { %v1044_v0 = vadd.f32 %v1591_v26, %v2166_v41  ;;  %v1594_v1 = vadd.f32 %v1593_v63, %v1592_v56  ;;  %v1135_v2 = vpop.f32.mrb[47].mxu1 }
 0x153   :  { %v1183_v3 = vmax.f32 %v1133_v59, 0.0  ;;  %v1136_v4 = vadd.f32 %v1135_v2, %v1039_v48 }
 0x154   :  { %v1141_v5 = vadd.f32 %v1639_v53, %v1044_v0  ;;  %v1047_v43 = vadd.f32 %v1594_v1, %v2168_v42 }
 0x155   :  { %v1415_v8 = vpack.c.bf16 %v1183_v3, %v1183_v3  ;;  %v1184_v11 = vmax.f32 %v1136_v4, 0.0 }
 0x156   :  { %v1185_v12 = vmax.f32 %v1141_v5, 0.0  ;;  %v1144_v13 = vadd.f32 %v1640_v62, %v1047_v43  ;;  %v1595_v16 = vpop.f32.mrb[48].mxu0 }
 0x157   :  { %1264 = vst.msk [vmem:[%s2277_s3 + $0x10] sm:$0xf] %vm1259_vm1, %v1415_v8  ;;  %v1416_v17 = vpack.c.bf16 %v1184_v11, %v1184_v11  ;;  %v1596_v18 = vpop.f32.mrb[49].mxu0  ;;  %v1643_v41 = vpop.f32.mrb[48].mxu1 }
 0x158   :  { %v1417_v19 = vpack.c.bf16 %v1185_v12, %v1185_v12  ;;  %v1186_v20 = vmax.f32 %v1144_v13, 0.0  ;;  %v1597_v21 = vadd.f32 %v1596_v18, %v1595_v16  ;;  %v1598_v22 = vpop.f32.mrb[50].mxu0  ;;  %v1148_v57 = vpop.f32.mrb[49].mxu1 }
 0x159   :  { %1265 = vst.msk [vmem:[%s2277_s3 + $0x14] sm:$0xf] %vm1259_vm1, %v1416_v17  ;;  %v1599_v42 = vpop.f32.mrb[51].mxu0  ;;  %v1644_v23 = vpop.f32.mrb[50].mxu1 }
 0x15a   :  { %1266 = vst.msk [vmem:[%s2277_s3 + $0x18] sm:$0xf] %vm1259_vm1, %v1417_v19  ;;  %v1418_v58 = vpack.c.bf16 %v1186_v20, %v1186_v20  ;;  %v1600_v28 = vadd.f32 %v1599_v42, %v1598_v22  ;;  %v1052_v29 = vadd.f32 %v1597_v21, %v2172_v60  ;;  %v1151_v30 = vpop.f32.mrb[51].mxu1 }
 0x15c   :  { %1267 = vst.msk [vmem:[%s2277_s3 + $0x1c] sm:$0xf] %vm1259_vm1, %v1418_v58  ;;  %v1149_v31 = vadd.f32 %v1148_v57, %v1052_v29  ;;  %v1055_v32 = vadd.f32 %v1600_v28, %v2174_v61 }
 0x15e   :  { %v1187_v33 = vmax.f32 %v1149_v31, 0.0  ;;  %v1152_v34 = vadd.f32 %v1151_v30, %v1055_v32  ;;  %v1601_v35 = vpop.f32.mrb[52].mxu0 }
 0x15f   :  { %v1647_v36 = vpop.f32.mrb[52].mxu1  ;;  %v1602_v37 = vpop.f32.mrb[53].mxu0 }
 0x160   :  { %v1419_v38 = vpack.c.bf16 %v1187_v33, %v1187_v33  ;;  %v1188_v39 = vmax.f32 %v1152_v34, 0.0  ;;  %v1173_v9 = vadd.f32 %v1647_v36, %v2193_v24  ;;  %v1603_v40 = vadd.f32 %v1602_v37, %v1601_v35  ;;  %v1164_v60 = vpop.f32.mrb[53].mxu1  ;;  %v1604_v44 = vpop.f32.mrb[54].mxu0 }
 0x161   :  { %v1165_v10 = vadd.f32 %v1164_v60, %v2187_v6  ;;  %v1648_v45 = vpop.f32.mrb[54].mxu1  ;;  %v1605_v46 = vpop.f32.mrb[55].mxu0 }
 0x162   :  { %1268 = vst.msk [vmem:[%s2277_s3 + $0x20] sm:$0xf] %vm1259_vm1, %v1419_v38  ;;  %v1420_v61 = vpack.c.bf16 %v1188_v39, %v1188_v39  ;;  %v1193_v47 = vmax.f32 %v1173_v9, 0.0  ;;  %v1060_v48 = vadd.f32 %v1603_v40, %v2178_v14  ;;  %v1176_v49 = vadd.f32 %v1648_v45, %v2196_v27  ;;  %v1167_v50 = vpop.f32.mrb[55].mxu1 }
 0x163   :  { %v1191_v24 = vmax.f32 %v1165_v10, 0.0  ;;  %v1606_v51 = vadd.f32 %v1605_v46, %v1604_v44  ;;  %v1168_v52 = vadd.f32 %v1167_v50, %v2190_v7 }
 0x164   :  { %1269 = vst.msk [vmem:[%s2277_s3 + $0x24] sm:$0xf] %vm1259_vm1, %v1420_v61  ;;  %v1425_v6 = vpack.c.bf16 %v1193_v47, %v1193_v47  ;;  %v1157_v25 = vadd.f32 %v1643_v41, %v1060_v48  ;;  %v1194_v53 = vmax.f32 %v1176_v49, 0.0 }
 0x165   :  { %v1423_v54 = vpack.c.bf16 %v1191_v24, %v1191_v24  ;;  %v1063_v26 = vadd.f32 %v1606_v51, %v2180_v15  ;;  %v1192_v55 = vmax.f32 %v1168_v52, 0.0 }
 0x166   :  { %1274 = vst.msk [vmem:[%s2277_s3 + $0x38] sm:$0xf] %vm1259_vm1, %v1425_v6  ;;  %v1189_v14 = vmax.f32 %v1157_v25, 0.0  ;;  %v1426_v27 = vpack.c.bf16 %v1194_v53, %v1194_v53 }
 0x167   :  { %1272 = vst.msk [vmem:[%s2277_s3 + $0x30] sm:$0xf] %vm1259_vm1, %v1423_v54  ;;  %v1160_v7 = vadd.f32 %v1644_v23, %v1063_v26  ;;  %v1424_v56 = vpack.c.bf16 %v1192_v55, %v1192_v55 }
 0x168   :  { %v1421_v59 = vpack.c.bf16 %v1189_v14, %v1189_v14  ;;  %1275 = vst.msk [vmem:[%s2277_s3 + $0x3c] sm:$0xf] %vm1259_vm1, %v1426_v27 }
 0x169   :  { %v1190_v15 = vmax.f32 %v1160_v7, 0.0  ;;  %1273 = vst.msk [vmem:[%s2277_s3 + $0x34] sm:$0xf] %vm1259_vm1, %v1424_v56 }
 0x16a   :  { %1270 = vst.msk [vmem:[%s2277_s3 + $0x28] sm:$0xf] %vm1259_vm1, %v1421_v59 }
 0x16b   :  { %v1422_v62 = vpack.c.bf16 %v1190_v15, %v1190_v15 }
 0x16d   :  { %1271 = vst.msk [vmem:[%s2277_s3 + $0x2c] sm:$0xf] %vm1259_vm1, %v1422_v62 }

// kernel: smaller_net_forward.5
= control target key start
LH: loop header
LB: loop body
LE: loop exit
PB: predicated region body
PF: predicated region fallthrough
CT: control target
= control target key end

     0   :  { %v553_v28 = vlaneseq  ;;  %v4038_v36 = vmov 1966171168   ;;  %s4965_s0 = inlined_call_operand.vmem [shape: bf16[2,4096], index: 0, kind: input, shape index: {}]   ;;  %s4966_s1 = inlined_call_operand.vmem [shape: bf16[4096,128], index: 1, kind: input, shape index: {}]   ;;  %s4967_s2 = inlined_call_operand.vmem [shape: f32[1,128], index: 2, kind: input, shape index: {}]   ;;  %s4968_s3 = inlined_call_operand.vmem [shape: f32[128,10], index: 3, kind: input, shape index: {}]   ;;  %s4969_s4 = inlined_call_operand.vmem [shape: f32[1,10], index: 4, kind: input, shape index: {}]   ;;  %s4970_s5 = inlined_call_operand.hbm [shape: f32[2,10], index: 5, kind: output, shape index: {}]  }
   0x1   :  { %v3754_v0 = vld [vmem:[%s4966_s1 + $0x40] sm:$0xff]   ;;  %v3758_v4 = vld [vmem:[%s4966_s1 + $0x48] sm:$0xff]   ;;  %v3762_v8 = vld [vmem:[%s4966_s1 + $0x50] sm:$0xff]   ;;  %v551_v37 = vunpack.c.l.s4 %v4038_v36 }
   0x2   :  { %v3755_v1 = vld [vmem:[%s4966_s1 + $0xc0] sm:$0xff]   ;;  %3321 = vmatprep.subr.bf16.mxu0 %v3754_v0  ;;  %v3759_v5 = vld [vmem:[%s4966_s1 + $0xc8] sm:$0xff]   ;;  %v3763_v9 = vld [vmem:[%s4966_s1 + $0xd0] sm:$0xff]   ;;  %v554_v33 = vshrl.u32 %v553_v28, 7 }
   0x3   :  { %v3756_v2 = vld [vmem:[%s4966_s1] sm:$0xff]   ;;  %3343 = vmatprep.subr.bf16.mxu1 %v3755_v1  ;;  %v3760_v6 = vld [vmem:[%s4966_s1 + $0x8] sm:$0xff]   ;;  %v3764_v10 = vld [vmem:[%s4966_s1 + $0x10] sm:$0xff]   ;;  %v552_v40 = vunpack.c.0.s8 %v551_v37 }
   0x4   :  { %v3757_v3 = vld [vmem:[%s4966_s1 + $0x80] sm:$0xff]   ;;  %3322 = vmatpush3.bf16.msra.mxu0 %v3756_v2  ;;  %v3761_v7 = vld [vmem:[%s4966_s1 + $0x88] sm:$0xff]   ;;  %v3765_v11 = vld [vmem:[%s4966_s1 + $0x90] sm:$0xff]  }
   0x5   :  { %3344 = vmatpush3.bf16.msra.mxu1 %v3757_v3  ;;  %3323 = vmatprep.subr.bf16.mxu0 %v3758_v4  ;;  %v3766_v12 = vld [vmem:[%s4966_s1 + $0x58] sm:$0xff]   ;;  %v3770_v16 = vld [vmem:[%s4966_s1 + $0x60] sm:$0xff]   ;;  %v3774_v20 = vld [vmem:[%s4966_s1 + $0x68] sm:$0xff]   ;;  %v4178_v41 = vsub.s32 %v552_v40, %v554_v33 }
   0x6   :  { %3345 = vmatprep.subr.bf16.mxu1 %v3759_v5  ;;  %v3767_v13 = vld [vmem:[%s4966_s1 + $0xd8] sm:$0xff]   ;;  %v3771_v17 = vld [vmem:[%s4966_s1 + $0xe0] sm:$0xff]   ;;  %v3775_v21 = vld [vmem:[%s4966_s1 + $0xe8] sm:$0xff]  }
   0x7   :  { %v3768_v14 = vld [vmem:[%s4966_s1 + $0x18] sm:$0xff]   ;;  %v3772_v18 = vld [vmem:[%s4966_s1 + $0x20] sm:$0xff]   ;;  %v3776_v22 = vld [vmem:[%s4966_s1 + $0x28] sm:$0xff]  }
   0x8   :  { %3324 = vmatpush3.bf16.msra.mxu0 %v3760_v6  ;;  %v3769_v15 = vld [vmem:[%s4966_s1 + $0x98] sm:$0xff]   ;;  %v3773_v19 = vld [vmem:[%s4966_s1 + $0xa0] sm:$0xff]   ;;  %v3777_v23 = vld [vmem:[%s4966_s1 + $0xa8] sm:$0xff]  }
   0x9   :  { %3346 = vmatpush3.bf16.msra.mxu1 %v3761_v7  ;;  %3325 = vmatprep.subr.bf16.mxu0 %v3762_v8  ;;  %v3778_v24 = vld [vmem:[%s4966_s1 + $0x70] sm:$0xff]   ;;  %v3782_v29 = vld [vmem:[%s4966_s1 + $0x78] sm:$0xff]   ;;  %v22_v34 = vld [vmem:[%s4965_s0] sm:$0xff] }
   0xa   :  { %3347 = vmatprep.subr.bf16.mxu1 %v3763_v9  ;;  %v3779_v25 = vld [vmem:[%s4966_s1 + $0xf0] sm:$0xff]   ;;  %v3783_v30 = vld [vmem:[%s4966_s1 + $0xf8] sm:$0xff]   ;;  %v3787_v35 = vld [vmem:[%s4966_s1 + $0x140] sm:$0xff]   ;;  %v549_v39 = vcombine.high %v22_v34, %v22_v34  ;;  %v556_v42 = vrot.slane %v22_v34, %v4178_v41 }
   0xb   :  { %v3780_v26 = vld [vmem:[%s4966_s1 + $0x30] sm:$0xff]   ;;  %v3784_v31 = vld [vmem:[%s4966_s1 + $0x38] sm:$0xff]   ;;  %v3788_v38 = vld [vmem:[%s4966_s1 + $0x1c0] sm:$0xff]  }
   0xc   :  { %3326 = vmatpush3.bf16.msra.mxu0 %v3764_v10  ;;  %v3781_v27 = vld [vmem:[%s4966_s1 + $0xb0] sm:$0xff]   ;;  %v3785_v32 = vld [vmem:[%s4966_s1 + $0xb8] sm:$0xff]   ;;  %v4182_v43 = vrot.slane %v549_v39, %v4178_v41  ;;  %v564_v44 = vcombine.high %v556_v42, %v556_v42  ;;  %v572_v45 = vrot.slane %v556_v42, %v4178_v41  ;;  %v3789_v47 = vld [vmem:[%s4966_s1 + $0x100] sm:$0xff]  }
   0xd   :  { %3348 = vmatpush3.bf16.msra.mxu1 %v3765_v11  ;;  %3327 = vmatprep.subr.bf16.mxu0 %v3766_v12  ;;  %v3790_v49 = vld [vmem:[%s4966_s1 + $0x180] sm:$0xff]   ;;  %v3791_v52 = vld [vmem:[%s4966_s1 + $0x148] sm:$0xff]   ;;  %v3795_v58 = vld [vmem:[%s4966_s1 + $0x150] sm:$0xff]  }
   0xe   :  { %3349 = vmatprep.subr.bf16.mxu1 %v3767_v13  ;;  %v565_v46 = vcombine.high %v4182_v43, %v4182_v43  ;;  %v586_v48 = vrot.slane %v564_v44, %v4178_v41  ;;  %v594_v51 = vcombine.high %v572_v45, %v572_v45  ;;  %v3792_v54 = vld [vmem:[%s4966_s1 + $0x1c8] sm:$0xff]   ;;  %v3796_v59 = vld [vmem:[%s4966_s1 + $0x1d0] sm:$0xff]   ;;  %v3799_v62 = vld [vmem:[%s4966_s1 + $0x158] sm:$0xff]  }
   0xf   :  { %v3793_v55 = vld [vmem:[%s4966_s1 + $0x108] sm:$0xff]   ;;  %v3797_v60 = vld [vmem:[%s4966_s1 + $0x110] sm:$0xff]   ;;  %v3800_v63 = vld [vmem:[%s4966_s1 + $0x1d8] sm:$0xff]  }
  0x10   :  { %3328 = vmatpush3.bf16.msra.mxu0 %v3768_v14  ;;  %v593_v50 = vrot.slane %v565_v46, %v4178_v41  ;;  %2345 = vmatprep.mubr.bf16.mxu0 %v586_v48  ;;  %v596_v53 = vcombine.high %v586_v48, %v586_v48  ;;  %v3794_v57 = vld [vmem:[%s4966_s1 + $0x188] sm:$0xff]   ;;  %v3798_v61 = vld [vmem:[%s4966_s1 + $0x190] sm:$0xff]   ;;  %v3801_v0 = vld [vmem:[%s4966_s1 + $0x118] sm:$0xff]  }
  0x11   :  { %3350 = vmatpush3.bf16.msra.mxu1 %v3769_v15  ;;  %3329 = vmatprep.subr.bf16.mxu0 %v3770_v16  ;;  %v3802_v1 = vld [vmem:[%s4966_s1 + $0x198] sm:$0xff]   ;;  %v3803_v2 = vld [vmem:[%s4966_s1 + $0x160] sm:$0xff]   ;;  %v3807_v6 = vld [vmem:[%s4966_s1 + $0x168] sm:$0xff]  }
  0x12   :  { %3351 = vmatprep.subr.bf16.mxu1 %v3771_v17  ;;  %v597_v56 = vcombine.high %v593_v50, %v593_v50  ;;  %2385 = vmatprep.mubr.bf16.mxu1 %v596_v53  ;;  %v3804_v3 = vld [vmem:[%s4966_s1 + $0x1e0] sm:$0xff]   ;;  %v3808_v7 = vld [vmem:[%s4966_s1 + $0x1e8] sm:$0xff]   ;;  %v3811_v10 = vld [vmem:[%s4966_s1 + $0x170] sm:$0xff]  }
  0x13   :  { %v3805_v4 = vld [vmem:[%s4966_s1 + $0x120] sm:$0xff]   ;;  %v3809_v8 = vld [vmem:[%s4966_s1 + $0x128] sm:$0xff]   ;;  %v3812_v11 = vld [vmem:[%s4966_s1 + $0x1f0] sm:$0xff]  }
  0x14   :  { %3330 = vmatpush3.bf16.msra.mxu0 %v3772_v18  ;;  %v3806_v5 = vld [vmem:[%s4966_s1 + $0x1a0] sm:$0xff]   ;;  %v3810_v9 = vld [vmem:[%s4966_s1 + $0x1a8] sm:$0xff]   ;;  %v3813_v12 = vld [vmem:[%s4966_s1 + $0x130] sm:$0xff]   ;;  %v579_v18 = vrot.slane %v4182_v43, %v4178_v41 }
  0x15   :  { %3352 = vmatpush3.bf16.msra.mxu1 %v3773_v19  ;;  %3331 = vmatprep.subr.bf16.mxu0 %v3774_v20  ;;  %v3814_v13 = vld [vmem:[%s4966_s1 + $0x1b0] sm:$0xff]   ;;  %v3815_v14 = vld [vmem:[%s4966_s1 + $0x178] sm:$0xff]   ;;  %v3819_v19 = vld [vmem:[%s4966_s1 + $0x240] sm:$0xff]  }
  0x16   :  { %3353 = vmatprep.subr.bf16.mxu1 %v3775_v21  ;;  %v3816_v15 = vld [vmem:[%s4966_s1 + $0x1f8] sm:$0xff]   ;;  %v3820_v20 = vld [vmem:[%s4966_s1 + $0x2c0] sm:$0xff]   ;;  %v3827_v28 = vld [vmem:[%s4966_s1 + $0x250] sm:$0xff]  }
  0x17   :  { %v3817_v16 = vld [vmem:[%s4966_s1 + $0x138] sm:$0xff]   ;;  %v3821_v21 = vld [vmem:[%s4966_s1 + $0x200] sm:$0xff]   ;;  %v3839_v40 = vld [vmem:[%s4966_s1 + $0x268] sm:$0xff]  }
  0x18   :  { %3332 = vmatpush3.bf16.msra.mxu0 %v3776_v22  ;;  %v3818_v17 = vld [vmem:[%s4966_s1 + $0x1b8] sm:$0xff]   ;;  %v3822_v22 = vld [vmem:[%s4966_s1 + $0x280] sm:$0xff]   ;;  %v3840_v42 = vld [vmem:[%s4966_s1 + $0x2e8] sm:$0xff]  }
  0x19   :  { %3354 = vmatpush3.bf16.msra.mxu1 %v3777_v23  ;;  %3333 = vmatprep.subr.bf16.mxu0 %v3778_v24  ;;  %v595_v23 = vcombine.high %v579_v18, %v579_v18  ;;  %v3823_v24 = vld [vmem:[%s4966_s1 + $0x248] sm:$0xff]   ;;  %v3832_v33 = vld [vmem:[%s4966_s1 + $0x2d8] sm:$0xff]   ;;  %v3835_v36 = vld [vmem:[%s4966_s1 + $0x260] sm:$0xff]  }
  0x1a   :  { %3355 = vmatprep.subr.bf16.mxu1 %v3779_v25  ;;  %v3824_v25 = vld [vmem:[%s4966_s1 + $0x2c8] sm:$0xff]   ;;  %v3833_v34 = vld [vmem:[%s4966_s1 + $0x218] sm:$0xff]   ;;  %v3836_v37 = vld [vmem:[%s4966_s1 + $0x2e0] sm:$0xff]  }
  0x1b   :  { %v3838_v39 = vld [vmem:[%s4966_s1 + $0x2a0] sm:$0xff]   ;;  %v3841_v43 = vld [vmem:[%s4966_s1 + $0x228] sm:$0xff]  }
  0x1c   :  { %3334 = vmatpush3.bf16.msra.mxu0 %v3780_v26  ;;  %v3825_v26 = vld [vmem:[%s4966_s1 + $0x208] sm:$0xff]  }
  0x1d   :  { %3356 = vmatpush3.bf16.msra.mxu1 %v3781_v27  ;;  %3335 = vmatprep.subr.bf16.mxu0 %v3782_v29  ;;  %v3826_v27 = vld [vmem:[%s4966_s1 + $0x288] sm:$0xff]   ;;  %v3828_v29 = vld [vmem:[%s4966_s1 + $0x2d0] sm:$0xff]  }
  0x1e   :  { %3357 = vmatprep.subr.bf16.mxu1 %v3783_v30  ;;  %v3829_v30 = vld [vmem:[%s4966_s1 + $0x210] sm:$0xff]   ;;  %v3842_v44 = vld [vmem:[%s4966_s1 + $0x2a8] sm:$0xff]  }
  0x1f   :  { %v23_v46 = vld [vmem:[%s4965_s0 + $0x8] sm:$0xff] }
  0x20   :  { %3336 = vmatpush3.bf16.msra.mxu0 %v3784_v31  ;;  %v3830_v31 = vld [vmem:[%s4966_s1 + $0x290] sm:$0xff]   ;;  %v605_v48 = vrot.slane %v23_v46, %v4178_v41 }
  0x21   :  { %3358 = vmatpush3.bf16.msra.mxu1 %v3785_v32  ;;  %3365 = vmatprep.subr.bf16.mxu0 %v3787_v35  ;;  %v3831_v32 = vld [vmem:[%s4966_s1 + $0x258] sm:$0xff]  }
  0x22   :  { %3387 = vmatprep.subr.bf16.mxu1 %v3788_v38  ;;  %v3834_v35 = vld [vmem:[%s4966_s1 + $0x298] sm:$0xff]   ;;  %v3837_v38 = vld [vmem:[%s4966_s1 + $0x220] sm:$0xff]  }
  0x23   :  { %2346 = vmatmul.mubr.bf16.vlgmr.msra.gmra.mrb[0].mxu0 %v572_v45  ;;  %v3843_v45 = vld [vmem:[%s4966_s1 + $0x270] sm:$0xff]  }
  0x24   :  { %3366 = vmatpush3.bf16.msra.mxu0 %v3789_v47  ;;  %2386 = vmatmul.mubr.bf16.vlgmr.msra.gmra.mrb[0].mxu1 %v594_v51  ;;  %v3844_v47 = vld [vmem:[%s4966_s1 + $0x2f0] sm:$0xff]  }
  0x25   :  { %3367 = vmatprep.subr.bf16.mxu0 %v3791_v52  ;;  %3388 = vmatpush3.bf16.msra.mxu1 %v3790_v49  ;;  %v598_v49 = vcombine.high %v23_v46, %v23_v46  ;;  %v3846_v51 = vld [vmem:[%s4966_s1 + $0x2b0] sm:$0xff]   ;;  %v613_v52 = vcombine.high %v605_v48, %v605_v48 }
  0x26   :  { %2425 = vmatprep.mubr.bf16.mxu0 %v593_v50  ;;  %3389 = vmatprep.subr.bf16.mxu1 %v3792_v54  ;;  %v3845_v50 = vld [vmem:[%s4966_s1 + $0x230] sm:$0xff]   ;;  %v3847_v54 = vld [vmem:[%s4966_s1 + $0x278] sm:$0xff]  }
  0x27   :  { %2465 = vmatprep.mubr.bf16.mxu1 %v597_v56  ;;  %v4370_v53 = vrot.slane %v598_v49, %v4178_v41  ;;  %v635_v56 = vrot.slane %v613_v52, %v4178_v41  ;;  %v3894_v46 = vld [vmem:[%s4966_s1 + $0x410] sm:$0xff]   ;;  %v3897_v49 = vld [vmem:[%s4966_s1 + $0x4d8] sm:$0xff]   ;;  %v3900_v52 = vld [vmem:[%s4966_s1 + $0x460] sm:$0xff]  }
  0x28   :  { %3368 = vmatpush3.bf16.msra.mxu0 %v3793_v55  ;;  %v3848_v55 = vld [vmem:[%s4966_s1 + $0x2f8] sm:$0xff]  }
  0x29   :  { %3369 = vmatprep.subr.bf16.mxu0 %v3795_v58  ;;  %3390 = vmatpush3.bf16.msra.mxu1 %v3794_v57  ;;  %v614_v57 = vcombine.high %v4370_v53, %v4370_v53  ;;  %v3849_v58 = vld [vmem:[%s4966_s1 + $0x238] sm:$0xff]  }
  0x2a   :  { %3391 = vmatprep.subr.bf16.mxu1 %v3796_v59  ;;  %v3850_v59 = vld [vmem:[%s4966_s1 + $0x2b8] sm:$0xff]  }
  0x2c   :  { %3370 = vmatpush3.bf16.msra.mxu0 %v3797_v60  ;;  %v645_v60 = vcombine.high %v635_v56, %v635_v56 }
  0x2d   :  { %3371 = vmatprep.subr.bf16.mxu0 %v3799_v62  ;;  %3392 = vmatpush3.bf16.msra.mxu1 %v3798_v61  ;;  %v621_v61 = vrot.slane %v605_v48, %v4178_v41  ;;  %v3851_v62 = vld [vmem:[%s4966_s1 + $0x340] sm:$0xff]   ;;  %v3896_v48 = vld [vmem:[%s4966_s1 + $0x458] sm:$0xff]  }
  0x2e   :  { %3393 = vmatprep.subr.bf16.mxu1 %v3800_v63  ;;  %v3852_v63 = vld [vmem:[%s4966_s1 + $0x3c0] sm:$0xff]  }
  0x30   :  { %3372 = vmatpush3.bf16.msra.mxu0 %v3801_v0  ;;  %v642_v0 = vrot.slane %v614_v57, %v4178_v41  ;;  %v3905_v57 = vld [vmem:[%s4966_s1 + $0x4e8] sm:$0xff]  }
  0x31   :  { %3373 = vmatprep.subr.bf16.mxu0 %v3803_v2  ;;  %3394 = vmatpush3.bf16.msra.mxu1 %v3802_v1  ;;  %v3853_v1 = vld [vmem:[%s4966_s1 + $0x300] sm:$0xff]  }
  0x32   :  { %3395 = vmatprep.subr.bf16.mxu1 %v3804_v3  ;;  %v3854_v2 = vld [vmem:[%s4966_s1 + $0x380] sm:$0xff]   ;;  %v643_v3 = vcombine.high %v621_v61, %v621_v61 }
  0x34   :  { %3374 = vmatpush3.bf16.msra.mxu0 %v3805_v4  ;;  %v3855_v4 = vld [vmem:[%s4966_s1 + $0x348] sm:$0xff]  }
  0x35   :  { %3375 = vmatprep.subr.bf16.mxu0 %v3807_v6  ;;  %3396 = vmatpush3.bf16.msra.mxu1 %v3806_v5  ;;  %v3856_v5 = vld [vmem:[%s4966_s1 + $0x3c8] sm:$0xff]   ;;  %v646_v6 = vcombine.high %v642_v0, %v642_v0 }
  0x36   :  { %3397 = vmatprep.subr.bf16.mxu1 %v3808_v7  ;;  %v3857_v7 = vld [vmem:[%s4966_s1 + $0x308] sm:$0xff]  }
  0x38   :  { %3376 = vmatpush3.bf16.msra.mxu0 %v3809_v8  ;;  %v3858_v8 = vld [vmem:[%s4966_s1 + $0x388] sm:$0xff]  }
  0x39   :  { %3377 = vmatprep.subr.bf16.mxu0 %v3811_v10  ;;  %3398 = vmatpush3.bf16.msra.mxu1 %v3810_v9  ;;  %v3859_v9 = vld [vmem:[%s4966_s1 + $0x350] sm:$0xff]  }
  0x3a   :  { %3399 = vmatprep.subr.bf16.mxu1 %v3812_v11  ;;  %v3860_v10 = vld [vmem:[%s4966_s1 + $0x3d0] sm:$0xff]  }
  0x3b   :  { %v3861_v11 = vld [vmem:[%s4966_s1 + $0x310] sm:$0xff]  }
  0x3c   :  { %3378 = vmatpush3.bf16.msra.mxu0 %v3813_v12  ;;  %v3862_v12 = vld [vmem:[%s4966_s1 + $0x390] sm:$0xff]  }
  0x3d   :  { %3379 = vmatprep.subr.bf16.mxu0 %v3815_v14  ;;  %3400 = vmatpush3.bf16.msra.mxu1 %v3814_v13  ;;  %v3863_v13 = vld [vmem:[%s4966_s1 + $0x358] sm:$0xff]  }
  0x3e   :  { %3401 = vmatprep.subr.bf16.mxu1 %v3816_v15  ;;  %v3864_v14 = vld [vmem:[%s4966_s1 + $0x3d8] sm:$0xff]  }
  0x3f   :  { %v3865_v15 = vld [vmem:[%s4966_s1 + $0x318] sm:$0xff]  }
  0x40   :  { %3380 = vmatpush3.bf16.msra.mxu0 %v3817_v16  ;;  %v3866_v16 = vld [vmem:[%s4966_s1 + $0x398] sm:$0xff]  }
  0x41   :  { %3409 = vmatprep.subr.bf16.mxu0 %v3819_v19  ;;  %3402 = vmatpush3.bf16.msra.mxu1 %v3818_v17  ;;  %v3867_v17 = vld [vmem:[%s4966_s1 + $0x360] sm:$0xff]  }
  0x42   :  { %3431 = vmatprep.subr.bf16.mxu1 %v3820_v20  ;;  %v3869_v19 = vld [vmem:[%s4966_s1 + $0x320] sm:$0xff]  }
  0x43   :  { %2426 = vmatmul.mubr.bf16.vlgmr.msra.gmra.mrb[4].mxu0 %v579_v18  ;;  %v3868_v18 = vld [vmem:[%s4966_s1 + $0x3e0] sm:$0xff]  }
  0x44   :  { %3410 = vmatpush3.bf16.msra.mxu0 %v3821_v21  ;;  %2466 = vmatmul.mubr.bf16.vlgmr.msra.gmra.mrb[4].mxu1 %v595_v23  ;;  %v3870_v20 = vld [vmem:[%s4966_s1 + $0x3a0] sm:$0xff]   ;;  %v3871_v21 = vld [vmem:[%s4966_s1 + $0x368] sm:$0xff]  }
  0x45   :  { %3411 = vmatprep.subr.bf16.mxu0 %v3823_v24  ;;  %3432 = vmatpush3.bf16.msra.mxu1 %v3822_v22  ;;  %v3872_v22 = vld [vmem:[%s4966_s1 + $0x3e8] sm:$0xff]  }
  0x46   :  { %3433 = vmatprep.subr.bf16.mxu1 %v3824_v25  ;;  %2505 = vmatprep.mubr.bf16.mxu0 %v635_v56  ;;  %v3873_v23 = vld [vmem:[%s4966_s1 + $0x328] sm:$0xff]   ;;  %v3875_v25 = vld [vmem:[%s4966_s1 + $0x370] sm:$0xff]  }
  0x47   :  { %2545 = vmatprep.mubr.bf16.mxu1 %v645_v60  ;;  %v3874_v24 = vld [vmem:[%s4966_s1 + $0x3a8] sm:$0xff]   ;;  %v3908_v60 = vld [vmem:[%s4966_s1 + $0x470] sm:$0xff]  }
  0x48   :  { %3412 = vmatpush3.bf16.msra.mxu0 %v3825_v26  ;;  %v3876_v26 = vld [vmem:[%s4966_s1 + $0x3f0] sm:$0xff]   ;;  %v3904_v56 = vld [vmem:[%s4966_s1 + $0x468] sm:$0xff]  }
  0x49   :  { %3413 = vmatprep.subr.bf16.mxu0 %v3827_v28  ;;  %3434 = vmatpush3.bf16.msra.mxu1 %v3826_v27  ;;  %v3877_v27 = vld [vmem:[%s4966_s1 + $0x330] sm:$0xff]  }
  0x4a   :  { %3435 = vmatprep.subr.bf16.mxu1 %v3828_v29  ;;  %v3878_v28 = vld [vmem:[%s4966_s1 + $0x3b0] sm:$0xff]   ;;  %v3879_v29 = vld [vmem:[%s4966_s1 + $0x378] sm:$0xff]  }
  0x4c   :  { %3414 = vmatpush3.bf16.msra.mxu0 %v3829_v30  ;;  %v3880_v30 = vld [vmem:[%s4966_s1 + $0x3f8] sm:$0xff]  }
  0x4d   :  { %3415 = vmatprep.subr.bf16.mxu0 %v3831_v32  ;;  %3436 = vmatpush3.bf16.msra.mxu1 %v3830_v31  ;;  %v3881_v31 = vld [vmem:[%s4966_s1 + $0x338] sm:$0xff]  }
  0x4e   :  { %3437 = vmatprep.subr.bf16.mxu1 %v3832_v33  ;;  %v3882_v32 = vld [vmem:[%s4966_s1 + $0x3b8] sm:$0xff]   ;;  %v628_v33 = vrot.slane %v4370_v53, %v4178_v41  ;;  %v3901_v53 = vld [vmem:[%s4966_s1 + $0x4e0] sm:$0xff]  }
  0x50   :  { %3416 = vmatpush3.bf16.msra.mxu0 %v3833_v34  ;;  %v3884_v34 = vld [vmem:[%s4966_s1 + $0x440] sm:$0xff]  }
  0x51   :  { %3417 = vmatprep.subr.bf16.mxu0 %v3835_v36  ;;  %3438 = vmatpush3.bf16.msra.mxu1 %v3834_v35  ;;  %v3885_v35 = vld [vmem:[%s4966_s1 + $0x4c0] sm:$0xff]  }
  0x52   :  { %3439 = vmatprep.subr.bf16.mxu1 %v3836_v37  ;;  %v3886_v36 = vld [vmem:[%s4966_s1 + $0x400] sm:$0xff]  }
  0x53   :  { %v3887_v37 = vld [vmem:[%s4966_s1 + $0x480] sm:$0xff]  }
  0x54   :  { %3418 = vmatpush3.bf16.msra.mxu0 %v3837_v38  ;;  %v644_v38 = vcombine.high %v628_v33, %v628_v33 }
  0x55   :  { %3419 = vmatprep.subr.bf16.mxu0 %v3839_v40  ;;  %3440 = vmatpush3.bf16.msra.mxu1 %v3838_v39  ;;  %v3888_v39 = vld [vmem:[%s4966_s1 + $0x448] sm:$0xff]  }
  0x56   :  { %3441 = vmatprep.subr.bf16.mxu1 %v3840_v42  ;;  %v3889_v40 = vld [vmem:[%s4966_s1 + $0x4c8] sm:$0xff]  }
  0x57   :  { %v3890_v42 = vld [vmem:[%s4966_s1 + $0x408] sm:$0xff]  }
  0x58   :  { %3420 = vmatpush3.bf16.msra.mxu0 %v3841_v43  ;;  %v3891_v43 = vld [vmem:[%s4966_s1 + $0x488] sm:$0xff]  }
  0x59   :  { %3421 = vmatprep.subr.bf16.mxu0 %v3843_v45  ;;  %3442 = vmatpush3.bf16.msra.mxu1 %v3842_v44  ;;  %v3892_v44 = vld [vmem:[%s4966_s1 + $0x450] sm:$0xff]  }
  0x5a   :  { %3443 = vmatprep.subr.bf16.mxu1 %v3844_v47  ;;  %v3893_v45 = vld [vmem:[%s4966_s1 + $0x4d0] sm:$0xff]  }
  0x5b   :  { %v3895_v47 = vld [vmem:[%s4966_s1 + $0x490] sm:$0xff]  }
  0x5c   :  { %3422 = vmatpush3.bf16.msra.mxu0 %v3845_v50  ;;  %v3898_v50 = vld [vmem:[%s4966_s1 + $0x418] sm:$0xff]  }
  0x5d   :  { %3423 = vmatprep.subr.bf16.mxu0 %v3847_v54  ;;  %3444 = vmatpush3.bf16.msra.mxu1 %v3846_v51  ;;  %v3899_v51 = vld [vmem:[%s4966_s1 + $0x498] sm:$0xff]   ;;  %v3902_v54 = vld [vmem:[%s4966_s1 + $0x420] sm:$0xff]  }
  0x5e   :  { %3445 = vmatprep.subr.bf16.mxu1 %v3848_v55  ;;  %v3903_v55 = vld [vmem:[%s4966_s1 + $0x4a0] sm:$0xff]  }
  0x60   :  { %3424 = vmatpush3.bf16.msra.mxu0 %v3849_v58  ;;  %v3906_v58 = vld [vmem:[%s4966_s1 + $0x428] sm:$0xff]  }
  0x61   :  { %3453 = vmatprep.subr.bf16.mxu0 %v3851_v62  ;;  %3446 = vmatpush3.bf16.msra.mxu1 %v3850_v59  ;;  %v3907_v59 = vld [vmem:[%s4966_s1 + $0x4a8] sm:$0xff]   ;;  %v3909_v62 = vld [vmem:[%s4966_s1 + $0x4f0] sm:$0xff]  }
  0x62   :  { %3475 = vmatprep.subr.bf16.mxu1 %v3852_v63 }
  0x63   :  { %2506 = vmatmul.mubr.bf16.vlgmr.msra.gmra.mrb[8].mxu0 %v621_v61  ;;  %v24_v61 = vld [vmem:[%s4965_s0 + $0x10] sm:$0xff] }
  0x64   :  { %3454 = vmatpush3.bf16.msra.mxu0 %v3853_v1  ;;  %2585 = vmatprep.mubr.bf16.mxu0 %v642_v0  ;;  %v654_v63 = vrot.slane %v24_v61, %v4178_v41  ;;  %v647_v0 = vcombine.high %v24_v61, %v24_v61  ;;  %v3910_v1 = vld [vmem:[%s4966_s1 + $0x430] sm:$0xff]  }
  0x65   :  { %2546 = vmatmul.mubr.bf16.vlgmr.msra.gmra.mrb[8].mxu1 %v643_v3  ;;  %3455 = vmatprep.subr.bf16.mxu0 %v3855_v4  ;;  %v3959_v61 = vld [vmem:[%s4966_s1 + $0x610] sm:$0xff]  }
  0x66   :  { %3476 = vmatpush3.bf16.msra.mxu1 %v3854_v2  ;;  %2625 = vmatprep.mubr.bf16.mxu1 %v646_v6  ;;  %v3911_v2 = vld [vmem:[%s4966_s1 + $0x4b0] sm:$0xff]   ;;  %v662_v3 = vcombine.high %v654_v63, %v654_v63  ;;  %v4576_v4 = vrot.slane %v647_v0, %v4178_v41  ;;  %v3913_v6 = vld [vmem:[%s4966_s1 + $0x4f8] sm:$0xff]  }
  0x67   :  { %3477 = vmatprep.subr.bf16.mxu1 %v3856_v5  ;;  %v3912_v5 = vld [vmem:[%s4966_s1 + $0x478] sm:$0xff]  }
  0x68   :  { %3456 = vmatpush3.bf16.msra.mxu0 %v3857_v7  ;;  %v684_v7 = vrot.slane %v662_v3, %v4178_v41  ;;  %v3962_v0 = vld [vmem:[%s4966_s1 + $0x6d8] sm:$0xff]   ;;  %v3965_v3 = vld [vmem:[%s4966_s1 + $0x660] sm:$0xff]  }
  0x69   :  { %3457 = vmatprep.subr.bf16.mxu0 %v3859_v9  ;;  %v3914_v9 = vld [vmem:[%s4966_s1 + $0x438] sm:$0xff]  }
  0x6a   :  { %3478 = vmatpush3.bf16.msra.mxu1 %v3858_v8  ;;  %v663_v8 = vcombine.high %v4576_v4, %v4576_v4 }
  0x6b   :  { %3479 = vmatprep.subr.bf16.mxu1 %v3860_v10  ;;  %v3915_v10 = vld [vmem:[%s4966_s1 + $0x4b8] sm:$0xff]  }
  0x6c   :  { %3458 = vmatpush3.bf16.msra.mxu0 %v3861_v11  ;;  %v694_v11 = vcombine.high %v684_v7, %v684_v7 }
  0x6d   :  { %3459 = vmatprep.subr.bf16.mxu0 %v3863_v13  ;;  %v3916_v13 = vld [vmem:[%s4966_s1 + $0x540] sm:$0xff]  }
  0x6e   :  { %3480 = vmatpush3.bf16.msra.mxu1 %v3862_v12  ;;  %v670_v12 = vrot.slane %v654_v63, %v4178_v41  ;;  %v3961_v63 = vld [vmem:[%s4966_s1 + $0x658] sm:$0xff]  }
  0x6f   :  { %3481 = vmatprep.subr.bf16.mxu1 %v3864_v14  ;;  %v3917_v14 = vld [vmem:[%s4966_s1 + $0x5c0] sm:$0xff]  }
  0x70   :  { %3460 = vmatpush3.bf16.msra.mxu0 %v3865_v15  ;;  %v691_v15 = vrot.slane %v663_v8, %v4178_v41  ;;  %v3970_v8 = vld [vmem:[%s4966_s1 + $0x6e8] sm:$0xff]  }
  0x71   :  { %3461 = vmatprep.subr.bf16.mxu0 %v3867_v17  ;;  %v3919_v17 = vld [vmem:[%s4966_s1 + $0x580] sm:$0xff]  }
  0x72   :  { %3482 = vmatpush3.bf16.msra.mxu1 %v3866_v16  ;;  %v3918_v16 = vld [vmem:[%s4966_s1 + $0x500] sm:$0xff]  }
  0x73   :  { %3483 = vmatprep.subr.bf16.mxu1 %v3868_v18  ;;  %v692_v18 = vcombine.high %v670_v12, %v670_v12 }
  0x74   :  { %3462 = vmatpush3.bf16.msra.mxu0 %v3869_v19  ;;  %v3920_v19 = vld [vmem:[%s4966_s1 + $0x548] sm:$0xff]  }
  0x75   :  { %3463 = vmatprep.subr.bf16.mxu0 %v3871_v21  ;;  %v695_v21 = vcombine.high %v691_v15, %v691_v15 }
  0x76   :  { %3484 = vmatpush3.bf16.msra.mxu1 %v3870_v20  ;;  %v3921_v20 = vld [vmem:[%s4966_s1 + $0x5c8] sm:$0xff]  }
  0x77   :  { %3485 = vmatprep.subr.bf16.mxu1 %v3872_v22  ;;  %v3922_v22 = vld [vmem:[%s4966_s1 + $0x508] sm:$0xff]  }
  0x78   :  { %3464 = vmatpush3.bf16.msra.mxu0 %v3873_v23  ;;  %v3923_v23 = vld [vmem:[%s4966_s1 + $0x588] sm:$0xff]  }
  0x79   :  { %3465 = vmatprep.subr.bf16.mxu0 %v3875_v25  ;;  %v3925_v25 = vld [vmem:[%s4966_s1 + $0x5d0] sm:$0xff]  }
  0x7a   :  { %3486 = vmatpush3.bf16.msra.mxu1 %v3874_v24  ;;  %v3924_v24 = vld [vmem:[%s4966_s1 + $0x550] sm:$0xff]  }
  0x7b   :  { %3487 = vmatprep.subr.bf16.mxu1 %v3876_v26  ;;  %v3926_v26 = vld [vmem:[%s4966_s1 + $0x510] sm:$0xff]  }
  0x7c   :  { %3466 = vmatpush3.bf16.msra.mxu0 %v3877_v27  ;;  %v3927_v27 = vld [vmem:[%s4966_s1 + $0x590] sm:$0xff]  }
  0x7d   :  { %3467 = vmatprep.subr.bf16.mxu0 %v3879_v29  ;;  %v3929_v29 = vld [vmem:[%s4966_s1 + $0x5d8] sm:$0xff]  }
  0x7e   :  { %3488 = vmatpush3.bf16.msra.mxu1 %v3878_v28  ;;  %v3928_v28 = vld [vmem:[%s4966_s1 + $0x558] sm:$0xff]  }
  0x7f   :  { %3489 = vmatprep.subr.bf16.mxu1 %v3880_v30  ;;  %v3930_v30 = vld [vmem:[%s4966_s1 + $0x518] sm:$0xff]  }
  0x80   :  { %3468 = vmatpush3.bf16.msra.mxu0 %v3881_v31  ;;  %v3931_v31 = vld [vmem:[%s4966_s1 + $0x598] sm:$0xff]  }
  0x81   :  { %3497 = vmatprep.subr.bf16.mxu0 %v3884_v34  ;;  %v3934_v34 = vld [vmem:[%s4966_s1 + $0x520] sm:$0xff]  }
  0x82   :  { %3490 = vmatpush3.bf16.msra.mxu1 %v3882_v32  ;;  %v3932_v32 = vld [vmem:[%s4966_s1 + $0x560] sm:$0xff]  }
  0x83   :  { %2586 = vmatmul.mubr.bf16.vlgmr.msra.gmra.mrb[12].mxu0 %v628_v33  ;;  %3519 = vmatprep.subr.bf16.mxu1 %v3885_v35  ;;  %v3933_v33 = vld [vmem:[%s4966_s1 + $0x5e0] sm:$0xff]  }
  0x84   :  { %3498 = vmatpush3.bf16.msra.mxu0 %v3886_v36  ;;  %2665 = vmatprep.mubr.bf16.mxu0 %v684_v7  ;;  %v3935_v35 = vld [vmem:[%s4966_s1 + $0x5a0] sm:$0xff]   ;;  %v3936_v36 = vld [vmem:[%s4966_s1 + $0x568] sm:$0xff]  }
  0x85   :  { %2626 = vmatmul.mubr.bf16.vlgmr.msra.gmra.mrb[12].mxu1 %v644_v38  ;;  %3499 = vmatprep.subr.bf16.mxu0 %v3888_v39  ;;  %v3938_v38 = vld [vmem:[%s4966_s1 + $0x528] sm:$0xff]  }
  0x86   :  { %3520 = vmatpush3.bf16.msra.mxu1 %v3887_v37  ;;  %2705 = vmatprep.mubr.bf16.mxu1 %v694_v11  ;;  %v3937_v37 = vld [vmem:[%s4966_s1 + $0x5e8] sm:$0xff]   ;;  %v3973_v11 = vld [vmem:[%s4966_s1 + $0x670] sm:$0xff]  }
  0x87   :  { %3521 = vmatprep.subr.bf16.mxu1 %v3889_v40  ;;  %v3939_v39 = vld [vmem:[%s4966_s1 + $0x5a8] sm:$0xff]   ;;  %v3940_v40 = vld [vmem:[%s4966_s1 + $0x570] sm:$0xff]  }
  0x88   :  { %3500 = vmatpush3.bf16.msra.mxu0 %v3890_v42  ;;  %v3941_v42 = vld [vmem:[%s4966_s1 + $0x5f0] sm:$0xff]   ;;  %v3969_v7 = vld [vmem:[%s4966_s1 + $0x668] sm:$0xff]  }
  0x89   :  { %3501 = vmatprep.subr.bf16.mxu0 %v3892_v44  ;;  %v3943_v44 = vld [vmem:[%s4966_s1 + $0x5b0] sm:$0xff]  }
  0x8a   :  { %3522 = vmatpush3.bf16.msra.mxu1 %v3891_v43  ;;  %v3942_v43 = vld [vmem:[%s4966_s1 + $0x530] sm:$0xff]  }
  0x8b   :  { %3523 = vmatprep.subr.bf16.mxu1 %v3893_v45  ;;  %v3944_v45 = vld [vmem:[%s4966_s1 + $0x578] sm:$0xff]  }
  0x8c   :  { %3502 = vmatpush3.bf16.msra.mxu0 %v3894_v46  ;;  %v3945_v46 = vld [vmem:[%s4966_s1 + $0x5f8] sm:$0xff]  }
  0x8d   :  { %3503 = vmatprep.subr.bf16.mxu0 %v3896_v48  ;;  %v3947_v48 = vld [vmem:[%s4966_s1 + $0x5b8] sm:$0xff]  }
  0x8e   :  { %3524 = vmatpush3.bf16.msra.mxu1 %v3895_v47  ;;  %v3946_v47 = vld [vmem:[%s4966_s1 + $0x538] sm:$0xff]  }
  0x8f   :  { %3525 = vmatprep.subr.bf16.mxu1 %v3897_v49  ;;  %v677_v49 = vrot.slane %v4576_v4, %v4178_v41  ;;  %v3966_v4 = vld [vmem:[%s4966_s1 + $0x6e0] sm:$0xff]  }
  0x90   :  { %3504 = vmatpush3.bf16.msra.mxu0 %v3898_v50  ;;  %v3949_v50 = vld [vmem:[%s4966_s1 + $0x640] sm:$0xff]  }
  0x91   :  { %3505 = vmatprep.subr.bf16.mxu0 %v3900_v52  ;;  %v3951_v52 = vld [vmem:[%s4966_s1 + $0x600] sm:$0xff]  }
  0x92   :  { %3526 = vmatpush3.bf16.msra.mxu1 %v3899_v51  ;;  %v3950_v51 = vld [vmem:[%s4966_s1 + $0x6c0] sm:$0xff]  }
  0x93   :  { %3527 = vmatprep.subr.bf16.mxu1 %v3901_v53  ;;  %v3952_v53 = vld [vmem:[%s4966_s1 + $0x680] sm:$0xff]  }
  0x94   :  { %3506 = vmatpush3.bf16.msra.mxu0 %v3902_v54  ;;  %v693_v54 = vcombine.high %v677_v49, %v677_v49 }
  0x95   :  { %3507 = vmatprep.subr.bf16.mxu0 %v3904_v56  ;;  %v3954_v56 = vld [vmem:[%s4966_s1 + $0x6c8] sm:$0xff]  }
  0x96   :  { %3528 = vmatpush3.bf16.msra.mxu1 %v3903_v55  ;;  %v3953_v55 = vld [vmem:[%s4966_s1 + $0x648] sm:$0xff]  }
  0x97   :  { %3529 = vmatprep.subr.bf16.mxu1 %v3905_v57  ;;  %v3955_v57 = vld [vmem:[%s4966_s1 + $0x608] sm:$0xff]  }
  0x98   :  { %3508 = vmatpush3.bf16.msra.mxu0 %v3906_v58  ;;  %v3956_v58 = vld [vmem:[%s4966_s1 + $0x688] sm:$0xff]  }
  0x99   :  { %3509 = vmatprep.subr.bf16.mxu0 %v3908_v60  ;;  %v3958_v60 = vld [vmem:[%s4966_s1 + $0x6d0] sm:$0xff]  }
  0x9a   :  { %3530 = vmatpush3.bf16.msra.mxu1 %v3907_v59  ;;  %v3957_v59 = vld [vmem:[%s4966_s1 + $0x650] sm:$0xff]  }
  0x9b   :  { %3531 = vmatprep.subr.bf16.mxu1 %v3909_v62  ;;  %v3960_v62 = vld [vmem:[%s4966_s1 + $0x690] sm:$0xff]  }
  0x9c   :  { %3510 = vmatpush3.bf16.msra.mxu0 %v3910_v1  ;;  %v3963_v1 = vld [vmem:[%s4966_s1 + $0x618] sm:$0xff]  }
  0x9d   :  { %3511 = vmatprep.subr.bf16.mxu0 %v3912_v5  ;;  %v3967_v5 = vld [vmem:[%s4966_s1 + $0x620] sm:$0xff]  }
  0x9e   :  { %3532 = vmatpush3.bf16.msra.mxu1 %v3911_v2  ;;  %v3964_v2 = vld [vmem:[%s4966_s1 + $0x698] sm:$0xff]  }
  0x9f   :  { %3533 = vmatprep.subr.bf16.mxu1 %v3913_v6  ;;  %v3968_v6 = vld [vmem:[%s4966_s1 + $0x6a0] sm:$0xff]  }
  0xa0   :  { %3512 = vmatpush3.bf16.msra.mxu0 %v3914_v9  ;;  %v3971_v9 = vld [vmem:[%s4966_s1 + $0x628] sm:$0xff]  }
  0xa1   :  { %3541 = vmatprep.subr.bf16.mxu0 %v3916_v13  ;;  %v3974_v13 = vld [vmem:[%s4966_s1 + $0x6f0] sm:$0xff]  }
  0xa2   :  { %3534 = vmatpush3.bf16.msra.mxu1 %v3915_v10  ;;  %v3972_v10 = vld [vmem:[%s4966_s1 + $0x6a8] sm:$0xff]  }
  0xa3   :  { %2666 = vmatmul.mubr.bf16.vlgmr.msra.gmra.mrb[16].mxu0 %v670_v12  ;;  %3563 = vmatprep.subr.bf16.mxu1 %v3917_v14  ;;  %v25_v12 = vld [vmem:[%s4965_s0 + $0x18] sm:$0xff] }
  0xa4   :  { %3542 = vmatpush3.bf16.msra.mxu0 %v3918_v16  ;;  %2745 = vmatprep.mubr.bf16.mxu0 %v691_v15  ;;  %v703_v14 = vrot.slane %v25_v12, %v4178_v41  ;;  %v696_v15 = vcombine.high %v25_v12, %v25_v12  ;;  %v3975_v16 = vld [vmem:[%s4966_s1 + $0x630] sm:$0xff]  }
  0xa5   :  { %2706 = vmatmul.mubr.bf16.vlgmr.msra.gmra.mrb[16].mxu1 %v692_v18  ;;  %3543 = vmatprep.subr.bf16.mxu0 %v3920_v19 }
  0xa6   :  { %3564 = vmatpush3.bf16.msra.mxu1 %v3919_v17  ;;  %2785 = vmatprep.mubr.bf16.mxu1 %v695_v21  ;;  %v3977_v17 = vld [vmem:[%s4966_s1 + $0x678] sm:$0xff]   ;;  %v711_v18 = vcombine.high %v703_v14, %v703_v14  ;;  %v4782_v19 = vrot.slane %v696_v15, %v4178_v41 }
  0xa7   :  { %3565 = vmatprep.subr.bf16.mxu1 %v3921_v20  ;;  %v3976_v20 = vld [vmem:[%s4966_s1 + $0x6b0] sm:$0xff]   ;;  %v3978_v21 = vld [vmem:[%s4966_s1 + $0x6f8] sm:$0xff]  }
  0xa8   :  { %3544 = vmatpush3.bf16.msra.mxu0 %v3922_v22  ;;  %v733_v22 = vrot.slane %v711_v18, %v4178_v41 }
  0xa9   :  { %3545 = vmatprep.subr.bf16.mxu0 %v3924_v24  ;;  %v3979_v24 = vld [vmem:[%s4966_s1 + $0x638] sm:$0xff]  }
  0xaa   :  { %3566 = vmatpush3.bf16.msra.mxu1 %v3923_v23  ;;  %v712_v23 = vcombine.high %v4782_v19, %v4782_v19 }
  0xab   :  { %3567 = vmatprep.subr.bf16.mxu1 %v3925_v25  ;;  %v743_v25 = vcombine.high %v733_v22, %v733_v22 }
  0xac   :  { %3546 = vmatpush3.bf16.msra.mxu0 %v3926_v26  ;;  %v719_v26 = vrot.slane %v703_v14, %v4178_v41 }
  0xad   :  { %3547 = vmatprep.subr.bf16.mxu0 %v3928_v28  ;;  %v3980_v28 = vld [vmem:[%s4966_s1 + $0x6b8] sm:$0xff]  }
  0xae   :  { %3568 = vmatpush3.bf16.msra.mxu1 %v3927_v27  ;;  %v3981_v27 = vld [vmem:[%s4966_s1 + $0x740] sm:$0xff]  }
  0xaf   :  { %3569 = vmatprep.subr.bf16.mxu1 %v3929_v29  ;;  %v740_v29 = vrot.slane %v712_v23, %v4178_v41 }
  0xb0   :  { %3548 = vmatpush3.bf16.msra.mxu0 %v3930_v30  ;;  %v3982_v30 = vld [vmem:[%s4966_s1 + $0x7c0] sm:$0xff]  }
  0xb1   :  { %3549 = vmatprep.subr.bf16.mxu0 %v3932_v32  ;;  %v741_v32 = vcombine.high %v719_v26, %v719_v26 }
  0xb2   :  { %3570 = vmatpush3.bf16.msra.mxu1 %v3931_v31  ;;  %v3983_v31 = vld [vmem:[%s4966_s1 + $0x700] sm:$0xff]  }
  0xb3   :  { %3571 = vmatprep.subr.bf16.mxu1 %v3933_v33  ;;  %v3985_v33 = vld [vmem:[%s4966_s1 + $0x748] sm:$0xff]  }
  0xb4   :  { %3550 = vmatpush3.bf16.msra.mxu0 %v3934_v34  ;;  %v3984_v34 = vld [vmem:[%s4966_s1 + $0x780] sm:$0xff]  }
  0xb5   :  { %3551 = vmatprep.subr.bf16.mxu0 %v3936_v36  ;;  %v3986_v36 = vld [vmem:[%s4966_s1 + $0x7c8] sm:$0xff]  }
  0xb6   :  { %3572 = vmatpush3.bf16.msra.mxu1 %v3935_v35  ;;  %v744_v35 = vcombine.high %v740_v29, %v740_v29 }
  0xb7   :  { %3573 = vmatprep.subr.bf16.mxu1 %v3937_v37  ;;  %v3987_v37 = vld [vmem:[%s4966_s1 + $0x708] sm:$0xff]  }
  0xb8   :  { %3552 = vmatpush3.bf16.msra.mxu0 %v3938_v38  ;;  %v3989_v38 = vld [vmem:[%s4966_s1 + $0x750] sm:$0xff]  }
  0xb9   :  { %3553 = vmatprep.subr.bf16.mxu0 %v3940_v40  ;;  %v3990_v40 = vld [vmem:[%s4966_s1 + $0x7d0] sm:$0xff]  }
  0xba   :  { %3574 = vmatpush3.bf16.msra.mxu1 %v3939_v39  ;;  %v3988_v39 = vld [vmem:[%s4966_s1 + $0x788] sm:$0xff]  }
  0xbb   :  { %3575 = vmatprep.subr.bf16.mxu1 %v3941_v42  ;;  %v3991_v42 = vld [vmem:[%s4966_s1 + $0x710] sm:$0xff]  }
  0xbc   :  { %3554 = vmatpush3.bf16.msra.mxu0 %v3942_v43  ;;  %v3993_v43 = vld [vmem:[%s4966_s1 + $0x758] sm:$0xff]  }
  0xbd   :  { %3555 = vmatprep.subr.bf16.mxu0 %v3944_v45  ;;  %v3994_v45 = vld [vmem:[%s4966_s1 + $0x7d8] sm:$0xff]  }
  0xbe   :  { %3576 = vmatpush3.bf16.msra.mxu1 %v3943_v44  ;;  %v3992_v44 = vld [vmem:[%s4966_s1 + $0x790] sm:$0xff]  }
  0xbf   :  { %3577 = vmatprep.subr.bf16.mxu1 %v3945_v46  ;;  %v3995_v46 = vld [vmem:[%s4966_s1 + $0x718] sm:$0xff]  }
  0xc0   :  { %3556 = vmatpush3.bf16.msra.mxu0 %v3946_v47  ;;  %v3997_v47 = vld [vmem:[%s4966_s1 + $0x760] sm:$0xff]  }
  0xc1   :  { %3585 = vmatprep.subr.bf16.mxu0 %v3949_v50  ;;  %v3999_v50 = vld [vmem:[%s4966_s1 + $0x720] sm:$0xff]  }
  0xc2   :  { %3578 = vmatpush3.bf16.msra.mxu1 %v3947_v48  ;;  %v3996_v48 = vld [vmem:[%s4966_s1 + $0x798] sm:$0xff]  }
  0xc3   :  { %2746 = vmatmul.mubr.bf16.vlgmr.msra.gmra.mrb[20].mxu0 %v677_v49  ;;  %3607 = vmatprep.subr.bf16.mxu1 %v3950_v51  ;;  %v3998_v49 = vld [vmem:[%s4966_s1 + $0x7e0] sm:$0xff]   ;;  %v4001_v51 = vld [vmem:[%s4966_s1 + $0x768] sm:$0xff]  }
  0xc4   :  { %3586 = vmatpush3.bf16.msra.mxu0 %v3951_v52  ;;  %2825 = vmatprep.mubr.bf16.mxu0 %v733_v22  ;;  %v4000_v52 = vld [vmem:[%s4966_s1 + $0x7a0] sm:$0xff]  }
  0xc5   :  { %2786 = vmatmul.mubr.bf16.vlgmr.msra.gmra.mrb[20].mxu1 %v693_v54  ;;  %3587 = vmatprep.subr.bf16.mxu0 %v3953_v55  ;;  %v4003_v54 = vld [vmem:[%s4966_s1 + $0x728] sm:$0xff]   ;;  %v4005_v55 = vld [vmem:[%s4966_s1 + $0x770] sm:$0xff]  }
  0xc6   :  { %3608 = vmatpush3.bf16.msra.mxu1 %v3952_v53  ;;  %2865 = vmatprep.mubr.bf16.mxu1 %v743_v25  ;;  %v4002_v53 = vld [vmem:[%s4966_s1 + $0x7e8] sm:$0xff]  }
  0xc7   :  { %3609 = vmatprep.subr.bf16.mxu1 %v3954_v56 }
  0xc8   :  { %3588 = vmatpush3.bf16.msra.mxu0 %v3955_v57  ;;  %v4004_v57 = vld [vmem:[%s4966_s1 + $0x7a8] sm:$0xff]  }
  0xc9   :  { %3589 = vmatprep.subr.bf16.mxu0 %v3957_v59 }
  0xca   :  { %3610 = vmatpush3.bf16.msra.mxu1 %v3956_v58 }
  0xcb   :  { %3611 = vmatprep.subr.bf16.mxu1 %v3958_v60 }
  0xcc   :  { %3590 = vmatpush3.bf16.msra.mxu0 %v3959_v61 }
  0xcd   :  { %3591 = vmatprep.subr.bf16.mxu0 %v3961_v63 }
  0xce   :  { %3612 = vmatpush3.bf16.msra.mxu1 %v3960_v62 }
  0xcf   :  { %3613 = vmatprep.subr.bf16.mxu1 %v3962_v0 }
  0xd0   :  { %3592 = vmatpush3.bf16.msra.mxu0 %v3963_v1 }
  0xd1   :  { %3593 = vmatprep.subr.bf16.mxu0 %v3965_v3 }
  0xd2   :  { %3614 = vmatpush3.bf16.msra.mxu1 %v3964_v2 }
  0xd3   :  { %3615 = vmatprep.subr.bf16.mxu1 %v3966_v4 }
  0xd4   :  { %3594 = vmatpush3.bf16.msra.mxu0 %v3967_v5 }
  0xd5   :  { %3595 = vmatprep.subr.bf16.mxu0 %v3969_v7 }
  0xd6   :  { %3616 = vmatpush3.bf16.msra.mxu1 %v3968_v6 }
  0xd7   :  { %3617 = vmatprep.subr.bf16.mxu1 %v3970_v8 }
  0xd8   :  { %3596 = vmatpush3.bf16.msra.mxu0 %v3971_v9 }
  0xd9   :  { %3597 = vmatprep.subr.bf16.mxu0 %v3973_v11 }
  0xda   :  { %3618 = vmatpush3.bf16.msra.mxu1 %v3972_v10 }
  0xdb   :  { %3619 = vmatprep.subr.bf16.mxu1 %v3974_v13 }
  0xdc   :  { %3598 = vmatpush3.bf16.msra.mxu0 %v3975_v16 }
  0xdd   :  { %3599 = vmatprep.subr.bf16.mxu0 %v3977_v17 }
  0xde   :  { %3620 = vmatpush3.bf16.msra.mxu1 %v3976_v20 }
  0xdf   :  { %3621 = vmatprep.subr.bf16.mxu1 %v3978_v21 }
  0xe0   :  { %3600 = vmatpush3.bf16.msra.mxu0 %v3979_v24 }
  0xe1   :  { %3629 = vmatprep.subr.bf16.mxu0 %v3981_v27 }
  0xe2   :  { %3622 = vmatpush3.bf16.msra.mxu1 %v3980_v28 }
  0xe3   :  { %2826 = vmatmul.mubr.bf16.vlgmr.msra.gmra.mrb[24].mxu0 %v719_v26  ;;  %3651 = vmatprep.subr.bf16.mxu1 %v3982_v30 }
  0xe4   :  { %3630 = vmatpush3.bf16.msra.mxu0 %v3983_v31  ;;  %2905 = vmatprep.mubr.bf16.mxu0 %v740_v29 }
  0xe5   :  { %2866 = vmatmul.mubr.bf16.vlgmr.msra.gmra.mrb[24].mxu1 %v741_v32  ;;  %3631 = vmatprep.subr.bf16.mxu0 %v3985_v33 }
  0xe6   :  { %3652 = vmatpush3.bf16.msra.mxu1 %v3984_v34  ;;  %2945 = vmatprep.mubr.bf16.mxu1 %v744_v35 }
  0xe7   :  { %3653 = vmatprep.subr.bf16.mxu1 %v3986_v36 }
  0xe8   :  { %3632 = vmatpush3.bf16.msra.mxu0 %v3987_v37 }
  0xe9   :  { %3633 = vmatprep.subr.bf16.mxu0 %v3989_v38 }
  0xea   :  { %3654 = vmatpush3.bf16.msra.mxu1 %v3988_v39 }
  0xeb   :  { %3655 = vmatprep.subr.bf16.mxu1 %v3990_v40 }
  0xec   :  { %3634 = vmatpush3.bf16.msra.mxu0 %v3991_v42 }
  0xed   :  { %3635 = vmatprep.subr.bf16.mxu0 %v3993_v43 }
  0xee   :  { %3656 = vmatpush3.bf16.msra.mxu1 %v3992_v44 }
  0xef   :  { %3657 = vmatprep.subr.bf16.mxu1 %v3994_v45 }
  0xf0   :  { %3636 = vmatpush3.bf16.msra.mxu0 %v3995_v46 }
  0xf1   :  { %3637 = vmatprep.subr.bf16.mxu0 %v3997_v47 }
  0xf2   :  { %3658 = vmatpush3.bf16.msra.mxu1 %v3996_v48 }
  0xf3   :  { %3659 = vmatprep.subr.bf16.mxu1 %v3998_v49 }
  0xf4   :  { %3638 = vmatpush3.bf16.msra.mxu0 %v3999_v50 }
  0xf5   :  { %3639 = vmatprep.subr.bf16.mxu0 %v4001_v51 }
  0xf6   :  { %3660 = vmatpush3.bf16.msra.mxu1 %v4000_v52  ;;  %v3337_v56 = vpop.f32.mrb[0].mxu0 }
  0xf7   :  { %10 = vsyncpa [#allocation3], 0  ;;  %v3063_v58 = vld [vmem:[%s4967_s2] ss:$0 sm:$0xff]  ;;  %v3338_v59 = vpop.f32.mrb[1].mxu0  ;;  %3661 = vmatprep.subr.bf16.mxu1 %v4002_v53  ;;  %v4006_v60 = vld [vmem:[%s4966_s1 + $0x7f0] sm:$0xff]   ;;  %v726_v12 = vrot.slane %v4782_v19, %v4178_v41 }
  0xf8   :  { %v3359_v61 = vpop.f32.mrb[0].mxu1  ;;  %v3339_v62 = vadd.f32 %v3338_v59, %v3337_v56  ;;  %v3340_v63 = vpop.f32.mrb[2].mxu0  ;;  %3640 = vmatpush3.bf16.msra.mxu0 %v4003_v54  ;;  %v4007_v0 = vld [vmem:[%s4966_s1 + $0x730] sm:$0xff]   ;;  %v4009_v3 = vld [vmem:[%s4966_s1 + $0x778] sm:$0xff]   ;;  %v2954_v38 = vld [vmem:[%s4968_s3] sm:$0xff]  ;;  %v4039_v42 = vmov 0.0|0.0  }
  0xf9   :  { %v3360_v1 = vpop.f32.mrb[1].mxu1  ;;  %v3341_v2 = vpop.f32.mrb[3].mxu0  ;;  %3641 = vmatprep.subr.bf16.mxu0 %v4005_v55  ;;  %v4008_v7 = vld [vmem:[%s4966_s1 + $0x7b0] sm:$0xff]   ;;  %v4010_v9 = vld [vmem:[%s4966_s1 + $0x7f8] sm:$0xff]   ;;  %v742_v14 = vcombine.high %v726_v12, %v726_v12  ;;  %v2955_v39 = vld [vmem:[%s4968_s3 + $0x8] sm:$0xff]  ;;  %vm4040_vm0 = vmmov 0  }
  0xfa   :  { %v2348_v4 = vadd.f32 %v3339_v62, %v3063_v58  ;;  %v3361_v5 = vadd.f32 %v3360_v1, %v3359_v61  ;;  %v3362_v6 = vpop.f32.mrb[2].mxu1  ;;  %3662 = vmatpush3.bf16.msra.mxu1 %v4004_v57  ;;  %v4011_v11 = vld [vmem:[%s4966_s1 + $0x738] sm:$0xff]   ;;  %v2956_v40 = vld [vmem:[%s4968_s3 + $0x10] sm:$0xff]  ;;  %v3726_v43 = vpack.c.bf16 %v2955_v39, %v2954_v38  ;;  %v2958_v46 = vld [vmem:[%s4968_s3 + $0x20] sm:$0xff]  ;;  %s4042_s15 = smov [#allocation2]   ;;  %vm3047_vm1 = vcmask 74752  }
  0xfb   :  { %v3363_v8 = vpop.f32.mrb[3].mxu1  ;;  %3663 = vmatprep.subr.bf16.mxu1 %v4006_v60  ;;  %v4012_v13 = vld [vmem:[%s4966_s1 + $0x7b8] sm:$0xff]   ;;  %v2959_v47 = vld [vmem:[%s4968_s3 + $0x28] sm:$0xff]  ;;  %v2960_v49 = vld [vmem:[%s4968_s3 + $0x30] sm:$0xff]  ;;  %s3055_s0 = sshll.u32 %s4042_s15, 4  ;;  %s3056_s0 = int_to_ptr.vmem [resolvable:$true] %s3055_s0 }
  0xfc   :  { %v2388_v10 = vadd.f32 %v3361_v5, %v2348_v4  ;;  %3642 = vmatpush3.bf16.msra.mxu0 %v4007_v0  ;;  %v2957_v44 = vld [vmem:[%s4968_s3 + $0x18] sm:$0xff]  ;;  %v3732_v48 = vpack.c.bf16 %v2959_v47, %v2958_v46  ;;  %v2962_v52 = vld [vmem:[%s4968_s3 + $0x40] sm:$0xff]  ;;  %v2963_v53 = vld [vmem:[%s4968_s3 + $0x48] sm:$0xff]  ;;  %s4014_s16 = scalar_lea.vmem %s3056_s0, 32  ;;  %p4019_p1 = scmp.lt.s32.totalorder %s3056_s0, %s3056_s0 }
  0xfd   :  { %3643 = vmatprep.subr.bf16.mxu0 %v4009_v3  ;;  %v3729_v45 = vpack.c.bf16 %v2957_v44, %v2956_v40  ;;  %v2961_v50 = vld [vmem:[%s4968_s3 + $0x38] sm:$0xff]  ;;  %v3738_v54 = vpack.c.bf16 %v2963_v53, %v2962_v52  ;;  %v2964_v55 = vld [vmem:[%s4968_s3 + $0x50] sm:$0xff]  ;;  %v2966_v63 = vld [vmem:[%s4968_s3 + $0x60] sm:$0xff]  ;;  %p4015_p0 = scmp.ne.s32.totalorder %s3056_s0, %s4014_s16  ;;  %p4020_p2 = scmp.lt.s32.totalorder %s4014_s16, %s4014_s16 }
  0xfe   :  { %3664 = vmatpush3.bf16.msra.mxu1 %v4008_v7  ;;  %v3735_v51 = vpack.c.bf16 %v2961_v50, %v2960_v49  ;;  %v2965_v56 = vld [vmem:[%s4968_s3 + $0x58] sm:$0xff]  ;;  %v2967_v0 = vld [vmem:[%s4968_s3 + $0x68] sm:$0xff] }
  0xff   :  { %3665 = vmatprep.subr.bf16.mxu1 %v4010_v9  ;;  %v3741_v57 = vpack.c.bf16 %v2965_v56, %v2964_v55  ;;  %v3744_v3 = vpack.c.bf16 %v2967_v0, %v2966_v63  ;;  %v2968_v9 = vld [vmem:[%s4968_s3 + $0x70] sm:$0xff]  ;;  %p4021_p3 = por %p4020_p2, %p4019_p1 }
 0x100   :  { %3644 = vmatpush3.bf16.msra.mxu0 %v4011_v11 }
 0x101   :  { %3725 = vmatprep.subr.bf16.mxu0 %v4039_v42  ;;  %p4022_p4 = pnand %p4021_p3, %p4015_p0 }
 0x102   :  { %3666 = vmatpush3.bf16.msra.mxu1 %v4012_v13 }
 0x103   :  { %2906 = vmatmul.mubr.bf16.vlgmr.msra.gmra.mrb[28].mxu0 %v726_v12  ;;  %v4041_v12 = vmov 0.0  }
 0x104   :  { %3727 = vmatpush3.bf16.msra.mxu0 %v3726_v43  ;;  %3722 = vmatprep.mubr.msk.f32.mxu0 %vm4040_vm0, %v4041_v12 }
 0x105   :  { %2946 = vmatmul.mubr.bf16.vlgmr.msra.gmra.mrb[28].mxu1 %v742_v14  ;;  %3728 = vmatprep.subr.bf16.mxu0 %v4039_v42 }
 0x108   :  { %3730 = vmatpush3.bf16.msra.mxu0 %v3729_v45 }
 0x109   :  { %3731 = vmatprep.subr.bf16.mxu0 %v4039_v42 }
 0x10c   :  { %3733 = vmatpush3.bf16.msra.mxu0 %v3732_v48 }
 0x10d   :  { %3734 = vmatprep.subr.bf16.mxu0 %v4039_v42 }
 0x110   :  { %3736 = vmatpush3.bf16.msra.mxu0 %v3735_v51 }
 0x111   :  { %3737 = vmatprep.subr.bf16.mxu0 %v4039_v42 }
 0x114   :  { %3739 = vmatpush3.bf16.msra.mxu0 %v3738_v54 }
 0x115   :  { %3740 = vmatprep.subr.bf16.mxu0 %v4039_v42 }
 0x116   :  { %v3381_v15 = vpop.f32.mrb[4].mxu0 }
 0x117   :  { %v3382_v16 = vpop.f32.mrb[5].mxu0  ;;  %v3403_v17 = vpop.f32.mrb[4].mxu1 }
 0x118   :  { %v3383_v18 = vadd.f32 %v3382_v16, %v3381_v15  ;;  %v3384_v20 = vpop.f32.mrb[6].mxu0  ;;  %v3404_v21 = vpop.f32.mrb[5].mxu1  ;;  %3742 = vmatpush3.bf16.msra.mxu0 %v3741_v57 }
 0x119   :  { %v3385_v22 = vpop.f32.mrb[7].mxu0  ;;  %v3405_v41 = vadd.f32 %v3404_v21, %v3403_v17  ;;  %v3406_v19 = vpop.f32.mrb[6].mxu1  ;;  %3743 = vmatprep.subr.bf16.mxu0 %v4039_v42 }
 0x11a   :  { %v2428_v23 = vadd.f32 %v3383_v18, %v2388_v10  ;;  %v3407_v24 = vpop.f32.mrb[7].mxu1  ;;  %v2969_v10 = vld [vmem:[%s4968_s3 + $0x78] sm:$0xff] }
 0x11b   :  { %v3747_v11 = vpack.c.bf16 %v2969_v10, %v2968_v9 }
 0x11c   :  { %v2468_v25 = vadd.f32 %v3405_v41, %v2428_v23  ;;  %3745 = vmatpush3.bf16.msra.mxu0 %v3744_v3 }
 0x11d   :  { %3746 = vmatprep.subr.bf16.mxu0 %v4039_v42 }
 0x120   :  { %3748 = vmatpush3.bf16.msra.mxu0 %v3747_v11 }
 0x136   :  { %v3425_v26 = vpop.f32.mrb[8].mxu0 }
 0x137   :  { %v3426_v27 = vpop.f32.mrb[9].mxu0 }
 0x138   :  { %v3447_v28 = vpop.f32.mrb[8].mxu1  ;;  %v3427_v29 = vadd.f32 %v3426_v27, %v3425_v26  ;;  %v3428_v30 = vpop.f32.mrb[10].mxu0 }
 0x139   :  { %v3448_v31 = vpop.f32.mrb[9].mxu1  ;;  %v3429_v32 = vpop.f32.mrb[11].mxu0 }
 0x13a   :  { %v2508_v33 = vadd.f32 %v3427_v29, %v2468_v25  ;;  %v3449_v34 = vadd.f32 %v3448_v31, %v3447_v28  ;;  %v3450_v35 = vpop.f32.mrb[10].mxu1 }
 0x13b   :  { %v3451_v36 = vpop.f32.mrb[11].mxu1 }
 0x13c   :  { %v2548_v37 = vadd.f32 %v3449_v34, %v2508_v33 }
 0x156   :  { %v3469_v58 = vpop.f32.mrb[12].mxu0 }
 0x157   :  { %v3470_v59 = vpop.f32.mrb[13].mxu0 }
 0x158   :  { %v3491_v60 = vpop.f32.mrb[12].mxu1  ;;  %v3471_v61 = vadd.f32 %v3470_v59, %v3469_v58  ;;  %v3472_v62 = vpop.f32.mrb[14].mxu0 }
 0x159   :  { %v3492_v1 = vpop.f32.mrb[13].mxu1  ;;  %v3473_v2 = vpop.f32.mrb[15].mxu0  ;;  %v3320_v62 = vld [vmem:[%s4969_s4] ss:$0 sm:$0xff] }
 0x15a   :  { %v2588_v4 = vadd.f32 %v3471_v61, %v2548_v37  ;;  %v3493_v5 = vadd.f32 %v3492_v1, %v3491_v60  ;;  %v3494_v6 = vpop.f32.mrb[14].mxu1 }
 0x15b   :  { %v3495_v7 = vpop.f32.mrb[15].mxu1 }
 0x15c   :  { %v2628_v8 = vadd.f32 %v3493_v5, %v2588_v4 }
 0x176   :  { %v3513_v13 = vpop.f32.mrb[16].mxu0 }
 0x177   :  { %v3514_v14 = vpop.f32.mrb[17].mxu0 }
 0x178   :  { %v3535_v15 = vpop.f32.mrb[16].mxu1  ;;  %v3515_v16 = vadd.f32 %v3514_v14, %v3513_v13  ;;  %v3516_v17 = vpop.f32.mrb[18].mxu0 }
 0x179   :  { %v3536_v18 = vpop.f32.mrb[17].mxu1  ;;  %v3517_v20 = vpop.f32.mrb[19].mxu0 }
 0x17a   :  { %v2668_v21 = vadd.f32 %v3515_v16, %v2628_v8  ;;  %v3537_v22 = vadd.f32 %v3536_v18, %v3535_v15  ;;  %v3538_v23 = vpop.f32.mrb[18].mxu1 }
 0x17b   :  { %v3539_v41 = vpop.f32.mrb[19].mxu1 }
 0x17c   :  { %v2708_v19 = vadd.f32 %v3537_v22, %v2668_v21 }
 0x196   :  { %v3557_v24 = vpop.f32.mrb[20].mxu0 }
 0x197   :  { %v3558_v25 = vpop.f32.mrb[21].mxu0 }
 0x198   :  { %v3579_v26 = vpop.f32.mrb[20].mxu1  ;;  %v3559_v27 = vadd.f32 %v3558_v25, %v3557_v24  ;;  %v3560_v28 = vpop.f32.mrb[22].mxu0 }
 0x199   :  { %v3580_v29 = vpop.f32.mrb[21].mxu1  ;;  %v3561_v30 = vpop.f32.mrb[23].mxu0 }
 0x19a   :  { %v2748_v31 = vadd.f32 %v3559_v27, %v2708_v19  ;;  %v3581_v32 = vadd.f32 %v3580_v29, %v3579_v26  ;;  %v3582_v33 = vpop.f32.mrb[22].mxu1 }
 0x19b   :  { %v3583_v34 = vpop.f32.mrb[23].mxu1 }
 0x19c   :  { %v2788_v35 = vadd.f32 %v3581_v32, %v2748_v31 }
 0x1b6   :  { %v3601_v36 = vpop.f32.mrb[24].mxu0 }
 0x1b7   :  { %v3602_v37 = vpop.f32.mrb[25].mxu0 }
 0x1b8   :  { %v3623_v38 = vpop.f32.mrb[24].mxu1  ;;  %v3603_v39 = vadd.f32 %v3602_v37, %v3601_v36  ;;  %v3604_v40 = vpop.f32.mrb[26].mxu0 }
 0x1b9   :  { %v3624_v42 = vpop.f32.mrb[25].mxu1  ;;  %v3605_v43 = vpop.f32.mrb[27].mxu0 }
 0x1ba   :  { %v2828_v44 = vadd.f32 %v3603_v39, %v2788_v35  ;;  %v3625_v45 = vadd.f32 %v3624_v42, %v3623_v38  ;;  %v3626_v46 = vpop.f32.mrb[26].mxu1 }
 0x1bb   :  { %v3627_v47 = vpop.f32.mrb[27].mxu1 }
 0x1bc   :  { %v2868_v48 = vadd.f32 %v3625_v45, %v2828_v44 }
 0x1d6   :  { %v3645_v49 = vpop.f32.mrb[28].mxu0 }
 0x1d7   :  { %v3646_v50 = vpop.f32.mrb[29].mxu0 }
 0x1d8   :  { %v3667_v51 = vpop.f32.mrb[28].mxu1  ;;  %v3647_v52 = vadd.f32 %v3646_v50, %v3645_v49  ;;  %v3648_v53 = vpop.f32.mrb[30].mxu0 }
 0x1d9   :  { %v3668_v54 = vpop.f32.mrb[29].mxu1  ;;  %v3649_v55 = vpop.f32.mrb[31].mxu0 }
 0x1da   :  { %v2908_v56 = vadd.f32 %v3647_v52, %v2868_v48  ;;  %v3669_v57 = vadd.f32 %v3668_v54, %v3667_v51  ;;  %v3670_v58 = vpop.f32.mrb[30].mxu1 }
 0x1db   :  { %v3671_v59 = vpop.f32.mrb[31].mxu1 }
 0x1dc   :  { %v2948_v60 = vadd.f32 %v3669_v57, %v2908_v56 }
 0x1de   :  { %v2953_v61 = vmax.f32 %v2948_v60, 0.0 }
 0x1e0   :  { %3723 = vmatmul.mubr.f32.vlgmr.msra.gmra.mrb[32].mxu0 %v2953_v61 }
 0x2b3   :  { %v3043_v63 = vpop.f32.mrb[32].mxu0 }
 0x2b4   :  { %v3044_v0 = vadd.f32 %v3320_v62, %v3043_v63  ;;  %v3724_v1 = vpop.f32.mrb[33].mxu0 }
 0x2b6   :  { %3048 = vst.msk [vmem:[#allocation2] sm:$0x3] %vm3047_vm1, %v3044_v0 }
 0x2b7   :  { %4025 = shalt.err (!%p4022_p4)
}
 0x2b8   :  { %s4026_s19 = scalar_lea.hbm %s4970_s5, 32 }
 0x2b9   :  { %p4027_p5 = scmp.ne.s32.totalorder %s4970_s5, %s4026_s19  ;;  %p4030_p6 = scmp.lt.u32.totalorder %s4026_s19, %s4970_s5 }
 0x2bb   :  { %p4032_p7 = pnand %p4030_p6, %p4027_p5 }
 0x2bd   :  { %4035 = shalt.err (!%p4032_p7)
}
 0x2be   :  { %3058 = dma.vmem_to_hbm [thread:$0]  %s3056_s0, 32, %s4970_s5, [#allocation3]  }
 0x2bf   :  { %4036 = dma.done.wait [#allocation3], 32  }
 0x2c0   :  { %4037 = vsyncadd [#allocation3], 4294967264 }
 0x2c1   :  { %3062 = vsyncpa [#allocation3], 1 }

</bundles_post_ra>
